<compile_context>
chip_gen: v7x
topology: tpu7x:2x2x1
jax: 0.10.0
libtpu: 0.0.40
codegen_flags: <defaults>
</compile_context>

<pallas_src>
import numpy as np
import jax
import jax.numpy as jnp
from jax import lax
from jax.experimental import pallas as pl
from jax.experimental.pallas import tpu as pltpu

# ---------------- configuration (small shapes implied by the module) ----------------
H_DIM = 32            # h_dim
GRID_SIZE = 8         # grid_size
GG = GRID_SIZE * GRID_SIZE
NEIGHBORHOOD = 2.0    # neighborhood_size
N_PED = 4             # pedestrians per sequence
NUM_SEQ = 2           # number of (start, end) tuples in seq_start_end
BATCH = NUM_SEQ * N_PED
BN_EPS = 1e-5
IN_DIM = GG * H_DIM   # grid_size*grid_size*h_dim

assert H_DIM & (H_DIM - 1) == 0, "lane tiling below uses (c & (H_DIM-1))"


# ------------------------------- fused kernel ---------------------------------------
def fused_social_pool_kernel(mask_ref, pos_ref, hid_ref, b_ref, gamma_ref, beta_ref,
                             w_hbm_ref, o_ref, w_vmem, w_sem):
    # Start the Linear-weight DMA first so it overlaps the pooling compute below.
    w_copy = pltpu.make_async_copy(w_hbm_ref, w_vmem, w_sem)
    w_copy.start()

    ns = NEIGHBORHOOD
    ns2 = ns * 0.5
    Gf = float(GRID_SIZE)

    # ---- neighborhood / grid-cell assignment for every (observer j, contributor k) pair ----
    pos = pos_ref[...]                      # (B, 2)
    px = pos[:, 0:1]                        # (B, 1): observer j
    py = pos[:, 1:2]
    pxk = px.T                              # (1, B): contributor k
    pyk = py.T

    tlx = px - ns2
    tly = py + ns2
    brx = px + ns2
    bry = py - ns2

    # PyTorch marks out-of-bound with >= / <=, so in-bound is strict.
    in_x = (pxk < brx) & (pxk > tlx)
    in_y = (pyk < tly) & (pyk > bry)
    jj = lax.broadcasted_iota(jnp.int32, (BATCH, BATCH), 0)
    kk = lax.broadcasted_iota(jnp.int32, (BATCH, BATCH), 1)
    same_seq = mask_ref[...] > 0.5          # host-built block mask from seq_start_end
    valid = in_x & in_y & (jj != kk) & same_seq   # self always excluded

    cell_x = jnp.floor((pxk - tlx) / ns * Gf)
    cell_y = jnp.floor((tly - pyk) / ns * Gf)
    cell = jnp.where(valid, cell_x + cell_y * Gf, -1.0)
    cell_i = cell.astype(jnp.int32)         # (B, B); -1 never matches any lane chunk

    # ---- lane-tile hidden states: hid_tiled[k, g*H + d] = hid[k, d] -------------------------
    # One small 0/1-selector matmul (K = H_DIM) instead of a tile/reshape; default precision.
    d_iota = lax.broadcasted_iota(jnp.int32, (H_DIM, IN_DIM), 0)
    c_iota = lax.broadcasted_iota(jnp.int32, (H_DIM, IN_DIM), 1)
    selector = ((c_iota & (H_DIM - 1)) == d_iota).astype(jnp.float32)       # (H, GG*H)
    hid_tiled = jnp.dot(hid_ref[...], selector,
                        preferred_element_type=jnp.float32)                 # (B, GG*H)

    # ---- social pooling (scatter_add) on the VPU, directly in the lane-dense MLP layout ----
    # x[j, g*H + d] = sum_k [cell(j,k) == g] * hid[k, d]
    lane = lax.broadcasted_iota(jnp.int32, (BATCH, IN_DIM), 1)              # (B, GG*H)
    x = jnp.zeros((BATCH, IN_DIM), jnp.float32)
    for k in range(BATCH):                                                  # static unroll
        lo = cell_i[:, k:k + 1] * H_DIM                                     # (B, 1)
        m = (lane >= lo) & (lane < lo + H_DIM)                              # (B, GG*H)
        x = x + jnp.where(m, hid_tiled[k:k + 1, :], 0.0)

    # ---- mlp_pool: Linear + BatchNorm1d (training-mode batch stats) + ReLU ------------------
    w_copy.wait()
    y = jnp.dot(x, w_vmem[...], preferred_element_type=jnp.float32) + b_ref[...]
    mean = jnp.mean(y, axis=0, keepdims=True)
    var = jnp.mean((y - mean) ** 2, axis=0, keepdims=True)    # biased, as PyTorch training BN
    z = (y - mean) * lax.rsqrt(var + BN_EPS) * gamma_ref[...] + beta_ref[...]
    o_ref[...] = jnp.maximum(z, 0.0)


# ---------------------------------- wrapper ------------------------------------------
def social_pooling_forward(h_states, seq_start_end, end_pos, W, b, gamma, beta):
    # h_states: (num_layers=1, batch, h_dim) -> view(-1, h_dim)
    hid = h_states.reshape(-1, H_DIM)
    assert hid.shape == (BATCH, H_DIM) and end_pos.shape == (BATCH, 2)

    # Host-side same-sequence mask (mirrors the PyTorch per-sequence loop; ragged OK).
    m = np.zeros((BATCH, BATCH), np.float32)
    for (s, e) in seq_start_end:
        m[s:e, s:e] = 1.0
    same_seq = jnp.asarray(m)

    return pl.pallas_call(
        fused_social_pool_kernel,
        out_shape=jax.ShapeDtypeStruct((BATCH, H_DIM), jnp.float32),
        grid=(1,),
        in_specs=[
            pl.BlockSpec((BATCH, BATCH), lambda i: (0, 0)),   # same-sequence mask
            pl.BlockSpec((BATCH, 2), lambda i: (0, 0)),       # end positions
            pl.BlockSpec((BATCH, H_DIM), lambda i: (0, 0)),   # hidden states
            pl.BlockSpec((1, H_DIM), lambda i: (0, 0)),       # Linear bias
            pl.BlockSpec((1, H_DIM), lambda i: (0, 0)),       # BN gamma
            pl.BlockSpec((1, H_DIM), lambda i: (0, 0)),       # BN beta
            pl.BlockSpec(memory_space=pl.ANY),                # Linear weight stays in HBM
        ],
        out_specs=pl.BlockSpec((BATCH, H_DIM), lambda i: (0, 0)),
        scratch_shapes=[
            pltpu.VMEM((IN_DIM, H_DIM), jnp.float32),         # W landing buffer (256 KiB)
            pltpu.SemaphoreType.DMA,
        ],
    )(same_seq, end_pos, hid, b, gamma, beta, W)


# ----------------------------- pure-numpy reference ----------------------------------
def reference_forward(h_states, seq_start_end, end_pos, W, b, gamma, beta):
    hs = np.asarray(h_states).reshape(-1, H_DIM)
    ep = np.asarray(end_pos)
    ns, ns2, G = NEIGHBORHOOD, NEIGHBORHOOD / 2.0, GRID_SIZE
    pools = []
    for (start, end) in seq_start_end:
        n = end - start
        ch, cp = hs[start:end], ep[start:end]
        pool = np.zeros((n, GG, H_DIM), np.float32)
        for j in range(n):
            tlx, tly = cp[j, 0] - ns2, cp[j, 1] + ns2
            brx, bry = cp[j, 0] + ns2, cp[j, 1] - ns2
            for k in range(n):
                if j == k:
                    continue
                x, y = cp[k, 0], cp[k, 1]
                if (x >= brx) or (x <= tlx) or (y >= tly) or (y <= bry):
                    continue
                cx = np.floor((x - tlx) / ns * G)
                cy = np.floor((tly - y) / ns * G)
                pool[j, int(cx + cy * G)] += ch[k]
        pools.append(pool.reshape(n, IN_DIM))
    X = np.concatenate(pools, axis=0)
    y = X @ np.asarray(W) + np.asarray(b)
    mean = y.mean(axis=0, keepdims=True)
    var = ((y - mean) ** 2).mean(axis=0, keepdims=True)
    z = (y - mean) / np.sqrt(var + BN_EPS) * np.asarray(gamma) + np.asarray(beta)
    return np.maximum(z, 0.0)


# --------------------------------------- main ----------------------------------------
if __name__ == "__main__":
    key = jax.random.PRNGKey(0)
    k1, k2, k3, k4 = jax.random.split(key, 4)

    h_states = jax.random.normal(k1, (1, BATCH, H_DIM), jnp.float32)
    end_pos = jax.random.uniform(k2, (BATCH, 2), jnp.float32, minval=-1.0, maxval=1.0)
    seq_start_end = [(0, N_PED), (N_PED, 2 * N_PED)]

    limit = 1.0 / np.sqrt(IN_DIM)
    W = jax.random.uniform(k3, (IN_DIM, H_DIM), jnp.float32, minval=-limit, maxval=limit)
    b = jax.random.uniform(k4, (1, H_DIM), jnp.float32, minval=-limit, maxval=limit)
    gamma = jnp.ones((1, H_DIM), jnp.float32)   # BatchNorm1d weight
    beta = jnp.zeros((1, H_DIM), jnp.float32)   # BatchNorm1d bias

    out = social_pooling_forward(h_states, seq_start_end, end_pos, W, b, gamma, beta)
    out = jax.block_until_ready(out)

    ref = reference_forward(h_states, seq_start_end, end_pos, W, b, gamma, beta)
    # Default (non-HIGHEST) MXU precision rounds f32 matmul operands through bf16 passes,
    # and BN rescales by a small-batch std, so tolerance is sized for bf16-level error.
    np.testing.assert_allclose(np.asarray(out), ref, rtol=1e-2, atol=1e-2)

    print("KERNEL_OK")
</pallas_src>

<mosaic_0001>
module attributes {stable_mosaic.version = 11 : i64} {
  func.func @fused_social_pool_kernel(%arg0: i32, %arg1: memref<8x8xf32, #tpu.memory_space<vmem>>, %arg2: memref<8x2xf32, #tpu.memory_space<vmem>>, %arg3: memref<8x32xf32, #tpu.memory_space<vmem>>, %arg4: memref<1x32xf32, #tpu.memory_space<vmem>>, %arg5: memref<1x32xf32, #tpu.memory_space<vmem>>, %arg6: memref<1x32xf32, #tpu.memory_space<vmem>>, %arg7: memref<2048x32xf32, #tpu.memory_space<any>>, %arg8: memref<8x32xf32, #tpu.memory_space<vmem>>, %arg9: memref<2048x32xf32, #tpu.memory_space<vmem>>, %arg10: memref<!tpu.dma_semaphore, #tpu.memory_space<semaphore_mem>>) attributes {dimension_semantics = [#tpu.dimension_semantics<arbitrary>], iteration_bounds = array<i64: 1>, scalar_prefetch = 0 : i64, scratch_operands = 2 : i64, tpu.core_type = #tpu.core_type<tc>, window_params = [{pipeline_mode = #tpu.pipeline_mode<synchronous>, transform_indices = @transform_0, window_bounds = array<i64: 8, 8>}, {pipeline_mode = #tpu.pipeline_mode<synchronous>, transform_indices = @transform_1, window_bounds = array<i64: 8, 2>}, {pipeline_mode = #tpu.pipeline_mode<synchronous>, transform_indices = @transform_2, window_bounds = array<i64: 8, 32>}, {pipeline_mode = #tpu.pipeline_mode<synchronous>, transform_indices = @transform_3, window_bounds = array<i64: 1, 32>}, {pipeline_mode = #tpu.pipeline_mode<synchronous>, transform_indices = @transform_4, window_bounds = array<i64: 1, 32>}, {pipeline_mode = #tpu.pipeline_mode<synchronous>, transform_indices = @transform_5, window_bounds = array<i64: 1, 32>}, {}, {pipeline_mode = #tpu.pipeline_mode<synchronous>, transform_indices = @transform_7, window_bounds = array<i64: 8, 32>}]} {
    tpu.enqueue_dma source(%arg7 : memref<2048x32xf32, #tpu.memory_space<any>>) target(%arg9 : memref<2048x32xf32, #tpu.memory_space<vmem>>) target_semaphore(%arg10 : memref<!tpu.dma_semaphore, #tpu.memory_space<semaphore_mem>>)
    %c0 = arith.constant 0 : index
    %c0_0 = arith.constant 0 : index
    %0 = vector.load %arg2[%c0, %c0_0] : memref<8x2xf32, #tpu.memory_space<vmem>>, vector<8x2xf32>
    %1 = vector.extract_strided_slice %0 {offsets = [0, 0], sizes = [8, 1], strides = [1, 1]} : vector<8x2xf32> to vector<8x1xf32>
    %2 = vector.extract_strided_slice %0 {offsets = [0, 1], sizes = [8, 1], strides = [1, 1]} : vector<8x2xf32> to vector<8x1xf32>
    %3 = tpu.transpose %1, [1, 0] : vector<8x1xf32> -> vector<1x8xf32>
    %4 = tpu.transpose %2, [1, 0] : vector<8x1xf32> -> vector<1x8xf32>
    %cst = arith.constant 1.000000e+00 : f32
    %5 = vector.broadcast %cst : f32 to vector<8x1xf32>
    %6 = arith.subf %1, %5 : vector<8x1xf32>
    %cst_1 = arith.constant 1.000000e+00 : f32
    %7 = vector.broadcast %cst_1 : f32 to vector<8x1xf32>
    %8 = arith.addf %2, %7 : vector<8x1xf32>
    %cst_2 = arith.constant 1.000000e+00 : f32
    %9 = vector.broadcast %cst_2 : f32 to vector<8x1xf32>
    %10 = arith.addf %1, %9 : vector<8x1xf32>
    %cst_3 = arith.constant 1.000000e+00 : f32
    %11 = vector.broadcast %cst_3 : f32 to vector<8x1xf32>
    %12 = arith.subf %2, %11 : vector<8x1xf32>
    %13 = vector.broadcast %3 : vector<1x8xf32> to vector<8x8xf32>
    %14 = vector.broadcast %10 : vector<8x1xf32> to vector<8x8xf32>
    %15 = arith.cmpf olt, %13, %14 : vector<8x8xf32>
    %16 = vector.broadcast %3 : vector<1x8xf32> to vector<8x8xf32>
    %17 = vector.broadcast %6 : vector<8x1xf32> to vector<8x8xf32>
    %18 = arith.cmpf ogt, %16, %17 : vector<8x8xf32>
    %19 = arith.andi %15, %18 : vector<8x8xi1>
    %20 = vector.broadcast %4 : vector<1x8xf32> to vector<8x8xf32>
    %21 = vector.broadcast %8 : vector<8x1xf32> to vector<8x8xf32>
    %22 = arith.cmpf olt, %20, %21 : vector<8x8xf32>
    %23 = vector.broadcast %4 : vector<1x8xf32> to vector<8x8xf32>
    %24 = vector.broadcast %12 : vector<8x1xf32> to vector<8x8xf32>
    %25 = arith.cmpf ogt, %23, %24 : vector<8x8xf32>
    %26 = arith.andi %22, %25 : vector<8x8xi1>
    %27 = tpu.iota {dimensions = array<i32: 0>} : vector<8x8xi32>
    %28 = tpu.iota {dimensions = array<i32: 1>} : vector<8x8xi32>
    %c0_4 = arith.constant 0 : index
    %c0_5 = arith.constant 0 : index
    %29 = vector.load %arg1[%c0_4, %c0_5] : memref<8x8xf32, #tpu.memory_space<vmem>>, vector<8x8xf32>
    %cst_6 = arith.constant 5.000000e-01 : f32
    %30 = vector.broadcast %cst_6 : f32 to vector<8x8xf32>
    %31 = arith.cmpf ogt, %29, %30 : vector<8x8xf32>
    %32 = arith.andi %19, %26 : vector<8x8xi1>
    %33 = arith.cmpi ne, %27, %28 : vector<8x8xi32>
    %34 = arith.andi %32, %33 : vector<8x8xi1>
    %35 = arith.andi %34, %31 : vector<8x8xi1>
    %36 = vector.broadcast %3 : vector<1x8xf32> to vector<8x8xf32>
    %37 = vector.broadcast %6 : vector<8x1xf32> to vector<8x8xf32>
    %38 = arith.subf %36, %37 : vector<8x8xf32>
    %cst_7 = arith.constant 2.000000e+00 : f32
    %39 = vector.broadcast %cst_7 : f32 to vector<8x8xf32>
    %40 = arith.divf %38, %39 : vector<8x8xf32>
    %cst_8 = arith.constant 8.000000e+00 : f32
    %41 = vector.broadcast %cst_8 : f32 to vector<8x8xf32>
    %42 = arith.mulf %40, %41 : vector<8x8xf32>
    %43 = math.floor %42 : vector<8x8xf32>
    %44 = vector.broadcast %8 : vector<8x1xf32> to vector<8x8xf32>
    %45 = vector.broadcast %4 : vector<1x8xf32> to vector<8x8xf32>
    %46 = arith.subf %44, %45 : vector<8x8xf32>
    %cst_9 = arith.constant 2.000000e+00 : f32
    %47 = vector.broadcast %cst_9 : f32 to vector<8x8xf32>
    %48 = arith.divf %46, %47 : vector<8x8xf32>
    %cst_10 = arith.constant 8.000000e+00 : f32
    %49 = vector.broadcast %cst_10 : f32 to vector<8x8xf32>
    %50 = arith.mulf %48, %49 : vector<8x8xf32>
    %51 = math.floor %50 : vector<8x8xf32>
    %cst_11 = arith.constant 8.000000e+00 : f32
    %52 = vector.broadcast %cst_11 : f32 to vector<8x8xf32>
    %53 = arith.mulf %51, %52 : vector<8x8xf32>
    %54 = arith.addf %43, %53 : vector<8x8xf32>
    %cst_12 = arith.constant -1.000000e+00 : f32
    %55 = vector.broadcast %cst_12 : f32 to vector<8x8xf32>
    %56 = arith.select %35, %54, %55 : vector<8x8xi1>, vector<8x8xf32>
    %57 = arith.fptosi %56 : vector<8x8xf32> to vector<8x8xi32>
    %58 = tpu.iota {dimensions = array<i32: 0>} : vector<32x2048xi32>
    %59 = tpu.iota {dimensions = array<i32: 1>} : vector<32x2048xi32>
    %c31_i32 = arith.constant 31 : i32
    %60 = vector.broadcast %c31_i32 : i32 to vector<32x2048xi32>
    %61 = arith.andi %59, %60 : vector<32x2048xi32>
    %62 = arith.cmpi eq, %61, %58 : vector<32x2048xi32>
    %63 = arith.extui %62 : vector<32x2048xi1> to vector<32x2048xi32>
    %64 = arith.sitofp %63 : vector<32x2048xi32> to vector<32x2048xf32>
    %c0_13 = arith.constant 0 : index
    %c0_14 = arith.constant 0 : index
    %65 = vector.load %arg3[%c0_13, %c0_14] : memref<8x32xf32, #tpu.memory_space<vmem>>, vector<8x32xf32>
    %cst_15 = arith.constant dense<0.000000e+00> : vector<8x2048xf32>
    %66 = tpu.matmul %65, %64, %cst_15 {dimension_numbers = #tpu.dot_dimension_numbers<[1], [0], [0], [1], [0, 0, 1, 1], [], []>} : vector<8x32xf32>, vector<32x2048xf32>, vector<8x2048xf32> -> vector<8x2048xf32>
    %67 = tpu.iota {dimensions = array<i32: 1>} : vector<8x2048xi32>
    %cst_16 = arith.constant 0.000000e+00 : f32
    %68 = vector.broadcast %cst_16 : f32 to vector<8x2048xf32>
    %69 = vector.extract_strided_slice %57 {offsets = [0, 0], sizes = [8, 1], strides = [1, 1]} : vector<8x8xi32> to vector<8x1xi32>
    %c32_i32 = arith.constant 32 : i32
    %70 = vector.broadcast %c32_i32 : i32 to vector<8x1xi32>
    %71 = arith.muli %69, %70 : vector<8x1xi32>
    %72 = vector.broadcast %71 : vector<8x1xi32> to vector<8x2048xi32>
    %73 = arith.cmpi sge, %67, %72 : vector<8x2048xi32>
    %c32_i32_17 = arith.constant 32 : i32
    %74 = vector.broadcast %c32_i32_17 : i32 to vector<8x1xi32>
    %75 = arith.addi %71, %74 : vector<8x1xi32>
    %76 = vector.broadcast %75 : vector<8x1xi32> to vector<8x2048xi32>
    %77 = arith.cmpi slt, %67, %76 : vector<8x2048xi32>
    %78 = arith.andi %73, %77 : vector<8x2048xi1>
    %79 = vector.extract_strided_slice %66 {offsets = [0, 0], sizes = [1, 2048], strides = [1, 1]} : vector<8x2048xf32> to vector<1x2048xf32>
    %cst_18 = arith.constant 0.000000e+00 : f32
    %80 = vector.shape_cast %79 : vector<1x2048xf32> to vector<1x2048xf32>
    %81 = vector.broadcast %80 : vector<1x2048xf32> to vector<8x2048xf32>
    %82 = vector.broadcast %cst_18 : f32 to vector<8x2048xf32>
    %83 = arith.select %78, %81, %82 : vector<8x2048xi1>, vector<8x2048xf32>
    %84 = arith.addf %68, %83 : vector<8x2048xf32>
    %85 = vector.extract_strided_slice %57 {offsets = [0, 1], sizes = [8, 1], strides = [1, 1]} : vector<8x8xi32> to vector<8x1xi32>
    %c32_i32_19 = arith.constant 32 : i32
    %86 = vector.broadcast %c32_i32_19 : i32 to vector<8x1xi32>
    %87 = arith.muli %85, %86 : vector<8x1xi32>
    %88 = vector.broadcast %87 : vector<8x1xi32> to vector<8x2048xi32>
    %89 = arith.cmpi sge, %67, %88 : vector<8x2048xi32>
    %c32_i32_20 = arith.constant 32 : i32
    %90 = vector.broadcast %c32_i32_20 : i32 to vector<8x1xi32>
    %91 = arith.addi %87, %90 : vector<8x1xi32>
    %92 = vector.broadcast %91 : vector<8x1xi32> to vector<8x2048xi32>
    %93 = arith.cmpi slt, %67, %92 : vector<8x2048xi32>
    %94 = arith.andi %89, %93 : vector<8x2048xi1>
    %95 = vector.extract_strided_slice %66 {offsets = [1, 0], sizes = [1, 2048], strides = [1, 1]} : vector<8x2048xf32> to vector<1x2048xf32>
    %cst_21 = arith.constant 0.000000e+00 : f32
    %96 = vector.shape_cast %95 : vector<1x2048xf32> to vector<1x2048xf32>
    %97 = vector.broadcast %96 : vector<1x2048xf32> to vector<8x2048xf32>
    %98 = vector.broadcast %cst_21 : f32 to vector<8x2048xf32>
    %99 = arith.select %94, %97, %98 : vector<8x2048xi1>, vector<8x2048xf32>
    %100 = arith.addf %84, %99 : vector<8x2048xf32>
    %101 = vector.extract_strided_slice %57 {offsets = [0, 2], sizes = [8, 1], strides = [1, 1]} : vector<8x8xi32> to vector<8x1xi32>
    %c32_i32_22 = arith.constant 32 : i32
    %102 = vector.broadcast %c32_i32_22 : i32 to vector<8x1xi32>
    %103 = arith.muli %101, %102 : vector<8x1xi32>
    %104 = vector.broadcast %103 : vector<8x1xi32> to vector<8x2048xi32>
    %105 = arith.cmpi sge, %67, %104 : vector<8x2048xi32>
    %c32_i32_23 = arith.constant 32 : i32
    %106 = vector.broadcast %c32_i32_23 : i32 to vector<8x1xi32>
    %107 = arith.addi %103, %106 : vector<8x1xi32>
    %108 = vector.broadcast %107 : vector<8x1xi32> to vector<8x2048xi32>
    %109 = arith.cmpi slt, %67, %108 : vector<8x2048xi32>
    %110 = arith.andi %105, %109 : vector<8x2048xi1>
    %111 = vector.extract_strided_slice %66 {offsets = [2, 0], sizes = [1, 2048], strides = [1, 1]} : vector<8x2048xf32> to vector<1x2048xf32>
    %cst_24 = arith.constant 0.000000e+00 : f32
    %112 = vector.shape_cast %111 : vector<1x2048xf32> to vector<1x2048xf32>
    %113 = vector.broadcast %112 : vector<1x2048xf32> to vector<8x2048xf32>
    %114 = vector.broadcast %cst_24 : f32 to vector<8x2048xf32>
    %115 = arith.select %110, %113, %114 : vector<8x2048xi1>, vector<8x2048xf32>
    %116 = arith.addf %100, %115 : vector<8x2048xf32>
    %117 = vector.extract_strided_slice %57 {offsets = [0, 3], sizes = [8, 1], strides = [1, 1]} : vector<8x8xi32> to vector<8x1xi32>
    %c32_i32_25 = arith.constant 32 : i32
    %118 = vector.broadcast %c32_i32_25 : i32 to vector<8x1xi32>
    %119 = arith.muli %117, %118 : vector<8x1xi32>
    %120 = vector.broadcast %119 : vector<8x1xi32> to vector<8x2048xi32>
    %121 = arith.cmpi sge, %67, %120 : vector<8x2048xi32>
    %c32_i32_26 = arith.constant 32 : i32
    %122 = vector.broadcast %c32_i32_26 : i32 to vector<8x1xi32>
    %123 = arith.addi %119, %122 : vector<8x1xi32>
    %124 = vector.broadcast %123 : vector<8x1xi32> to vector<8x2048xi32>
    %125 = arith.cmpi slt, %67, %124 : vector<8x2048xi32>
    %126 = arith.andi %121, %125 : vector<8x2048xi1>
    %127 = vector.extract_strided_slice %66 {offsets = [3, 0], sizes = [1, 2048], strides = [1, 1]} : vector<8x2048xf32> to vector<1x2048xf32>
    %cst_27 = arith.constant 0.000000e+00 : f32
    %128 = vector.shape_cast %127 : vector<1x2048xf32> to vector<1x2048xf32>
    %129 = vector.broadcast %128 : vector<1x2048xf32> to vector<8x2048xf32>
    %130 = vector.broadcast %cst_27 : f32 to vector<8x2048xf32>
    %131 = arith.select %126, %129, %130 : vector<8x2048xi1>, vector<8x2048xf32>
    %132 = arith.addf %116, %131 : vector<8x2048xf32>
    %133 = vector.extract_strided_slice %57 {offsets = [0, 4], sizes = [8, 1], strides = [1, 1]} : vector<8x8xi32> to vector<8x1xi32>
    %c32_i32_28 = arith.constant 32 : i32
    %134 = vector.broadcast %c32_i32_28 : i32 to vector<8x1xi32>
    %135 = arith.muli %133, %134 : vector<8x1xi32>
    %136 = vector.broadcast %135 : vector<8x1xi32> to vector<8x2048xi32>
    %137 = arith.cmpi sge, %67, %136 : vector<8x2048xi32>
    %c32_i32_29 = arith.constant 32 : i32
    %138 = vector.broadcast %c32_i32_29 : i32 to vector<8x1xi32>
    %139 = arith.addi %135, %138 : vector<8x1xi32>
    %140 = vector.broadcast %139 : vector<8x1xi32> to vector<8x2048xi32>
    %141 = arith.cmpi slt, %67, %140 : vector<8x2048xi32>
    %142 = arith.andi %137, %141 : vector<8x2048xi1>
    %143 = vector.extract_strided_slice %66 {offsets = [4, 0], sizes = [1, 2048], strides = [1, 1]} : vector<8x2048xf32> to vector<1x2048xf32>
    %cst_30 = arith.constant 0.000000e+00 : f32
    %144 = vector.shape_cast %143 : vector<1x2048xf32> to vector<1x2048xf32>
    %145 = vector.broadcast %144 : vector<1x2048xf32> to vector<8x2048xf32>
    %146 = vector.broadcast %cst_30 : f32 to vector<8x2048xf32>
    %147 = arith.select %142, %145, %146 : vector<8x2048xi1>, vector<8x2048xf32>
    %148 = arith.addf %132, %147 : vector<8x2048xf32>
    %149 = vector.extract_strided_slice %57 {offsets = [0, 5], sizes = [8, 1], strides = [1, 1]} : vector<8x8xi32> to vector<8x1xi32>
    %c32_i32_31 = arith.constant 32 : i32
    %150 = vector.broadcast %c32_i32_31 : i32 to vector<8x1xi32>
    %151 = arith.muli %149, %150 : vector<8x1xi32>
    %152 = vector.broadcast %151 : vector<8x1xi32> to vector<8x2048xi32>
    %153 = arith.cmpi sge, %67, %152 : vector<8x2048xi32>
    %c32_i32_32 = arith.constant 32 : i32
    %154 = vector.broadcast %c32_i32_32 : i32 to vector<8x1xi32>
    %155 = arith.addi %151, %154 : vector<8x1xi32>
    %156 = vector.broadcast %155 : vector<8x1xi32> to vector<8x2048xi32>
    %157 = arith.cmpi slt, %67, %156 : vector<8x2048xi32>
    %158 = arith.andi %153, %157 : vector<8x2048xi1>
    %159 = vector.extract_strided_slice %66 {offsets = [5, 0], sizes = [1, 2048], strides = [1, 1]} : vector<8x2048xf32> to vector<1x2048xf32>
    %cst_33 = arith.constant 0.000000e+00 : f32
    %160 = vector.shape_cast %159 : vector<1x2048xf32> to vector<1x2048xf32>
    %161 = vector.broadcast %160 : vector<1x2048xf32> to vector<8x2048xf32>
    %162 = vector.broadcast %cst_33 : f32 to vector<8x2048xf32>
    %163 = arith.select %158, %161, %162 : vector<8x2048xi1>, vector<8x2048xf32>
    %164 = arith.addf %148, %163 : vector<8x2048xf32>
    %165 = vector.extract_strided_slice %57 {offsets = [0, 6], sizes = [8, 1], strides = [1, 1]} : vector<8x8xi32> to vector<8x1xi32>
    %c32_i32_34 = arith.constant 32 : i32
    %166 = vector.broadcast %c32_i32_34 : i32 to vector<8x1xi32>
    %167 = arith.muli %165, %166 : vector<8x1xi32>
    %168 = vector.broadcast %167 : vector<8x1xi32> to vector<8x2048xi32>
    %169 = arith.cmpi sge, %67, %168 : vector<8x2048xi32>
    %c32_i32_35 = arith.constant 32 : i32
    %170 = vector.broadcast %c32_i32_35 : i32 to vector<8x1xi32>
    %171 = arith.addi %167, %170 : vector<8x1xi32>
    %172 = vector.broadcast %171 : vector<8x1xi32> to vector<8x2048xi32>
    %173 = arith.cmpi slt, %67, %172 : vector<8x2048xi32>
    %174 = arith.andi %169, %173 : vector<8x2048xi1>
    %175 = vector.extract_strided_slice %66 {offsets = [6, 0], sizes = [1, 2048], strides = [1, 1]} : vector<8x2048xf32> to vector<1x2048xf32>
    %cst_36 = arith.constant 0.000000e+00 : f32
    %176 = vector.shape_cast %175 : vector<1x2048xf32> to vector<1x2048xf32>
    %177 = vector.broadcast %176 : vector<1x2048xf32> to vector<8x2048xf32>
    %178 = vector.broadcast %cst_36 : f32 to vector<8x2048xf32>
    %179 = arith.select %174, %177, %178 : vector<8x2048xi1>, vector<8x2048xf32>
    %180 = arith.addf %164, %179 : vector<8x2048xf32>
    %181 = vector.extract_strided_slice %57 {offsets = [0, 7], sizes = [8, 1], strides = [1, 1]} : vector<8x8xi32> to vector<8x1xi32>
    %c32_i32_37 = arith.constant 32 : i32
    %182 = vector.broadcast %c32_i32_37 : i32 to vector<8x1xi32>
    %183 = arith.muli %181, %182 : vector<8x1xi32>
    %184 = vector.broadcast %183 : vector<8x1xi32> to vector<8x2048xi32>
    %185 = arith.cmpi sge, %67, %184 : vector<8x2048xi32>
    %c32_i32_38 = arith.constant 32 : i32
    %186 = vector.broadcast %c32_i32_38 : i32 to vector<8x1xi32>
    %187 = arith.addi %183, %186 : vector<8x1xi32>
    %188 = vector.broadcast %187 : vector<8x1xi32> to vector<8x2048xi32>
    %189 = arith.cmpi slt, %67, %188 : vector<8x2048xi32>
    %190 = arith.andi %185, %189 : vector<8x2048xi1>
    %191 = vector.extract_strided_slice %66 {offsets = [7, 0], sizes = [1, 2048], strides = [1, 1]} : vector<8x2048xf32> to vector<1x2048xf32>
    %cst_39 = arith.constant 0.000000e+00 : f32
    %192 = vector.shape_cast %191 : vector<1x2048xf32> to vector<1x2048xf32>
    %193 = vector.broadcast %192 : vector<1x2048xf32> to vector<8x2048xf32>
    %194 = vector.broadcast %cst_39 : f32 to vector<8x2048xf32>
    %195 = arith.select %190, %193, %194 : vector<8x2048xi1>, vector<8x2048xf32>
    %196 = arith.addf %180, %195 : vector<8x2048xf32>
    tpu.wait_dma2 semaphore(%arg10 : memref<!tpu.dma_semaphore, #tpu.memory_space<semaphore_mem>>) src(%arg7 : memref<2048x32xf32, #tpu.memory_space<any>>) dst(%arg9 : memref<2048x32xf32, #tpu.memory_space<vmem>>)
    %c0_40 = arith.constant 0 : index
    %c0_41 = arith.constant 0 : index
    %197 = vector.load %arg9[%c0_40, %c0_41] : memref<2048x32xf32, #tpu.memory_space<vmem>>, vector<2048x32xf32>
    %cst_42 = arith.constant dense<0.000000e+00> : vector<8x32xf32>
    %198 = tpu.matmul %196, %197, %cst_42 {dimension_numbers = #tpu.dot_dimension_numbers<[1], [0], [0], [1], [0, 0, 1, 1], [], []>} : vector<8x2048xf32>, vector<2048x32xf32>, vector<8x32xf32> -> vector<8x32xf32>
    %c0_43 = arith.constant 0 : index
    %c0_44 = arith.constant 0 : index
    %199 = vector.load %arg4[%c0_43, %c0_44] : memref<1x32xf32, #tpu.memory_space<vmem>>, vector<1x32xf32>
    %200 = vector.broadcast %199 : vector<1x32xf32> to vector<8x32xf32>
    %201 = arith.addf %198, %200 : vector<8x32xf32>
    %cst_45 = arith.constant dense<0.000000e+00> : vector<32xf32>
    %202 = vector.multi_reduction <add>, %201, %cst_45 [0] : vector<8x32xf32> to vector<32xf32>
    %203 = vector.shape_cast %202 : vector<32xf32> to vector<1x32xf32>
    %cst_46 = arith.constant 8.000000e+00 : f32
    %204 = vector.broadcast %cst_46 : f32 to vector<1x32xf32>
    %205 = arith.divf %203, %204 : vector<1x32xf32>
    %206 = vector.broadcast %205 : vector<1x32xf32> to vector<8x32xf32>
    %207 = arith.subf %201, %206 : vector<8x32xf32>
    %208 = arith.mulf %207, %207 : vector<8x32xf32>
    %cst_47 = arith.constant dense<0.000000e+00> : vector<32xf32>
    %209 = vector.multi_reduction <add>, %208, %cst_47 [0] : vector<8x32xf32> to vector<32xf32>
    %210 = vector.shape_cast %209 : vector<32xf32> to vector<1x32xf32>
    %cst_48 = arith.constant 8.000000e+00 : f32
    %211 = vector.broadcast %cst_48 : f32 to vector<1x32xf32>
    %212 = arith.divf %210, %211 : vector<1x32xf32>
    %213 = vector.broadcast %205 : vector<1x32xf32> to vector<8x32xf32>
    %214 = arith.subf %201, %213 : vector<8x32xf32>
    %cst_49 = arith.constant 9.99999974E-6 : f32
    %215 = vector.broadcast %cst_49 : f32 to vector<1x32xf32>
    %216 = arith.addf %212, %215 : vector<1x32xf32>
    %217 = math.rsqrt %216 : vector<1x32xf32>
    %218 = vector.broadcast %217 : vector<1x32xf32> to vector<8x32xf32>
    %219 = arith.mulf %214, %218 : vector<8x32xf32>
    %c0_50 = arith.constant 0 : index
    %c0_51 = arith.constant 0 : index
    %220 = vector.load %arg5[%c0_50, %c0_51] : memref<1x32xf32, #tpu.memory_space<vmem>>, vector<1x32xf32>
    %221 = vector.broadcast %220 : vector<1x32xf32> to vector<8x32xf32>
    %222 = arith.mulf %219, %221 : vector<8x32xf32>
    %c0_52 = arith.constant 0 : index
    %c0_53 = arith.constant 0 : index
    %223 = vector.load %arg6[%c0_52, %c0_53] : memref<1x32xf32, #tpu.memory_space<vmem>>, vector<1x32xf32>
    %224 = vector.broadcast %223 : vector<1x32xf32> to vector<8x32xf32>
    %225 = arith.addf %222, %224 : vector<8x32xf32>
    %cst_54 = arith.constant 0.000000e+00 : f32
    %226 = vector.broadcast %cst_54 : f32 to vector<8x32xf32>
    %227 = arith.maximumf %225, %226 : vector<8x32xf32>
    %c0_55 = arith.constant 0 : index
    %c0_56 = arith.constant 0 : index
    %228 = vector.load %arg8[%c0_55, %c0_56] : memref<8x32xf32, #tpu.memory_space<vmem>>, vector<8x32xf32>
    tpu.vector_store %arg8[%c0_55, %c0_56], %227 {strides = array<i32>} : memref<8x32xf32, #tpu.memory_space<vmem>>, vector<8x32xf32>,
    return
  }
  func.func @transform_0(%arg0: i32) -> (i32, i32) {
    %c0_i32 = arith.constant 0 : i32
    %c0_i32_0 = arith.constant 0 : i32
    %c0_i32_1 = arith.constant 0 : i32
    return %c0_i32, %c0_i32_0 : i32, i32
  }
  func.func @transform_1(%arg0: i32) -> (i32, i32) {
    %c0_i32 = arith.constant 0 : i32
    %c0_i32_0 = arith.constant 0 : i32
    %c0_i32_1 = arith.constant 0 : i32
    return %c0_i32, %c0_i32_0 : i32, i32
  }
  func.func @transform_2(%arg0: i32) -> (i32, i32) {
    %c0_i32 = arith.constant 0 : i32
    %c0_i32_0 = arith.constant 0 : i32
    %c0_i32_1 = arith.constant 0 : i32
    return %c0_i32, %c0_i32_0 : i32, i32
  }
  func.func @transform_3(%arg0: i32) -> (i32, i32) {
    %c0_i32 = arith.constant 0 : i32
    %c0_i32_0 = arith.constant 0 : i32
    %c0_i32_1 = arith.constant 0 : i32
    return %c0_i32, %c0_i32_0 : i32, i32
  }
  func.func @transform_4(%arg0: i32) -> (i32, i32) {
    %c0_i32 = arith.constant 0 : i32
    %c0_i32_0 = arith.constant 0 : i32
    %c0_i32_1 = arith.constant 0 : i32
    return %c0_i32, %c0_i32_0 : i32, i32
  }
  func.func @transform_5(%arg0: i32) -> (i32, i32) {
    %c0_i32 = arith.constant 0 : i32
    %c0_i32_0 = arith.constant 0 : i32
    %c0_i32_1 = arith.constant 0 : i32
    return %c0_i32, %c0_i32_0 : i32, i32
  }
  func.func @transform_7(%arg0: i32) -> (i32, i32) {
    %c0_i32 = arith.constant 0 : i32
    %c0_i32_0 = arith.constant 0 : i32
    %c0_i32_1 = arith.constant 0 : i32
    return %c0_i32, %c0_i32_0 : i32, i32
  }
}

</mosaic_0001>

<bundles_post_ra>
// kernel: tpu_custom_call.1
= control target key start
LH: loop header
LB: loop body
LE: loop exit
PB: predicated region body
PF: predicated region fallthrough
CT: control target
= control target key end

     0   :  { %12 = vsyncpa [#allocation5], 0  ;;  %s9221_s0 = inlined_call_operand.vmem [shape: f32[8,8], index: 0, kind: input, shape index: {}]   ;;  %s9222_s1 = inlined_call_operand.vmem [shape: f32[8,2], index: 1, kind: input, shape index: {}]   ;;  %s9223_s2 = inlined_call_operand.vmem [shape: f32[8,32], index: 2, kind: input, shape index: {}]   ;;  %s9224_s3 = inlined_call_operand.vmem [shape: f32[1,32], index: 3, kind: input, shape index: {}]   ;;  %s9225_s4 = inlined_call_operand.vmem [shape: f32[1,32], index: 4, kind: input, shape index: {}]   ;;  %s9226_s5 = inlined_call_operand.vmem [shape: f32[1,32], index: 5, kind: input, shape index: {}]   ;;  %s9227_s6 = inlined_call_operand.vmem [shape: f32[2048,32], index: 6, kind: input, shape index: {}]   ;;  %s9228_s7 = inlined_call_operand.hbm [shape: f32[8,32], index: 7, kind: output, shape index: {}]  }
   0x1   :  { %v4455_v0 = vld [vmem:[%s9227_s6] sm:$0xff]  ;;  %v4460_v1 = vld [vmem:[%s9227_s6 + $0x8] sm:$0xff]  ;;  %v4465_v2 = vld [vmem:[%s9227_s6 + $0x10] sm:$0xff] }
   0x2   :  { %9337 = vst [vmem:[#allocation9_spill] sm:$0xff] %v4455_v0  ;;  %9338 = vst [vmem:[#allocation10_spill] sm:$0xff] %v4460_v1  ;;  %v4470_v3 = vld [vmem:[%s9227_s6 + $0x18] sm:$0xff]  ;;  %v4475_v4 = vld [vmem:[%s9227_s6 + $0x20] sm:$0xff] }
   0x3   :  { %9339 = vst [vmem:[#allocation11_spill] sm:$0xff] %v4465_v2  ;;  %9340 = vst [vmem:[#allocation12_spill] sm:$0xff] %v4470_v3  ;;  %v4480_v5 = vld [vmem:[%s9227_s6 + $0x28] sm:$0xff]  ;;  %v4485_v6 = vld [vmem:[%s9227_s6 + $0x30] sm:$0xff] }
   0x4   :  { %9341 = vst [vmem:[#allocation13_spill] sm:$0xff] %v4475_v4  ;;  %9342 = vst [vmem:[#allocation14_spill] sm:$0xff] %v4480_v5  ;;  %v4490_v7 = vld [vmem:[%s9227_s6 + $0x38] sm:$0xff]  ;;  %v4495_v8 = vld [vmem:[%s9227_s6 + $0x40] sm:$0xff] }
   0x5   :  { %9343 = vst [vmem:[#allocation15_spill] sm:$0xff] %v4485_v6  ;;  %9344 = vst [vmem:[#allocation16_spill] sm:$0xff] %v4490_v7  ;;  %v4500_v9 = vld [vmem:[%s9227_s6 + $0x48] sm:$0xff]  ;;  %v4505_v10 = vld [vmem:[%s9227_s6 + $0x50] sm:$0xff] }
   0x6   :  { %9345 = vst [vmem:[#allocation17_spill] sm:$0xff] %v4495_v8  ;;  %9346 = vst [vmem:[#allocation18_spill] sm:$0xff] %v4500_v9  ;;  %v4510_v11 = vld [vmem:[%s9227_s6 + $0x58] sm:$0xff]  ;;  %v4515_v12 = vld [vmem:[%s9227_s6 + $0x60] sm:$0xff] }
   0x7   :  { %9347 = vst [vmem:[#allocation19_spill] sm:$0xff] %v4505_v10  ;;  %9348 = vst [vmem:[#allocation20_spill] sm:$0xff] %v4510_v11  ;;  %v4520_v13 = vld [vmem:[%s9227_s6 + $0x68] sm:$0xff]  ;;  %v4525_v14 = vld [vmem:[%s9227_s6 + $0x70] sm:$0xff] }
   0x8   :  { %9349 = vst [vmem:[#allocation21_spill] sm:$0xff] %v4515_v12  ;;  %9350 = vst [vmem:[#allocation22_spill] sm:$0xff] %v4520_v13  ;;  %v4530_v15 = vld [vmem:[%s9227_s6 + $0x78] sm:$0xff]  ;;  %v4535_v16 = vld [vmem:[%s9227_s6 + $0x80] sm:$0xff] }
   0x9   :  { %9351 = vst [vmem:[#allocation23_spill] sm:$0xff] %v4525_v14  ;;  %9352 = vst [vmem:[#allocation24_spill] sm:$0xff] %v4530_v15  ;;  %v4540_v17 = vld [vmem:[%s9227_s6 + $0x88] sm:$0xff]  ;;  %v4545_v18 = vld [vmem:[%s9227_s6 + $0x90] sm:$0xff] }
   0xa   :  { %9353 = vst [vmem:[#allocation25_spill] sm:$0xff] %v4535_v16  ;;  %9354 = vst [vmem:[#allocation26_spill] sm:$0xff] %v4540_v17  ;;  %v4550_v19 = vld [vmem:[%s9227_s6 + $0x98] sm:$0xff]  ;;  %v4555_v20 = vld [vmem:[%s9227_s6 + $0xa0] sm:$0xff] }
   0xb   :  { %9355 = vst [vmem:[#allocation27_spill] sm:$0xff] %v4545_v18  ;;  %9356 = vst [vmem:[#allocation28_spill] sm:$0xff] %v4550_v19  ;;  %v4560_v21 = vld [vmem:[%s9227_s6 + $0xa8] sm:$0xff]  ;;  %v4565_v22 = vld [vmem:[%s9227_s6 + $0xb0] sm:$0xff] }
   0xc   :  { %9357 = vst [vmem:[#allocation29_spill] sm:$0xff] %v4555_v20  ;;  %9358 = vst [vmem:[#allocation30_spill] sm:$0xff] %v4560_v21  ;;  %v4570_v23 = vld [vmem:[%s9227_s6 + $0xb8] sm:$0xff]  ;;  %v4575_v24 = vld [vmem:[%s9227_s6 + $0xc0] sm:$0xff] }
   0xd   :  { %9359 = vst [vmem:[#allocation31_spill] sm:$0xff] %v4565_v22  ;;  %9360 = vst [vmem:[#allocation32_spill] sm:$0xff] %v4570_v23  ;;  %v4580_v25 = vld [vmem:[%s9227_s6 + $0xc8] sm:$0xff]  ;;  %v4585_v26 = vld [vmem:[%s9227_s6 + $0xd0] sm:$0xff] }
   0xe   :  { %9361 = vst [vmem:[#allocation33_spill] sm:$0xff] %v4575_v24  ;;  %9362 = vst [vmem:[#allocation34_spill] sm:$0xff] %v4580_v25  ;;  %v4590_v27 = vld [vmem:[%s9227_s6 + $0xd8] sm:$0xff]  ;;  %v4595_v28 = vld [vmem:[%s9227_s6 + $0xe0] sm:$0xff] }
   0xf   :  { %9363 = vst [vmem:[#allocation35_spill] sm:$0xff] %v4585_v26  ;;  %9364 = vst [vmem:[#allocation36_spill] sm:$0xff] %v4590_v27  ;;  %v4600_v29 = vld [vmem:[%s9227_s6 + $0xe8] sm:$0xff]  ;;  %v4605_v30 = vld [vmem:[%s9227_s6 + $0xf0] sm:$0xff] }
  0x10   :  { %9365 = vst [vmem:[#allocation37_spill] sm:$0xff] %v4595_v28  ;;  %9366 = vst [vmem:[#allocation38_spill] sm:$0xff] %v4600_v29  ;;  %v4610_v31 = vld [vmem:[%s9227_s6 + $0xf8] sm:$0xff]  ;;  %v4615_v32 = vld [vmem:[%s9227_s6 + $0x100] sm:$0xff] }
  0x11   :  { %9367 = vst [vmem:[#allocation39_spill] sm:$0xff] %v4605_v30  ;;  %9368 = vst [vmem:[#allocation40_spill] sm:$0xff] %v4610_v31  ;;  %v4620_v33 = vld [vmem:[%s9227_s6 + $0x108] sm:$0xff]  ;;  %v4625_v34 = vld [vmem:[%s9227_s6 + $0x110] sm:$0xff] }
  0x12   :  { %9369 = vst [vmem:[#allocation41_spill] sm:$0xff] %v4615_v32  ;;  %9370 = vst [vmem:[#allocation42_spill] sm:$0xff] %v4620_v33  ;;  %v4630_v35 = vld [vmem:[%s9227_s6 + $0x118] sm:$0xff]  ;;  %v4635_v36 = vld [vmem:[%s9227_s6 + $0x120] sm:$0xff] }
  0x13   :  { %9371 = vst [vmem:[#allocation43_spill] sm:$0xff] %v4625_v34  ;;  %9372 = vst [vmem:[#allocation44_spill] sm:$0xff] %v4630_v35  ;;  %v4640_v37 = vld [vmem:[%s9227_s6 + $0x128] sm:$0xff]  ;;  %v4645_v38 = vld [vmem:[%s9227_s6 + $0x130] sm:$0xff] }
  0x14   :  { %9373 = vst [vmem:[#allocation45_spill] sm:$0xff] %v4635_v36  ;;  %9374 = vst [vmem:[#allocation46_spill] sm:$0xff] %v4640_v37  ;;  %v4650_v39 = vld [vmem:[%s9227_s6 + $0x138] sm:$0xff]  ;;  %v4655_v40 = vld [vmem:[%s9227_s6 + $0x140] sm:$0xff] }
  0x15   :  { %9375 = vst [vmem:[#allocation47_spill] sm:$0xff] %v4645_v38  ;;  %9376 = vst [vmem:[#allocation48_spill] sm:$0xff] %v4650_v39  ;;  %v4660_v41 = vld [vmem:[%s9227_s6 + $0x148] sm:$0xff]  ;;  %v4665_v42 = vld [vmem:[%s9227_s6 + $0x150] sm:$0xff] }
  0x16   :  { %9377 = vst [vmem:[#allocation49_spill] sm:$0xff] %v4655_v40  ;;  %9378 = vst [vmem:[#allocation50_spill] sm:$0xff] %v4660_v41  ;;  %v4670_v43 = vld [vmem:[%s9227_s6 + $0x158] sm:$0xff]  ;;  %v4675_v44 = vld [vmem:[%s9227_s6 + $0x160] sm:$0xff] }
  0x17   :  { %9379 = vst [vmem:[#allocation51_spill] sm:$0xff] %v4665_v42  ;;  %9380 = vst [vmem:[#allocation52_spill] sm:$0xff] %v4670_v43  ;;  %v4680_v45 = vld [vmem:[%s9227_s6 + $0x168] sm:$0xff]  ;;  %v4685_v46 = vld [vmem:[%s9227_s6 + $0x170] sm:$0xff] }
  0x18   :  { %9381 = vst [vmem:[#allocation53_spill] sm:$0xff] %v4675_v44  ;;  %9382 = vst [vmem:[#allocation54_spill] sm:$0xff] %v4680_v45  ;;  %v4690_v47 = vld [vmem:[%s9227_s6 + $0x178] sm:$0xff]  ;;  %v4695_v48 = vld [vmem:[%s9227_s6 + $0x180] sm:$0xff] }
  0x19   :  { %9383 = vst [vmem:[#allocation55_spill] sm:$0xff] %v4685_v46  ;;  %9384 = vst [vmem:[#allocation56_spill] sm:$0xff] %v4690_v47  ;;  %v4700_v49 = vld [vmem:[%s9227_s6 + $0x188] sm:$0xff]  ;;  %v4705_v50 = vld [vmem:[%s9227_s6 + $0x190] sm:$0xff] }
  0x1a   :  { %9385 = vst [vmem:[#allocation57_spill] sm:$0xff] %v4695_v48  ;;  %9386 = vst [vmem:[#allocation58_spill] sm:$0xff] %v4700_v49  ;;  %v4710_v51 = vld [vmem:[%s9227_s6 + $0x198] sm:$0xff]  ;;  %v4715_v52 = vld [vmem:[%s9227_s6 + $0x1a0] sm:$0xff] }
  0x1b   :  { %9387 = vst [vmem:[#allocation59_spill] sm:$0xff] %v4705_v50  ;;  %9388 = vst [vmem:[#allocation60_spill] sm:$0xff] %v4710_v51  ;;  %v4720_v53 = vld [vmem:[%s9227_s6 + $0x1a8] sm:$0xff]  ;;  %v4725_v54 = vld [vmem:[%s9227_s6 + $0x1b0] sm:$0xff] }
  0x1c   :  { %9389 = vst [vmem:[#allocation61_spill] sm:$0xff] %v4715_v52  ;;  %9390 = vst [vmem:[#allocation62_spill] sm:$0xff] %v4720_v53  ;;  %v4730_v55 = vld [vmem:[%s9227_s6 + $0x1b8] sm:$0xff]  ;;  %v4735_v56 = vld [vmem:[%s9227_s6 + $0x1c0] sm:$0xff] }
  0x1d   :  { %9391 = vst [vmem:[#allocation63_spill] sm:$0xff] %v4725_v54  ;;  %9392 = vst [vmem:[#allocation64_spill] sm:$0xff] %v4730_v55  ;;  %v4740_v57 = vld [vmem:[%s9227_s6 + $0x1c8] sm:$0xff]  ;;  %v4745_v58 = vld [vmem:[%s9227_s6 + $0x1d0] sm:$0xff] }
  0x1e   :  { %9393 = vst [vmem:[#allocation65_spill] sm:$0xff] %v4735_v56  ;;  %9394 = vst [vmem:[#allocation66_spill] sm:$0xff] %v4740_v57  ;;  %v4750_v59 = vld [vmem:[%s9227_s6 + $0x1d8] sm:$0xff]  ;;  %v4755_v60 = vld [vmem:[%s9227_s6 + $0x1e0] sm:$0xff] }
  0x1f   :  { %9395 = vst [vmem:[#allocation67_spill] sm:$0xff] %v4745_v58  ;;  %9396 = vst [vmem:[#allocation68_spill] sm:$0xff] %v4750_v59  ;;  %v4760_v61 = vld [vmem:[%s9227_s6 + $0x1e8] sm:$0xff]  ;;  %v4765_v62 = vld [vmem:[%s9227_s6 + $0x1f0] sm:$0xff] }
  0x20   :  { %9397 = vst [vmem:[#allocation69_spill] sm:$0xff] %v4755_v60  ;;  %9398 = vst [vmem:[#allocation70_spill] sm:$0xff] %v4760_v61  ;;  %v4770_v63 = vld [vmem:[%s9227_s6 + $0x1f8] sm:$0xff]  ;;  %v4775_v47 = vld [vmem:[%s9227_s6 + $0x200] sm:$0xff] }
  0x21   :  { %9399 = vst [vmem:[#allocation71_spill] sm:$0xff] %v4765_v62  ;;  %9400 = vst [vmem:[#allocation72_spill] sm:$0xff] %v4770_v63  ;;  %v4780_v46 = vld [vmem:[%s9227_s6 + $0x208] sm:$0xff]  ;;  %v4785_v15 = vld [vmem:[%s9227_s6 + $0x210] sm:$0xff] }
  0x22   :  { %9401 = vst [vmem:[#allocation73_spill] sm:$0xff] %v4775_v47  ;;  %9402 = vst [vmem:[#allocation74_spill] sm:$0xff] %v4780_v46  ;;  %v4790_v14 = vld [vmem:[%s9227_s6 + $0x218] sm:$0xff]  ;;  %v4795_v63 = vld [vmem:[%s9227_s6 + $0x220] sm:$0xff] }
  0x23   :  { %9403 = vst [vmem:[#allocation75_spill] sm:$0xff] %v4785_v15  ;;  %9404 = vst [vmem:[#allocation76_spill] sm:$0xff] %v4790_v14  ;;  %v4800_v47 = vld [vmem:[%s9227_s6 + $0x228] sm:$0xff]  ;;  %v4805_v46 = vld [vmem:[%s9227_s6 + $0x230] sm:$0xff] }
  0x24   :  { %9405 = vst [vmem:[#allocation77_spill] sm:$0xff] %v4795_v63  ;;  %9406 = vst [vmem:[#allocation78_spill] sm:$0xff] %v4800_v47  ;;  %v4810_v15 = vld [vmem:[%s9227_s6 + $0x238] sm:$0xff]  ;;  %v4815_v14 = vld [vmem:[%s9227_s6 + $0x240] sm:$0xff] }
  0x25   :  { %9407 = vst [vmem:[#allocation79_spill] sm:$0xff] %v4805_v46  ;;  %9408 = vst [vmem:[#allocation80_spill] sm:$0xff] %v4810_v15  ;;  %v4820_v63 = vld [vmem:[%s9227_s6 + $0x248] sm:$0xff]  ;;  %v4825_v47 = vld [vmem:[%s9227_s6 + $0x250] sm:$0xff] }
  0x26   :  { %9409 = vst [vmem:[#allocation81_spill] sm:$0xff] %v4815_v14  ;;  %9410 = vst [vmem:[#allocation82_spill] sm:$0xff] %v4820_v63  ;;  %v4830_v46 = vld [vmem:[%s9227_s6 + $0x258] sm:$0xff]  ;;  %v4835_v15 = vld [vmem:[%s9227_s6 + $0x260] sm:$0xff] }
  0x27   :  { %9411 = vst [vmem:[#allocation83_spill] sm:$0xff] %v4825_v47  ;;  %9412 = vst [vmem:[#allocation84_spill] sm:$0xff] %v4830_v46  ;;  %v4840_v14 = vld [vmem:[%s9227_s6 + $0x268] sm:$0xff]  ;;  %v4845_v63 = vld [vmem:[%s9227_s6 + $0x270] sm:$0xff] }
  0x28   :  { %9413 = vst [vmem:[#allocation85_spill] sm:$0xff] %v4835_v15  ;;  %9414 = vst [vmem:[#allocation86_spill] sm:$0xff] %v4840_v14  ;;  %v4850_v47 = vld [vmem:[%s9227_s6 + $0x278] sm:$0xff]  ;;  %v4855_v46 = vld [vmem:[%s9227_s6 + $0x280] sm:$0xff] }
  0x29   :  { %9415 = vst [vmem:[#allocation87_spill] sm:$0xff] %v4845_v63  ;;  %9416 = vst [vmem:[#allocation88_spill] sm:$0xff] %v4850_v47  ;;  %v4860_v15 = vld [vmem:[%s9227_s6 + $0x288] sm:$0xff]  ;;  %v4865_v14 = vld [vmem:[%s9227_s6 + $0x290] sm:$0xff] }
  0x2a   :  { %9417 = vst [vmem:[#allocation89_spill] sm:$0xff] %v4855_v46  ;;  %9418 = vst [vmem:[#allocation90_spill] sm:$0xff] %v4860_v15  ;;  %v4870_v63 = vld [vmem:[%s9227_s6 + $0x298] sm:$0xff]  ;;  %v4875_v47 = vld [vmem:[%s9227_s6 + $0x2a0] sm:$0xff] }
  0x2b   :  { %9419 = vst [vmem:[#allocation91_spill] sm:$0xff] %v4865_v14  ;;  %9420 = vst [vmem:[#allocation92_spill] sm:$0xff] %v4870_v63  ;;  %v4880_v46 = vld [vmem:[%s9227_s6 + $0x2a8] sm:$0xff]  ;;  %v4885_v15 = vld [vmem:[%s9227_s6 + $0x2b0] sm:$0xff] }
  0x2c   :  { %9421 = vst [vmem:[#allocation93_spill] sm:$0xff] %v4875_v47  ;;  %9422 = vst [vmem:[#allocation94_spill] sm:$0xff] %v4880_v46  ;;  %v4890_v14 = vld [vmem:[%s9227_s6 + $0x2b8] sm:$0xff]  ;;  %v4895_v63 = vld [vmem:[%s9227_s6 + $0x2c0] sm:$0xff] }
  0x2d   :  { %9423 = vst [vmem:[#allocation95_spill] sm:$0xff] %v4885_v15  ;;  %9424 = vst [vmem:[#allocation96_spill] sm:$0xff] %v4890_v14  ;;  %v4900_v47 = vld [vmem:[%s9227_s6 + $0x2c8] sm:$0xff]  ;;  %v4905_v46 = vld [vmem:[%s9227_s6 + $0x2d0] sm:$0xff] }
  0x2e   :  { %9425 = vst [vmem:[#allocation97_spill] sm:$0xff] %v4895_v63  ;;  %9426 = vst [vmem:[#allocation98_spill] sm:$0xff] %v4900_v47  ;;  %v4910_v15 = vld [vmem:[%s9227_s6 + $0x2d8] sm:$0xff]  ;;  %v4915_v14 = vld [vmem:[%s9227_s6 + $0x2e0] sm:$0xff] }
  0x2f   :  { %9427 = vst [vmem:[#allocation99_spill] sm:$0xff] %v4905_v46  ;;  %9428 = vst [vmem:[#allocation100_spill] sm:$0xff] %v4910_v15  ;;  %v4920_v63 = vld [vmem:[%s9227_s6 + $0x2e8] sm:$0xff]  ;;  %v4925_v47 = vld [vmem:[%s9227_s6 + $0x2f0] sm:$0xff] }
  0x30   :  { %9429 = vst [vmem:[#allocation101_spill] sm:$0xff] %v4915_v14  ;;  %9430 = vst [vmem:[#allocation102_spill] sm:$0xff] %v4920_v63  ;;  %v4930_v46 = vld [vmem:[%s9227_s6 + $0x2f8] sm:$0xff]  ;;  %v4935_v15 = vld [vmem:[%s9227_s6 + $0x300] sm:$0xff] }
  0x31   :  { %9431 = vst [vmem:[#allocation103_spill] sm:$0xff] %v4925_v47  ;;  %9432 = vst [vmem:[#allocation104_spill] sm:$0xff] %v4930_v46  ;;  %v4940_v14 = vld [vmem:[%s9227_s6 + $0x308] sm:$0xff]  ;;  %v4945_v63 = vld [vmem:[%s9227_s6 + $0x310] sm:$0xff] }
  0x32   :  { %9433 = vst [vmem:[#allocation105_spill] sm:$0xff] %v4935_v15  ;;  %9434 = vst [vmem:[#allocation106_spill] sm:$0xff] %v4940_v14  ;;  %v4950_v47 = vld [vmem:[%s9227_s6 + $0x318] sm:$0xff]  ;;  %v4955_v46 = vld [vmem:[%s9227_s6 + $0x320] sm:$0xff] }
  0x33   :  { %9435 = vst [vmem:[#allocation107_spill] sm:$0xff] %v4945_v63  ;;  %9436 = vst [vmem:[#allocation108_spill] sm:$0xff] %v4950_v47  ;;  %v4960_v15 = vld [vmem:[%s9227_s6 + $0x328] sm:$0xff]  ;;  %v4965_v14 = vld [vmem:[%s9227_s6 + $0x330] sm:$0xff] }
  0x34   :  { %9437 = vst [vmem:[#allocation109_spill] sm:$0xff] %v4955_v46  ;;  %9438 = vst [vmem:[#allocation110_spill] sm:$0xff] %v4960_v15  ;;  %v4970_v63 = vld [vmem:[%s9227_s6 + $0x338] sm:$0xff]  ;;  %v4975_v47 = vld [vmem:[%s9227_s6 + $0x340] sm:$0xff] }
  0x35   :  { %9439 = vst [vmem:[#allocation111_spill] sm:$0xff] %v4965_v14  ;;  %9440 = vst [vmem:[#allocation112_spill] sm:$0xff] %v4970_v63  ;;  %v4980_v46 = vld [vmem:[%s9227_s6 + $0x348] sm:$0xff]  ;;  %v4985_v15 = vld [vmem:[%s9227_s6 + $0x350] sm:$0xff] }
  0x36   :  { %9441 = vst [vmem:[#allocation113_spill] sm:$0xff] %v4975_v47  ;;  %9442 = vst [vmem:[#allocation114_spill] sm:$0xff] %v4980_v46  ;;  %v4990_v14 = vld [vmem:[%s9227_s6 + $0x358] sm:$0xff]  ;;  %v4995_v63 = vld [vmem:[%s9227_s6 + $0x360] sm:$0xff] }
  0x37   :  { %9443 = vst [vmem:[#allocation115_spill] sm:$0xff] %v4985_v15  ;;  %9444 = vst [vmem:[#allocation116_spill] sm:$0xff] %v4990_v14  ;;  %v5000_v47 = vld [vmem:[%s9227_s6 + $0x368] sm:$0xff]  ;;  %v5005_v46 = vld [vmem:[%s9227_s6 + $0x370] sm:$0xff] }
  0x38   :  { %9445 = vst [vmem:[#allocation117_spill] sm:$0xff] %v4995_v63  ;;  %9446 = vst [vmem:[#allocation118_spill] sm:$0xff] %v5000_v47  ;;  %v5010_v15 = vld [vmem:[%s9227_s6 + $0x378] sm:$0xff]  ;;  %v5015_v14 = vld [vmem:[%s9227_s6 + $0x380] sm:$0xff] }
  0x39   :  { %9447 = vst [vmem:[#allocation119_spill] sm:$0xff] %v5005_v46  ;;  %9448 = vst [vmem:[#allocation120_spill] sm:$0xff] %v5010_v15  ;;  %v5020_v63 = vld [vmem:[%s9227_s6 + $0x388] sm:$0xff]  ;;  %v5025_v47 = vld [vmem:[%s9227_s6 + $0x390] sm:$0xff] }
  0x3a   :  { %9449 = vst [vmem:[#allocation121_spill] sm:$0xff] %v5015_v14  ;;  %9450 = vst [vmem:[#allocation122_spill] sm:$0xff] %v5020_v63  ;;  %v5030_v46 = vld [vmem:[%s9227_s6 + $0x398] sm:$0xff]  ;;  %v5035_v15 = vld [vmem:[%s9227_s6 + $0x3a0] sm:$0xff] }
  0x3b   :  { %9451 = vst [vmem:[#allocation123_spill] sm:$0xff] %v5025_v47  ;;  %9452 = vst [vmem:[#allocation124_spill] sm:$0xff] %v5030_v46  ;;  %v5040_v14 = vld [vmem:[%s9227_s6 + $0x3a8] sm:$0xff]  ;;  %v5045_v63 = vld [vmem:[%s9227_s6 + $0x3b0] sm:$0xff] }
  0x3c   :  { %9453 = vst [vmem:[#allocation125_spill] sm:$0xff] %v5035_v15  ;;  %9454 = vst [vmem:[#allocation126_spill] sm:$0xff] %v5040_v14  ;;  %v5050_v47 = vld [vmem:[%s9227_s6 + $0x3b8] sm:$0xff]  ;;  %v5055_v46 = vld [vmem:[%s9227_s6 + $0x3c0] sm:$0xff] }
  0x3d   :  { %9455 = vst [vmem:[#allocation127_spill] sm:$0xff] %v5045_v63  ;;  %9456 = vst [vmem:[#allocation128_spill] sm:$0xff] %v5050_v47  ;;  %v5060_v15 = vld [vmem:[%s9227_s6 + $0x3c8] sm:$0xff]  ;;  %v5065_v14 = vld [vmem:[%s9227_s6 + $0x3d0] sm:$0xff] }
  0x3e   :  { %9457 = vst [vmem:[#allocation129_spill] sm:$0xff] %v5055_v46  ;;  %9458 = vst [vmem:[#allocation130_spill] sm:$0xff] %v5060_v15  ;;  %v5070_v63 = vld [vmem:[%s9227_s6 + $0x3d8] sm:$0xff]  ;;  %v5075_v47 = vld [vmem:[%s9227_s6 + $0x3e0] sm:$0xff] }
  0x3f   :  { %9459 = vst [vmem:[#allocation131_spill] sm:$0xff] %v5065_v14  ;;  %9460 = vst [vmem:[#allocation132_spill] sm:$0xff] %v5070_v63  ;;  %v5080_v46 = vld [vmem:[%s9227_s6 + $0x3e8] sm:$0xff]  ;;  %v5085_v15 = vld [vmem:[%s9227_s6 + $0x3f0] sm:$0xff] }
  0x40   :  { %9461 = vst [vmem:[#allocation133_spill] sm:$0xff] %v5075_v47  ;;  %9462 = vst [vmem:[#allocation134_spill] sm:$0xff] %v5080_v46  ;;  %v5090_v14 = vld [vmem:[%s9227_s6 + $0x3f8] sm:$0xff]  ;;  %v5095_v63 = vld [vmem:[%s9227_s6 + $0x400] sm:$0xff] }
  0x41   :  { %9463 = vst [vmem:[#allocation135_spill] sm:$0xff] %v5085_v15  ;;  %9464 = vst [vmem:[#allocation136_spill] sm:$0xff] %v5090_v14  ;;  %v5100_v47 = vld [vmem:[%s9227_s6 + $0x408] sm:$0xff]  ;;  %v5105_v46 = vld [vmem:[%s9227_s6 + $0x410] sm:$0xff] }
  0x42   :  { %9465 = vst [vmem:[#allocation137_spill] sm:$0xff] %v5095_v63  ;;  %9466 = vst [vmem:[#allocation138_spill] sm:$0xff] %v5100_v47  ;;  %v5110_v15 = vld [vmem:[%s9227_s6 + $0x418] sm:$0xff]  ;;  %v5115_v14 = vld [vmem:[%s9227_s6 + $0x420] sm:$0xff] }
  0x43   :  { %9467 = vst [vmem:[#allocation139_spill] sm:$0xff] %v5105_v46  ;;  %9468 = vst [vmem:[#allocation140_spill] sm:$0xff] %v5110_v15  ;;  %v5120_v63 = vld [vmem:[%s9227_s6 + $0x428] sm:$0xff]  ;;  %v5125_v47 = vld [vmem:[%s9227_s6 + $0x430] sm:$0xff] }
  0x44   :  { %9469 = vst [vmem:[#allocation141_spill] sm:$0xff] %v5115_v14  ;;  %9470 = vst [vmem:[#allocation142_spill] sm:$0xff] %v5120_v63  ;;  %v5130_v46 = vld [vmem:[%s9227_s6 + $0x438] sm:$0xff]  ;;  %v5135_v15 = vld [vmem:[%s9227_s6 + $0x440] sm:$0xff] }
  0x45   :  { %9471 = vst [vmem:[#allocation143_spill] sm:$0xff] %v5125_v47  ;;  %9472 = vst [vmem:[#allocation144_spill] sm:$0xff] %v5130_v46  ;;  %v5140_v14 = vld [vmem:[%s9227_s6 + $0x448] sm:$0xff]  ;;  %v5145_v63 = vld [vmem:[%s9227_s6 + $0x450] sm:$0xff] }
  0x46   :  { %9473 = vst [vmem:[#allocation145_spill] sm:$0xff] %v5135_v15  ;;  %9474 = vst [vmem:[#allocation146_spill] sm:$0xff] %v5140_v14  ;;  %v5150_v47 = vld [vmem:[%s9227_s6 + $0x458] sm:$0xff]  ;;  %v5155_v46 = vld [vmem:[%s9227_s6 + $0x460] sm:$0xff] }
  0x47   :  { %9475 = vst [vmem:[#allocation147_spill] sm:$0xff] %v5145_v63  ;;  %9476 = vst [vmem:[#allocation148_spill] sm:$0xff] %v5150_v47  ;;  %v5160_v15 = vld [vmem:[%s9227_s6 + $0x468] sm:$0xff]  ;;  %v5165_v14 = vld [vmem:[%s9227_s6 + $0x470] sm:$0xff] }
  0x48   :  { %9477 = vst [vmem:[#allocation149_spill] sm:$0xff] %v5155_v46  ;;  %9478 = vst [vmem:[#allocation150_spill] sm:$0xff] %v5160_v15  ;;  %v5170_v63 = vld [vmem:[%s9227_s6 + $0x478] sm:$0xff]  ;;  %v5175_v47 = vld [vmem:[%s9227_s6 + $0x480] sm:$0xff] }
  0x49   :  { %9479 = vst [vmem:[#allocation151_spill] sm:$0xff] %v5165_v14  ;;  %9480 = vst [vmem:[#allocation152_spill] sm:$0xff] %v5170_v63  ;;  %v5180_v46 = vld [vmem:[%s9227_s6 + $0x488] sm:$0xff]  ;;  %v5185_v15 = vld [vmem:[%s9227_s6 + $0x490] sm:$0xff] }
  0x4a   :  { %9481 = vst [vmem:[#allocation153_spill] sm:$0xff] %v5175_v47  ;;  %9482 = vst [vmem:[#allocation154_spill] sm:$0xff] %v5180_v46  ;;  %v5190_v14 = vld [vmem:[%s9227_s6 + $0x498] sm:$0xff]  ;;  %v5195_v63 = vld [vmem:[%s9227_s6 + $0x4a0] sm:$0xff] }
  0x4b   :  { %9483 = vst [vmem:[#allocation155_spill] sm:$0xff] %v5185_v15  ;;  %9484 = vst [vmem:[#allocation156_spill] sm:$0xff] %v5190_v14  ;;  %v5200_v47 = vld [vmem:[%s9227_s6 + $0x4a8] sm:$0xff]  ;;  %v5205_v46 = vld [vmem:[%s9227_s6 + $0x4b0] sm:$0xff] }
  0x4c   :  { %9485 = vst [vmem:[#allocation157_spill] sm:$0xff] %v5195_v63  ;;  %9486 = vst [vmem:[#allocation158_spill] sm:$0xff] %v5200_v47  ;;  %v5210_v15 = vld [vmem:[%s9227_s6 + $0x4b8] sm:$0xff]  ;;  %v5215_v14 = vld [vmem:[%s9227_s6 + $0x4c0] sm:$0xff] }
  0x4d   :  { %9487 = vst [vmem:[#allocation159_spill] sm:$0xff] %v5205_v46  ;;  %9488 = vst [vmem:[#allocation160_spill] sm:$0xff] %v5210_v15  ;;  %v5220_v63 = vld [vmem:[%s9227_s6 + $0x4c8] sm:$0xff]  ;;  %v5225_v47 = vld [vmem:[%s9227_s6 + $0x4d0] sm:$0xff] }
  0x4e   :  { %9489 = vst [vmem:[#allocation161_spill] sm:$0xff] %v5215_v14  ;;  %9490 = vst [vmem:[#allocation162_spill] sm:$0xff] %v5220_v63  ;;  %v5230_v46 = vld [vmem:[%s9227_s6 + $0x4d8] sm:$0xff]  ;;  %v5235_v15 = vld [vmem:[%s9227_s6 + $0x4e0] sm:$0xff] }
  0x4f   :  { %9491 = vst [vmem:[#allocation163_spill] sm:$0xff] %v5225_v47  ;;  %9492 = vst [vmem:[#allocation164_spill] sm:$0xff] %v5230_v46  ;;  %v5240_v14 = vld [vmem:[%s9227_s6 + $0x4e8] sm:$0xff]  ;;  %v5245_v63 = vld [vmem:[%s9227_s6 + $0x4f0] sm:$0xff] }
  0x50   :  { %9493 = vst [vmem:[#allocation165_spill] sm:$0xff] %v5235_v15  ;;  %9494 = vst [vmem:[#allocation166_spill] sm:$0xff] %v5240_v14  ;;  %v5250_v47 = vld [vmem:[%s9227_s6 + $0x4f8] sm:$0xff]  ;;  %v5255_v46 = vld [vmem:[%s9227_s6 + $0x500] sm:$0xff] }
  0x51   :  { %9495 = vst [vmem:[#allocation167_spill] sm:$0xff] %v5245_v63  ;;  %9496 = vst [vmem:[#allocation168_spill] sm:$0xff] %v5250_v47  ;;  %v5260_v15 = vld [vmem:[%s9227_s6 + $0x508] sm:$0xff]  ;;  %v5265_v14 = vld [vmem:[%s9227_s6 + $0x510] sm:$0xff] }
  0x52   :  { %9497 = vst [vmem:[#allocation169_spill] sm:$0xff] %v5255_v46  ;;  %9498 = vst [vmem:[#allocation170_spill] sm:$0xff] %v5260_v15  ;;  %v5270_v63 = vld [vmem:[%s9227_s6 + $0x518] sm:$0xff]  ;;  %v5275_v47 = vld [vmem:[%s9227_s6 + $0x520] sm:$0xff] }
  0x53   :  { %9499 = vst [vmem:[#allocation171_spill] sm:$0xff] %v5265_v14  ;;  %9500 = vst [vmem:[#allocation172_spill] sm:$0xff] %v5270_v63  ;;  %v5280_v46 = vld [vmem:[%s9227_s6 + $0x528] sm:$0xff]  ;;  %v5285_v15 = vld [vmem:[%s9227_s6 + $0x530] sm:$0xff] }
  0x54   :  { %9501 = vst [vmem:[#allocation173_spill] sm:$0xff] %v5275_v47  ;;  %9502 = vst [vmem:[#allocation174_spill] sm:$0xff] %v5280_v46  ;;  %v5290_v14 = vld [vmem:[%s9227_s6 + $0x538] sm:$0xff]  ;;  %v5295_v63 = vld [vmem:[%s9227_s6 + $0x540] sm:$0xff] }
  0x55   :  { %9503 = vst [vmem:[#allocation175_spill] sm:$0xff] %v5285_v15  ;;  %9504 = vst [vmem:[#allocation176_spill] sm:$0xff] %v5290_v14  ;;  %v5300_v47 = vld [vmem:[%s9227_s6 + $0x548] sm:$0xff]  ;;  %v5305_v46 = vld [vmem:[%s9227_s6 + $0x550] sm:$0xff] }
  0x56   :  { %9505 = vst [vmem:[#allocation177_spill] sm:$0xff] %v5295_v63  ;;  %9506 = vst [vmem:[#allocation178_spill] sm:$0xff] %v5300_v47  ;;  %v5310_v15 = vld [vmem:[%s9227_s6 + $0x558] sm:$0xff]  ;;  %v5315_v14 = vld [vmem:[%s9227_s6 + $0x560] sm:$0xff] }
  0x57   :  { %9507 = vst [vmem:[#allocation179_spill] sm:$0xff] %v5305_v46  ;;  %9508 = vst [vmem:[#allocation180_spill] sm:$0xff] %v5310_v15  ;;  %v5320_v63 = vld [vmem:[%s9227_s6 + $0x568] sm:$0xff]  ;;  %v5325_v47 = vld [vmem:[%s9227_s6 + $0x570] sm:$0xff] }
  0x58   :  { %9509 = vst [vmem:[#allocation181_spill] sm:$0xff] %v5315_v14  ;;  %9510 = vst [vmem:[#allocation182_spill] sm:$0xff] %v5320_v63  ;;  %v5330_v46 = vld [vmem:[%s9227_s6 + $0x578] sm:$0xff]  ;;  %v5335_v15 = vld [vmem:[%s9227_s6 + $0x580] sm:$0xff] }
  0x59   :  { %9511 = vst [vmem:[#allocation183_spill] sm:$0xff] %v5325_v47  ;;  %9512 = vst [vmem:[#allocation184_spill] sm:$0xff] %v5330_v46  ;;  %v5340_v14 = vld [vmem:[%s9227_s6 + $0x588] sm:$0xff]  ;;  %v5345_v63 = vld [vmem:[%s9227_s6 + $0x590] sm:$0xff] }
  0x5a   :  { %9513 = vst [vmem:[#allocation185_spill] sm:$0xff] %v5335_v15  ;;  %9514 = vst [vmem:[#allocation186_spill] sm:$0xff] %v5340_v14  ;;  %v5350_v47 = vld [vmem:[%s9227_s6 + $0x598] sm:$0xff]  ;;  %v5355_v46 = vld [vmem:[%s9227_s6 + $0x5a0] sm:$0xff] }
  0x5b   :  { %9515 = vst [vmem:[#allocation187_spill] sm:$0xff] %v5345_v63  ;;  %9516 = vst [vmem:[#allocation188_spill] sm:$0xff] %v5350_v47  ;;  %v5360_v15 = vld [vmem:[%s9227_s6 + $0x5a8] sm:$0xff]  ;;  %v5365_v14 = vld [vmem:[%s9227_s6 + $0x5b0] sm:$0xff] }
  0x5c   :  { %9517 = vst [vmem:[#allocation189_spill] sm:$0xff] %v5355_v46  ;;  %9518 = vst [vmem:[#allocation190_spill] sm:$0xff] %v5360_v15  ;;  %v5370_v63 = vld [vmem:[%s9227_s6 + $0x5b8] sm:$0xff]  ;;  %v5375_v47 = vld [vmem:[%s9227_s6 + $0x5c0] sm:$0xff] }
  0x5d   :  { %9519 = vst [vmem:[#allocation191_spill] sm:$0xff] %v5365_v14  ;;  %9520 = vst [vmem:[#allocation192_spill] sm:$0xff] %v5370_v63  ;;  %v5380_v46 = vld [vmem:[%s9227_s6 + $0x5c8] sm:$0xff]  ;;  %v5385_v15 = vld [vmem:[%s9227_s6 + $0x5d0] sm:$0xff] }
  0x5e   :  { %9521 = vst [vmem:[#allocation193_spill] sm:$0xff] %v5375_v47  ;;  %9522 = vst [vmem:[#allocation194_spill] sm:$0xff] %v5380_v46  ;;  %v5390_v14 = vld [vmem:[%s9227_s6 + $0x5d8] sm:$0xff]  ;;  %v5395_v63 = vld [vmem:[%s9227_s6 + $0x5e0] sm:$0xff] }
  0x5f   :  { %9523 = vst [vmem:[#allocation195_spill] sm:$0xff] %v5385_v15  ;;  %9524 = vst [vmem:[#allocation196_spill] sm:$0xff] %v5390_v14  ;;  %v5400_v47 = vld [vmem:[%s9227_s6 + $0x5e8] sm:$0xff]  ;;  %v5405_v46 = vld [vmem:[%s9227_s6 + $0x5f0] sm:$0xff] }
  0x60   :  { %9525 = vst [vmem:[#allocation197_spill] sm:$0xff] %v5395_v63  ;;  %9526 = vst [vmem:[#allocation198_spill] sm:$0xff] %v5400_v47  ;;  %v5410_v15 = vld [vmem:[%s9227_s6 + $0x5f8] sm:$0xff]  ;;  %v5415_v14 = vld [vmem:[%s9227_s6 + $0x600] sm:$0xff] }
  0x61   :  { %9527 = vst [vmem:[#allocation199_spill] sm:$0xff] %v5405_v46  ;;  %9528 = vst [vmem:[#allocation200_spill] sm:$0xff] %v5410_v15  ;;  %v5420_v63 = vld [vmem:[%s9227_s6 + $0x608] sm:$0xff]  ;;  %v5425_v47 = vld [vmem:[%s9227_s6 + $0x610] sm:$0xff] }
  0x62   :  { %9529 = vst [vmem:[#allocation201_spill] sm:$0xff] %v5415_v14  ;;  %9530 = vst [vmem:[#allocation202_spill] sm:$0xff] %v5420_v63  ;;  %v5430_v46 = vld [vmem:[%s9227_s6 + $0x618] sm:$0xff]  ;;  %v5435_v15 = vld [vmem:[%s9227_s6 + $0x620] sm:$0xff] }
  0x63   :  { %9531 = vst [vmem:[#allocation203_spill] sm:$0xff] %v5425_v47  ;;  %9532 = vst [vmem:[#allocation204_spill] sm:$0xff] %v5430_v46  ;;  %v5440_v14 = vld [vmem:[%s9227_s6 + $0x628] sm:$0xff]  ;;  %v5445_v63 = vld [vmem:[%s9227_s6 + $0x630] sm:$0xff] }
  0x64   :  { %9533 = vst [vmem:[#allocation205_spill] sm:$0xff] %v5435_v15  ;;  %9534 = vst [vmem:[#allocation206_spill] sm:$0xff] %v5440_v14  ;;  %v5450_v47 = vld [vmem:[%s9227_s6 + $0x638] sm:$0xff]  ;;  %v5455_v46 = vld [vmem:[%s9227_s6 + $0x640] sm:$0xff] }
  0x65   :  { %9535 = vst [vmem:[#allocation207_spill] sm:$0xff] %v5445_v63  ;;  %9536 = vst [vmem:[#allocation208_spill] sm:$0xff] %v5450_v47  ;;  %v5460_v15 = vld [vmem:[%s9227_s6 + $0x648] sm:$0xff]  ;;  %v5465_v14 = vld [vmem:[%s9227_s6 + $0x650] sm:$0xff] }
  0x66   :  { %9537 = vst [vmem:[#allocation209_spill] sm:$0xff] %v5455_v46  ;;  %9538 = vst [vmem:[#allocation210_spill] sm:$0xff] %v5460_v15  ;;  %v5470_v63 = vld [vmem:[%s9227_s6 + $0x658] sm:$0xff]  ;;  %v5475_v47 = vld [vmem:[%s9227_s6 + $0x660] sm:$0xff] }
  0x67   :  { %9539 = vst [vmem:[#allocation211_spill] sm:$0xff] %v5465_v14  ;;  %9540 = vst [vmem:[#allocation212_spill] sm:$0xff] %v5470_v63  ;;  %v5480_v46 = vld [vmem:[%s9227_s6 + $0x668] sm:$0xff]  ;;  %v5485_v15 = vld [vmem:[%s9227_s6 + $0x670] sm:$0xff] }
  0x68   :  { %9541 = vst [vmem:[#allocation213_spill] sm:$0xff] %v5475_v47  ;;  %9542 = vst [vmem:[#allocation214_spill] sm:$0xff] %v5480_v46  ;;  %v5490_v14 = vld [vmem:[%s9227_s6 + $0x678] sm:$0xff]  ;;  %v5495_v63 = vld [vmem:[%s9227_s6 + $0x680] sm:$0xff] }
  0x69   :  { %9543 = vst [vmem:[#allocation215_spill] sm:$0xff] %v5485_v15  ;;  %9544 = vst [vmem:[#allocation216_spill] sm:$0xff] %v5490_v14  ;;  %v5500_v47 = vld [vmem:[%s9227_s6 + $0x688] sm:$0xff]  ;;  %v5505_v46 = vld [vmem:[%s9227_s6 + $0x690] sm:$0xff] }
  0x6a   :  { %9545 = vst [vmem:[#allocation217_spill] sm:$0xff] %v5495_v63  ;;  %9546 = vst [vmem:[#allocation218_spill] sm:$0xff] %v5500_v47  ;;  %v5510_v15 = vld [vmem:[%s9227_s6 + $0x698] sm:$0xff]  ;;  %v5515_v14 = vld [vmem:[%s9227_s6 + $0x6a0] sm:$0xff] }
  0x6b   :  { %9547 = vst [vmem:[#allocation219_spill] sm:$0xff] %v5505_v46  ;;  %9548 = vst [vmem:[#allocation220_spill] sm:$0xff] %v5510_v15  ;;  %v5520_v63 = vld [vmem:[%s9227_s6 + $0x6a8] sm:$0xff]  ;;  %v5525_v47 = vld [vmem:[%s9227_s6 + $0x6b0] sm:$0xff] }
  0x6c   :  { %9549 = vst [vmem:[#allocation221_spill] sm:$0xff] %v5515_v14  ;;  %9550 = vst [vmem:[#allocation222_spill] sm:$0xff] %v5520_v63  ;;  %v5530_v46 = vld [vmem:[%s9227_s6 + $0x6b8] sm:$0xff]  ;;  %v5535_v15 = vld [vmem:[%s9227_s6 + $0x6c0] sm:$0xff] }
  0x6d   :  { %9551 = vst [vmem:[#allocation223_spill] sm:$0xff] %v5525_v47  ;;  %9552 = vst [vmem:[#allocation224_spill] sm:$0xff] %v5530_v46  ;;  %v5540_v14 = vld [vmem:[%s9227_s6 + $0x6c8] sm:$0xff]  ;;  %v5545_v63 = vld [vmem:[%s9227_s6 + $0x6d0] sm:$0xff] }
  0x6e   :  { %9553 = vst [vmem:[#allocation225_spill] sm:$0xff] %v5535_v15  ;;  %9554 = vst [vmem:[#allocation226_spill] sm:$0xff] %v5540_v14  ;;  %v5550_v47 = vld [vmem:[%s9227_s6 + $0x6d8] sm:$0xff]  ;;  %v5555_v46 = vld [vmem:[%s9227_s6 + $0x6e0] sm:$0xff] }
  0x6f   :  { %9555 = vst [vmem:[#allocation227_spill] sm:$0xff] %v5545_v63  ;;  %9556 = vst [vmem:[#allocation228_spill] sm:$0xff] %v5550_v47  ;;  %v5560_v15 = vld [vmem:[%s9227_s6 + $0x6e8] sm:$0xff]  ;;  %v5565_v14 = vld [vmem:[%s9227_s6 + $0x6f0] sm:$0xff] }
  0x70   :  { %9557 = vst [vmem:[#allocation229_spill] sm:$0xff] %v5555_v46  ;;  %9558 = vst [vmem:[#allocation230_spill] sm:$0xff] %v5560_v15  ;;  %v5570_v63 = vld [vmem:[%s9227_s6 + $0x6f8] sm:$0xff]  ;;  %v5575_v47 = vld [vmem:[%s9227_s6 + $0x700] sm:$0xff] }
  0x71   :  { %9559 = vst [vmem:[#allocation231_spill] sm:$0xff] %v5565_v14  ;;  %9560 = vst [vmem:[#allocation232_spill] sm:$0xff] %v5570_v63  ;;  %v5580_v46 = vld [vmem:[%s9227_s6 + $0x708] sm:$0xff]  ;;  %v5585_v15 = vld [vmem:[%s9227_s6 + $0x710] sm:$0xff] }
  0x72   :  { %9561 = vst [vmem:[#allocation233_spill] sm:$0xff] %v5575_v47  ;;  %9562 = vst [vmem:[#allocation234_spill] sm:$0xff] %v5580_v46  ;;  %v5590_v14 = vld [vmem:[%s9227_s6 + $0x718] sm:$0xff]  ;;  %v5595_v63 = vld [vmem:[%s9227_s6 + $0x720] sm:$0xff] }
  0x73   :  { %9563 = vst [vmem:[#allocation235_spill] sm:$0xff] %v5585_v15  ;;  %9564 = vst [vmem:[#allocation236_spill] sm:$0xff] %v5590_v14  ;;  %v5600_v47 = vld [vmem:[%s9227_s6 + $0x728] sm:$0xff]  ;;  %v5605_v46 = vld [vmem:[%s9227_s6 + $0x730] sm:$0xff] }
  0x74   :  { %9565 = vst [vmem:[#allocation237_spill] sm:$0xff] %v5595_v63  ;;  %9566 = vst [vmem:[#allocation238_spill] sm:$0xff] %v5600_v47  ;;  %v5610_v15 = vld [vmem:[%s9227_s6 + $0x738] sm:$0xff]  ;;  %v5615_v14 = vld [vmem:[%s9227_s6 + $0x740] sm:$0xff] }
  0x75   :  { %9567 = vst [vmem:[#allocation239_spill] sm:$0xff] %v5605_v46  ;;  %9568 = vst [vmem:[#allocation240_spill] sm:$0xff] %v5610_v15  ;;  %v5620_v63 = vld [vmem:[%s9227_s6 + $0x748] sm:$0xff]  ;;  %v5625_v47 = vld [vmem:[%s9227_s6 + $0x750] sm:$0xff] }
  0x76   :  { %9569 = vst [vmem:[#allocation241_spill] sm:$0xff] %v5615_v14  ;;  %9570 = vst [vmem:[#allocation242_spill] sm:$0xff] %v5620_v63  ;;  %v5630_v46 = vld [vmem:[%s9227_s6 + $0x758] sm:$0xff]  ;;  %v5635_v15 = vld [vmem:[%s9227_s6 + $0x760] sm:$0xff] }
  0x77   :  { %9571 = vst [vmem:[#allocation243_spill] sm:$0xff] %v5625_v47  ;;  %9572 = vst [vmem:[#allocation244_spill] sm:$0xff] %v5630_v46  ;;  %v5640_v14 = vld [vmem:[%s9227_s6 + $0x768] sm:$0xff]  ;;  %v5645_v63 = vld [vmem:[%s9227_s6 + $0x770] sm:$0xff] }
  0x78   :  { %9573 = vst [vmem:[#allocation245_spill] sm:$0xff] %v5635_v15  ;;  %9574 = vst [vmem:[#allocation246_spill] sm:$0xff] %v5640_v14  ;;  %v5650_v47 = vld [vmem:[%s9227_s6 + $0x778] sm:$0xff]  ;;  %v5655_v46 = vld [vmem:[%s9227_s6 + $0x780] sm:$0xff] }
  0x79   :  { %9575 = vst [vmem:[#allocation247_spill] sm:$0xff] %v5645_v63  ;;  %9576 = vst [vmem:[#allocation248_spill] sm:$0xff] %v5650_v47  ;;  %v5660_v15 = vld [vmem:[%s9227_s6 + $0x788] sm:$0xff]  ;;  %v5665_v14 = vld [vmem:[%s9227_s6 + $0x790] sm:$0xff] }
  0x7a   :  { %9577 = vst [vmem:[#allocation249_spill] sm:$0xff] %v5655_v46  ;;  %9578 = vst [vmem:[#allocation250_spill] sm:$0xff] %v5660_v15  ;;  %v5670_v63 = vld [vmem:[%s9227_s6 + $0x798] sm:$0xff]  ;;  %v5675_v47 = vld [vmem:[%s9227_s6 + $0x7a0] sm:$0xff] }
  0x7b   :  { %9579 = vst [vmem:[#allocation251_spill] sm:$0xff] %v5665_v14  ;;  %9580 = vst [vmem:[#allocation252_spill] sm:$0xff] %v5670_v63  ;;  %v5680_v46 = vld [vmem:[%s9227_s6 + $0x7a8] sm:$0xff]  ;;  %v5685_v15 = vld [vmem:[%s9227_s6 + $0x7b0] sm:$0xff] }
  0x7c   :  { %9581 = vst [vmem:[#allocation253_spill] sm:$0xff] %v5675_v47  ;;  %9582 = vst [vmem:[#allocation254_spill] sm:$0xff] %v5680_v46  ;;  %v5690_v14 = vld [vmem:[%s9227_s6 + $0x7b8] sm:$0xff]  ;;  %v5695_v63 = vld [vmem:[%s9227_s6 + $0x7c0] sm:$0xff] }
  0x7d   :  { %9583 = vst [vmem:[#allocation255_spill] sm:$0xff] %v5685_v15  ;;  %9584 = vst [vmem:[#allocation256_spill] sm:$0xff] %v5690_v14  ;;  %v5700_v47 = vld [vmem:[%s9227_s6 + $0x7c8] sm:$0xff]  ;;  %v5705_v46 = vld [vmem:[%s9227_s6 + $0x7d0] sm:$0xff] }
  0x7e   :  { %9585 = vst [vmem:[#allocation257_spill] sm:$0xff] %v5695_v63  ;;  %9586 = vst [vmem:[#allocation258_spill] sm:$0xff] %v5700_v47  ;;  %v5710_v15 = vld [vmem:[%s9227_s6 + $0x7d8] sm:$0xff]  ;;  %v5715_v14 = vld [vmem:[%s9227_s6 + $0x7e0] sm:$0xff] }
  0x7f   :  { %9587 = vst [vmem:[#allocation259_spill] sm:$0xff] %v5705_v46  ;;  %9588 = vst [vmem:[#allocation260_spill] sm:$0xff] %v5710_v15  ;;  %v5720_v63 = vld [vmem:[%s9227_s6 + $0x7e8] sm:$0xff]  ;;  %v5725_v47 = vld [vmem:[%s9227_s6 + $0x7f0] sm:$0xff] }
  0x80   :  { %9589 = vst [vmem:[#allocation261_spill] sm:$0xff] %v5715_v14  ;;  %9590 = vst [vmem:[#allocation262_spill] sm:$0xff] %v5720_v63  ;;  %v5730_v46 = vld [vmem:[%s9227_s6 + $0x7f8] sm:$0xff]  ;;  %v5735_v15 = vld [vmem:[%s9222_s1] sm:$0xff] }
  0x81   :  { %9591 = vst [vmem:[#allocation263_spill] sm:$0xff] %v5725_v47  ;;  %9592 = vst [vmem:[#allocation264_spill] sm:$0xff] %v5730_v46 }
  0x82   :  { %576 = vsyncadd [#allocation3], 32768  ;;  %v648_v14 = vlaneseq  ;;  %s4400_s9 = smov 127   ;;  %v9229_v63 = vmov 0   ;;  %v3598_v47 = vadd.f32 -1.0, %v5735_v15  ;;  %v9231_v62 = vmov 1  }
  0x83   :  { %611 = vrot.lane.b32.xlu0 %v5735_v15, %s4400_s9  ;;  %4354 = vset.pattern.permute.xlu1 %v9229_v63  ;;  %v9233_v30 = vmov 0.0   ;;  %v647_v45 = vadd.f32 1.0, %v5735_v15  ;;  %v9598_v11 = vmov 1   ;;  %v9605_v57 = vmov 0.0  }
  0x84   :  { %4353 = vset.pattern.permute.xlu0 %v9231_v62  ;;  %v5741_v31 = vshrl.u32 %v648_v14, 7  ;;  %v5743_v46 = vand.u32 127, %v648_v14  ;;  %998 = vmatprep.mubr.f32.mxu0 %v9233_v30  ;;  %v9607_v39 = vmov 1.0|1.0   ;;  %v9655_v33 = vmov 0 }
  0x85   :  { %660 = vperm.xlu1 %4354, %v3598_v47   ;;  %1069 = vmatprep.mubr.f32.mxu1 %v9233_v30  ;;  %v9659_v32 = vmov 0  ;;  %v9663_v49 = vmov 0  ;;  %v9667_v48 = vmov 0  ;;  %v9671_v1 = vmov 0 }
  0x86   :  { %v5749_v44 = vadd.s32 8, %v5741_v31  ;;  %v5752_v63 = vadd.s32 128, %v5743_v46  ;;  %v5755_v62 = vadd.s32 384, %v5743_v46  ;;  %v721_v14 = vand.u32 31, %v5743_v46 }
  0x87   :  { %670 = vperm.xlu0 %4353, %v647_v45   ;;  %v5759_v13 = vadd.s32 256, %v5743_v46  ;;  %v5762_v12 = vadd.s32 16, %v5741_v31  ;;  %v5765_v30 = vadd.s32 24, %v5741_v31  ;;  %v5768_v61 = vadd.s32 640, %v5743_v46 }
  0x88   :  { %v722_v60 = vand.u32 31, %v5752_v63  ;;  %v724_v29 = vand.u32 31, %v5755_v62  ;;  %vm737_vm0 = vcmp.eq.s32.totalorder %v721_v14, %v5741_v31  ;;  %vm753_vm1 = vcmp.eq.s32.totalorder %v721_v14, %v5749_v44 }
  0x89   :  { %9593 = vst [vmem:[#allocation265_spill] sm:$0xff] %v5759_v13  ;;  %654 = vperm.xlu1 %4354, %v647_v45   ;;  %vm5774_vm2 = vmpackc.low %vm753_vm1, %vm737_vm0  ;;  %v723_v43 = vand.u32 31, %v5759_v13  ;;  %vm769_vm3 = vcmp.eq.s32.totalorder %v721_v14, %v5762_v12  ;;  %vm785_vm4 = vcmp.eq.s32.totalorder %v721_v14, %v5765_v30  ;;  %v5782_v42 = vand.u32 31, %v5768_v61 }
  0x8a   :  { %vm738_vm5 = vcmp.eq.s32.totalorder %v722_v60, %v5741_v31  ;;  %vm754_vm6 = vcmp.eq.s32.totalorder %v722_v60, %v5749_v44  ;;  %vm740_vm7 = vcmp.eq.s32.totalorder %v724_v29, %v5741_v31  ;;  %vm756_vm8 = vcmp.eq.s32.totalorder %v724_v29, %v5749_v44  ;;  %vm5788_vm9 = vmpackc.low %vm785_vm4, %vm769_vm3 }
  0x8b   :  { %vm4019_vm10 = vmpackc.low %vm754_vm6, %vm738_vm5  ;;  %vm739_vm11 = vcmp.eq.s32.totalorder %v723_v43, %v5741_v31  ;;  %vm755_vm12 = vcmp.eq.s32.totalorder %v723_v43, %v5749_v44  ;;  %vm770_vm13 = vcmp.eq.s32.totalorder %v722_v60, %v5762_v12  ;;  %vm786_vm14 = vcmp.eq.s32.totalorder %v722_v60, %v5765_v30 }
  0x8c   :  { %v9235_v14 = vmov 1.0|1.0   ;;  %vm4027_vm15 = vmpackc.low %vm756_vm8, %vm740_vm7  ;;  %vm772_vm0 = vcmp.eq.s32.totalorder %v724_v29, %v5762_v12  ;;  %vm788_vm1 = vcmp.eq.s32.totalorder %v724_v29, %v5765_v30  ;;  %vm771_vm4 = vcmp.eq.s32.totalorder %v723_v43, %v5762_v12 }
  0x8d   :  { %4020 = vmatprep.subr.msk.bf16.mxu0 %vm4019_vm10, %v9235_v14  ;;  %4355 = vset.pattern.permute.xlu1 %v9598_v11  ;;  %vm4029_vm3 = vmpackc.low %vm755_vm12, %vm739_vm11  ;;  %vm787_vm5 = vcmp.eq.s32.totalorder %v723_v43, %v5765_v30  ;;  %v5804_v10 = vadd.s32 896, %v5743_v46  ;;  %v5807_v59 = vadd.s32 512, %v5743_v46  ;;  %vm742_vm7 = vcmp.eq.s32.totalorder %v5782_v42, %v5741_v31  ;;  %v5871_v43 = vld [vmem:[%s9223_s2] sm:$0xff] }
  0x8e   :  { %4028 = vmatprep.subr.msk.bf16.mxu1 %vm4027_vm15, %v9235_v14  ;;  %675 = vperm.xlu1 %4355, %v3598_v47   ;;  %vm4023_vm6 = vmpackc.low %vm786_vm14, %vm770_vm13  ;;  %vm758_vm8 = vcmp.eq.s32.totalorder %v5782_v42, %v5749_v44  ;;  %v5821_v58 = vadd.s32 768, %v5743_v46  ;;  %v5824_v47 = vadd.s32 1152, %v5743_v46  ;;  %vm9237_vm10 = vcmask 261120  }
  0x8f   :  { %4022 = vmatpush1.bf16.msk.msra.mxu0 %vm5774_vm2, %v9235_v14  ;;  %4030 = vmatpush1.bf16.msk.msra.mxu1 %vm4029_vm3, %v9235_v14  ;;  %vm4031_vm2 = vmpackc.low %vm788_vm1, %vm772_vm0  ;;  %v728_v28 = vand.u32 31, %v5804_v10  ;;  %v725_v60 = vand.u32 31, %v5807_v59  ;;  %v5835_v27 = vadd.s32 1408, %v5743_v46  ;;  %vm774_vm12 = vcmp.eq.s32.totalorder %v5782_v42, %v5762_v12 }
  0x90   :  { %9599 = vst [vmem:[#allocation266_spill] sm:$0xff] %v5824_v47  ;;  %4024 = vmatprep.subr.msk.bf16.mxu0 %vm4023_vm6, %v9235_v14  ;;  %4032 = vmatprep.subr.msk.bf16.mxu1 %vm4031_vm2, %v9235_v14  ;;  %vm5842_vm11 = vmpackc.low %vm787_vm5, %vm771_vm4  ;;  %v727_v29 = vand.u32 31, %v5821_v58  ;;  %v5850_v41 = vadd.s32 1024, %v5743_v46  ;;  %v5853_v40 = vadd.s32 1280, %v5743_v46  ;;  %vm790_vm6 = vcmp.eq.s32.totalorder %v5782_v42, %v5765_v30 }
  0x91   :  { %9600 = vst [vmem:[#allocation267_spill] sm:$0xff] %v5835_v27  ;;  %vm4035_vm13 = vmpackc.low %vm758_vm8, %vm742_vm7  ;;  %vm744_vm14 = vcmp.eq.s32.totalorder %v728_v28, %v5741_v31  ;;  %vm760_vm15 = vcmp.eq.s32.totalorder %v728_v28, %v5749_v44  ;;  %vm741_vm0 = vcmp.eq.s32.totalorder %v725_v60, %v5741_v31  ;;  %vm757_vm1 = vcmp.eq.s32.totalorder %v725_v60, %v5749_v44 }
  0x92   :  { %9603 = vst [vmem:[#allocation268_spill] sm:$0xff] %v5853_v40  ;;  %vm4043_vm3 = vmpackc.low %vm760_vm15, %vm744_vm14  ;;  %vm743_vm4 = vcmp.eq.s32.totalorder %v727_v29, %v5741_v31  ;;  %vm759_vm5 = vcmp.eq.s32.totalorder %v727_v29, %v5749_v44  ;;  %v730_v9 = vand.u32 31, %v5824_v47  ;;  %vm776_vm7 = vcmp.eq.s32.totalorder %v728_v28, %v5762_v12 }
  0x93   :  { %4026 = vmatpush1.bf16.msk.msra.mxu0 %vm5788_vm9, %v9235_v14  ;;  %4034 = vmatpush1.bf16.msk.msra.mxu1 %vm5842_vm11, %v9235_v14  ;;  %vm4037_vm9 = vmpackc.low %vm757_vm1, %vm741_vm0  ;;  %vm792_vm8 = vcmp.eq.s32.totalorder %v728_v28, %v5765_v30  ;;  %v732_v45 = vand.u32 31, %v5835_v27  ;;  %vm773_vm14 = vcmp.eq.s32.totalorder %v725_v60, %v5762_v12  ;;  %vm789_vm15 = vcmp.eq.s32.totalorder %v725_v60, %v5765_v30 }
  0x94   :  { %4036 = vmatprep.subr.msk.bf16.mxu0 %vm4035_vm13, %v9235_v14  ;;  %4044 = vmatprep.subr.msk.bf16.mxu1 %vm4043_vm3, %v9235_v14  ;;  %vm4045_vm2 = vmpackc.low %vm759_vm5, %vm743_vm4  ;;  %v729_v8 = vand.u32 31, %v5850_v41  ;;  %vm775_vm13 = vcmp.eq.s32.totalorder %v727_v29, %v5762_v12  ;;  %vm791_vm0 = vcmp.eq.s32.totalorder %v727_v29, %v5765_v30  ;;  %v731_v26 = vand.u32 31, %v5853_v40 }
  0x95   :  { %vm4039_vm11 = vmpackc.low %vm790_vm6, %vm774_vm12  ;;  %vm746_vm3 = vcmp.eq.s32.totalorder %v730_v9, %v5741_v31  ;;  %vm762_vm4 = vcmp.eq.s32.totalorder %v730_v9, %v5749_v44  ;;  %v5905_v42 = vadd.s32 1664, %v5743_v46  ;;  %vm748_vm5 = vcmp.eq.s32.totalorder %v732_v45, %v5741_v31 }
  0x96   :  { %3671 = vmatmul.mubr.msk.f32.vlgmr.msra.gmra.mrb[0].mxu0 %vm9237_vm10, %v5871_v43  ;;  %3680 = vmatmul.mubr.msk.f32.vlgmr.msra.gmra.mrb[0].mxu1 %vm9237_vm10, %v5871_v43  ;;  %vm4047_vm1 = vmpackc.low %vm792_vm8, %vm776_vm7  ;;  %vm764_vm6 = vcmp.eq.s32.totalorder %v732_v45, %v5749_v44  ;;  %v5916_v28 = vadd.s32 1920, %v5743_v46  ;;  %vm745_vm7 = vcmp.eq.s32.totalorder %v729_v8, %v5741_v31  ;;  %vm761_vm8 = vcmp.eq.s32.totalorder %v729_v8, %v5749_v44 }
  0x97   :  { %4038 = vmatpush1.bf16.msk.msra.mxu0 %vm4037_vm9, %v9235_v14  ;;  %4046 = vmatpush1.bf16.msk.msra.mxu1 %vm4045_vm2, %v9235_v14  ;;  %vm4041_vm12 = vmpackc.low %vm789_vm15, %vm773_vm14  ;;  %v5927_v60 = vadd.s32 1536, %v5743_v46  ;;  %vm747_vm14 = vcmp.eq.s32.totalorder %v731_v26, %v5741_v31  ;;  %vm763_vm15 = vcmp.eq.s32.totalorder %v731_v26, %v5749_v44  ;;  %v734_v29 = vand.u32 31, %v5905_v42 }
  0x98   :  { %4040 = vmatprep.subr.msk.bf16.mxu0 %vm4039_vm11, %v9235_v14  ;;  %9604 = vst [vmem:[#allocation269_spill] sm:$0xff] %v5916_v28  ;;  %4048 = vmatprep.subr.msk.bf16.mxu1 %vm4047_vm1, %v9235_v14  ;;  %vm4049_vm9 = vmpackc.low %vm791_vm0, %vm775_vm13  ;;  %vm778_vm13 = vcmp.eq.s32.totalorder %v730_v9, %v5762_v12  ;;  %vm794_vm0 = vcmp.eq.s32.totalorder %v730_v9, %v5765_v30  ;;  %v5941_v56 = vadd.s32 1792, %v5743_v46  ;;  %v736_v25 = vand.u32 31, %v5916_v28 }
  0x99   :  { %1140 = vmatprep.mubr.f32.mxu0 %v9605_v57  ;;  %1211 = vmatprep.mubr.f32.mxu1 %v9605_v57  ;;  %vm4051_vm2 = vmpackc.low %vm762_vm4, %vm746_vm3  ;;  %vm780_vm3 = vcmp.eq.s32.totalorder %v732_v45, %v5762_v12  ;;  %vm796_vm4 = vcmp.eq.s32.totalorder %v732_v45, %v5765_v30  ;;  %v733_v24 = vand.u32 31, %v5927_v60  ;;  %v4405_v9 = vmov 2  }
  0x9a   :  { %vm4059_vm11 = vmpackc.low %vm764_vm6, %vm748_vm5  ;;  %9606 = vst [vmem:[#allocation270_spill] sm:$0xff] %v5941_v56  ;;  %vm777_vm5 = vcmp.eq.s32.totalorder %v729_v8, %v5762_v12  ;;  %vm793_vm6 = vcmp.eq.s32.totalorder %v729_v8, %v5765_v30  ;;  %v6067_v36 = vsub.s32 3, %v5741_v31  ;;  %v6070_v5 = vsub.s32 4, %v5741_v31 }
  0x9b   :  { %4042 = vmatpush1.bf16.msk.msra.mxu0 %vm4041_vm12, %v9235_v14  ;;  %4050 = vmatpush1.bf16.msk.msra.mxu1 %vm4049_vm9, %v9235_v14  ;;  %vm4053_vm1 = vmpackc.low %vm761_vm8, %vm745_vm7  ;;  %vm779_vm7 = vcmp.eq.s32.totalorder %v731_v26, %v5762_v12  ;;  %vm795_vm8 = vcmp.eq.s32.totalorder %v731_v26, %v5765_v30  ;;  %v9675_v0 = vmov 0  ;;  %v9679_v17 = vmov 0 }
  0x9c   :  { %4052 = vmatprep.subr.msk.bf16.mxu0 %vm4051_vm2, %v9235_v14  ;;  %4060 = vmatprep.subr.msk.bf16.mxu1 %vm4059_vm11, %v9235_v14  ;;  %vm4061_vm12 = vmpackc.low %vm763_vm15, %vm747_vm14  ;;  %v735_v14 = vand.u32 31, %v5941_v56  ;;  %vm750_vm14 = vcmp.eq.s32.totalorder %v734_v29, %v5741_v31  ;;  %vm766_vm15 = vcmp.eq.s32.totalorder %v734_v29, %v5749_v44  ;;  %9627 = vst [vmem:[#allocation285_spill] sm:$0xff] %v6067_v36  ;;  %v9683_v16 = vmov 0 }
  0x9d   :  { %vm4055_vm9 = vmpackc.low %vm794_vm0, %vm778_vm13  ;;  %vm752_vm13 = vcmp.eq.s32.totalorder %v736_v25, %v5741_v31  ;;  %vm768_vm0 = vcmp.eq.s32.totalorder %v736_v25, %v5749_v44  ;;  %9628 = vst [vmem:[#allocation286_spill] sm:$0xff] %v6070_v5  ;;  %v9708_v5 = vmov 0  ;;  %v9718_v36 = vmov 0 }
  0x9e   :  { %3689 = vmatmul.mubr.msk.f32.vlgmr.msra.gmra.mrb[2].mxu0 %vm9237_vm10, %v5871_v43  ;;  %3698 = vmatmul.mubr.msk.f32.vlgmr.msra.gmra.mrb[2].mxu1 %vm9237_vm10, %v5871_v43  ;;  %vm4063_vm2 = vmpackc.low %vm796_vm4, %vm780_vm3  ;;  %vm749_vm3 = vcmp.eq.s32.totalorder %v733_v24, %v5741_v31  ;;  %vm765_vm4 = vcmp.eq.s32.totalorder %v733_v24, %v5749_v44  ;;  %vm782_vm10 = vcmp.eq.s32.totalorder %v734_v29, %v5762_v12 }
  0x9f   :  { %4054 = vmatpush1.bf16.msk.msra.mxu0 %vm4053_vm1, %v9607_v39  ;;  %4062 = vmatpush1.bf16.msk.msra.mxu1 %vm4061_vm12, %v9607_v39  ;;  %vm4057_vm11 = vmpackc.low %vm793_vm6, %vm777_vm5  ;;  %vm767_vm5 = vcmp.eq.s32.totalorder %v735_v14, %v5749_v44  ;;  %v6016_v44 = vsub.s32 0, %v5741_v31 }
  0xa0   :  { %4056 = vmatprep.subr.msk.bf16.mxu0 %vm4055_vm9, %v9607_v39  ;;  %4064 = vmatprep.subr.msk.bf16.mxu1 %vm4063_vm2, %v9607_v39  ;;  %vm4065_vm1 = vmpackc.low %vm795_vm8, %vm779_vm7  ;;  %vm751_vm9 = vcmp.eq.s32.totalorder %v735_v14, %v5741_v31  ;;  %vm798_vm7 = vcmp.eq.s32.totalorder %v734_v29, %v5765_v30  ;;  %vm784_vm2 = vcmp.eq.s32.totalorder %v736_v25, %v5762_v12 }
  0xa1   :  { %1282 = vmatprep.mubr.f32.mxu0 %v9605_v57  ;;  %1353 = vmatprep.mubr.f32.mxu1 %v9605_v57  ;;  %vm4067_vm12 = vmpackc.low %vm766_vm15, %vm750_vm14  ;;  %vm800_vm14 = vcmp.eq.s32.totalorder %v736_v25, %v5765_v30 }
  0xa2   :  { %vm4075_vm6 = vmpackc.low %vm768_vm0, %vm752_vm13  ;;  %vm797_vm13 = vcmp.eq.s32.totalorder %v733_v24, %v5765_v30  ;;  %vm9608_vm0 = vcmask 261120  }
  0xa3   :  { %4058 = vmatpush1.bf16.msk.msra.mxu0 %vm4057_vm11, %v9607_v39  ;;  %4066 = vmatpush1.bf16.msk.msra.mxu1 %vm4065_vm1, %v9607_v39  ;;  %vm4069_vm8 = vmpackc.low %vm765_vm4, %vm749_vm3  ;;  %vm781_vm11 = vcmp.eq.s32.totalorder %v733_v24, %v5762_v12  ;;  %vm799_vm3 = vcmp.eq.s32.totalorder %v735_v14, %v5765_v30 }
  0xa4   :  { %4068 = vmatprep.subr.msk.bf16.mxu0 %vm4067_vm12, %v9607_v39  ;;  %4076 = vmatprep.subr.msk.bf16.mxu1 %vm4075_vm6, %v9607_v39  ;;  %vm4077_vm15 = vmpackc.low %vm767_vm5, %vm751_vm9  ;;  %vm783_vm12 = vcmp.eq.s32.totalorder %v735_v14, %v5762_v12  ;;  %v9612_v12 = vmov 0  }
  0xa5   :  { %vm4071_vm1 = vmpackc.low %vm798_vm7, %vm782_vm10 }
  0xa6   :  { %3707 = vmatmul.mubr.msk.f32.vlgmr.msra.gmra.mrb[4].mxu0 %vm9608_vm0, %v5871_v43  ;;  %vm9609_vm4 = vmmov %vm9608_vm0 }
  0xa7   :  { %3716 = vmatmul.mubr.msk.f32.vlgmr.msra.gmra.mrb[4].mxu1 %vm9609_vm4, %v5871_v43  ;;  %4070 = vmatpush1.bf16.msk.msra.mxu0 %vm4069_vm8, %v9607_v39  ;;  %vm4079_vm6 = vmpackc.low %vm800_vm14, %vm784_vm2 }
  0xa8   :  { %4078 = vmatpush1.bf16.msk.msra.mxu1 %vm4077_vm15, %v9607_v39  ;;  %4072 = vmatprep.subr.msk.bf16.mxu0 %vm4071_vm1, %v9607_v39  ;;  %vm4073_vm9 = vmpackc.low %vm797_vm13, %vm781_vm11 }
  0xa9   :  { %4080 = vmatprep.subr.msk.bf16.mxu1 %vm4079_vm6, %v9607_v39  ;;  %vm4081_vm5 = vmpackc.low %vm799_vm3, %vm783_vm12  ;;  %1424 = vmatprep.mubr.f32.mxu0 %v9605_v57 }
  0xaa   :  { %1495 = vmatprep.mubr.f32.mxu1 %v9605_v57  ;;  %vm9610_vm10 = vmmov %vm9608_vm0 }
  0xab   :  { %4074 = vmatpush1.bf16.msk.msra.mxu0 %vm4073_vm9, %v9607_v39  ;;  %vm9611_vm7 = vmmov %vm9608_vm0  ;;  %vm687_vm0 = vcmp.ne.s32.totalorder %v5741_v31, %v5743_v46 }
  0xac   :  { %4082 = vmatpush1.bf16.msk.msra.mxu1 %vm4081_vm5, %v9607_v39 }
  0xae   :  { %3725 = vmatmul.mubr.msk.f32.vlgmr.msra.gmra.mrb[6].mxu0 %vm9610_vm10, %v5871_v43 }
  0xaf   :  { %3734 = vmatmul.mubr.msk.f32.vlgmr.msra.gmra.mrb[6].mxu1 %vm9611_vm7, %v5871_v43 }
  0xb7   :  { %578 = vxpose.xlu1.b32.start.end [1/1] (short) (narrow) %v5735_v15, 8 }
  0xd5   :  { %4358 = vset.pattern.permute.xlu1 %v4405_v9 }
  0xf5   :  { %v612_v8 = vpop.permute.xlu0 %611 }
  0xf6   :  { %614 = vxpose.xlu0.b32.start.end [1/1] (short) (narrow) %v612_v8, 8 }
 0x104   :  { %v661_v24 = vpop.permute.xlu1 %660 }
 0x106   :  { %v671_v14 = vpop.permute.xlu0 %670 }
 0x108   :  { %v655_v25 = vpop.permute.xlu1 %654 }
 0x10d   :  { %v676_v30 = vpop.permute.xlu1 %675 }
 0x11f   :  { %4356 = vset.pattern.permute.xlu0 %v9612_v12 }
 0x137   :  { %v594_v39 = vpop.trf.xlu1 }
 0x138   :  { %v651_v57 = vrot.slane %v594_v39, %v6016_v44  ;;  %v684_v39 = vld [vmem:[%s9221_s0] sm:$0xff] }
 0x139   :  { %vm685_vm12 = vcmp.gt.f32.partialorder %v684_v39, 0.5 }
 0x13a   :  { %v690_v45 = vsub.f32 %v651_v57, %v661_v24  ;;  %vm657_vm14 = vcmp.lt.f32.partialorder %v651_v57, %v655_v25  ;;  %vm663_vm15 = vcmp.gt.f32.partialorder %v651_v57, %v661_v24 }
 0x13b   :  { %vm664_vm13 = vmand %vm657_vm14, %vm663_vm15 }
 0x13c   :  { %v692_v26 = vmul.f32 0.5, %v690_v45 }
 0x13e   :  { %v693_v38 = vmul.f32 8.0, %v692_v26  ;;  %v4406_v26 = vmov 3  }
 0x140   :  { %v694_v45 = vfloor.f32 %v693_v38 }
 0x169   :  { %v6026_v39 = vpop.f32.mrb[0].mxu0 }
 0x16a   :  { %9613 = vst [vmem:[#allocation271_spill] sm:$0xff] %v6026_v39 }
 0x176   :  { %v630_v43 = vpop.trf.xlu0 }
 0x177   :  { %v668_v15 = vrot.slane %v630_v43, %v6016_v44 }
 0x179   :  { %vm673_vm8 = vcmp.lt.f32.partialorder %v668_v15, %v671_v14  ;;  %vm678_vm2 = vcmp.gt.f32.partialorder %v668_v15, %v676_v30  ;;  %v695_v29 = vsub.f32 %v671_v14, %v668_v15 }
 0x17a   :  { %vm679_vm11 = vmand %vm673_vm8, %vm678_vm2 }
 0x17b   :  { %v696_v8 = vmul.f32 0.5, %v695_v29  ;;  %vm686_vm1 = vmand %vm664_vm13, %vm679_vm11  ;;  %v4407_v29 = vmov 5  }
 0x17c   :  { %vm688_vm3 = vmand %vm686_vm1, %vm687_vm0 }
 0x17d   :  { %v697_v7 = vmul.f32 8.0, %v696_v8  ;;  %vm689_vm4 = vmand %vm688_vm3, %vm685_vm12  ;;  %v4409_v8 = vmov 6  }
 0x17f   :  { %v698_v43 = vfloor.f32 %v697_v7  ;;  %v4408_v7 = vmov 4  }
 0x181   :  { %v699_v30 = vmul.f32 8.0, %v698_v43  ;;  %v6028_v43 = vpop.f32.mrb[0].mxu1 }
 0x182   :  { %9614 = vst [vmem:[#allocation272_spill] sm:$0xff] %v6028_v43 }
 0x183   :  { %v700_v25 = vadd.f32 %v699_v30, %v694_v45  ;;  %v6030_v45 = vpop.f32.mrb[1].mxu0  ;;  %v6032_v30 = vpop.f32.mrb[1].mxu1 }
 0x184   :  { %9615 = vst [vmem:[#allocation273_spill] sm:$0xff] %v6030_v45  ;;  %9616 = vst [vmem:[#allocation274_spill] sm:$0xff] %v6032_v30 }
 0x185   :  { %v701_v24 = vsel %vm689_vm4, %v700_v25, -1.0  ;;  %v6034_v25 = vpop.f32.mrb[2].mxu0 }
 0x186   :  { %v4339_v57 = vtrunc.f32 %v701_v24  ;;  %v6036_v24 = vpop.f32.mrb[2].mxu1 }
 0x188   :  { %v4340_v14 = vcvt.f32.s32 %v4339_v57  ;;  %v6041_v57 = vpop.f32.mrb[3].mxu1 }
 0x189   :  { %9617 = vst [vmem:[#allocation275_spill] sm:$0xff] %v6041_v57  ;;  %v6046_v55 = vpop.f32.mrb[4].mxu1 }
 0x18a   :  { %v1502_v15 = vmul.u32 32, %v4340_v14  ;;  %v4410_v14 = vmov 7   ;;  %9619 = vst [vmem:[#allocation277_spill] sm:$0xff] %v6046_v55  ;;  %v9867_v52 = vrot.slane %v6046_v55, %v6016_v44 }
 0x18c   :  { %1805 = vperm.xlu1 %4358, %v1502_v15   ;;  %1504 = vperm.xlu0 %4356, %v1502_v15   ;;  %v1522_v38 = vadd.s32 32, %v1502_v15 }
 0x190   :  { %4359 = vset.pattern.permute.xlu1 %v4406_v26  ;;  %4357 = vset.pattern.permute.xlu0 %v9598_v11 }
 0x191   :  { %1955 = vperm.xlu1 %4359, %v1502_v15   ;;  %1655 = vperm.xlu0 %4357, %v1502_v15  }
 0x195   :  { %4361 = vset.pattern.permute.xlu1 %v4407_v29  ;;  %4360 = vset.pattern.permute.xlu0 %v4408_v7 }
 0x196   :  { %2255 = vperm.xlu1 %4361, %v1502_v15   ;;  %2105 = vperm.xlu0 %4360, %v1502_v15  }
 0x19a   :  { %4362 = vset.pattern.permute.xlu1 %v4409_v8  ;;  %4365 = vset.pattern.permute.xlu0 %v4405_v9  ;;  %v6039_v9 = vpop.f32.mrb[3].mxu0 }
 0x19b   :  { %2405 = vperm.xlu1 %4362, %v1502_v15   ;;  %1824 = vperm.xlu0 %4365, %v1522_v38   ;;  %v6044_v6 = vpop.f32.mrb[4].mxu0 }
 0x19c   :  { %9618 = vst [vmem:[#allocation276_spill] sm:$0xff] %v6044_v6  ;;  %v6048_v54 = vpop.f32.mrb[5].mxu0 }
 0x19d   :  { %9620 = vst [vmem:[#allocation278_spill] sm:$0xff] %v6048_v54 }
 0x19f   :  { %4363 = vset.pattern.permute.xlu1 %v9612_v12  ;;  %4368 = vset.pattern.permute.xlu0 %v4407_v29  ;;  %v6050_v12 = vpop.f32.mrb[5].mxu1  ;;  %v6052_v29 = vpop.f32.mrb[6].mxu0 }
 0x1a0   :  { %2274 = vperm.xlu0 %4368, %v1522_v38   ;;  %1524 = vperm.xlu1 %4363, %v1522_v38   ;;  %9621 = vst [vmem:[#allocation279_spill] sm:$0xff] %v6050_v12  ;;  %9622 = vst [vmem:[#allocation280_spill] sm:$0xff] %v6052_v29  ;;  %v6054_v23 = vpop.f32.mrb[6].mxu1  ;;  %v6056_v22 = vpop.f32.mrb[7].mxu0  ;;  %v9874_v18 = vrot.slane %v6050_v12, %v6016_v44 }
 0x1a1   :  { %9623 = vst [vmem:[#allocation281_spill] sm:$0xff] %v6054_v23  ;;  %9624 = vst [vmem:[#allocation282_spill] sm:$0xff] %v6056_v22  ;;  %v6058_v37 = vpop.f32.mrb[7].mxu1 }
 0x1a2   :  { %9625 = vst [vmem:[#allocation283_spill] sm:$0xff] %v6058_v37 }
 0x1a4   :  { %4370 = vset.pattern.permute.xlu0 %v4410_v14  ;;  %4364 = vset.pattern.permute.xlu1 %v9598_v11  ;;  %v6061_v11 = vsub.s32 1, %v5741_v31 }
 0x1a5   :  { %2555 = vperm.xlu0 %4370, %v1502_v15   ;;  %1674 = vperm.xlu1 %4364, %v1522_v38   ;;  %v6064_v15 = vsub.s32 2, %v5741_v31 }
 0x1a6   :  { %9626 = vst [vmem:[#allocation284_spill] sm:$0xff] %v6061_v11 }
 0x1a7   :  { %v9726_v11 = vrot.slane %v6026_v39, %v6064_v15  ;;  %v9736_v51 = vrot.slane %v6034_v25, %v6064_v15  ;;  %v9744_v19 = vrot.slane %v6036_v24, %v6064_v15 }
 0x1a9   :  { %4366 = vset.pattern.permute.xlu1 %v4406_v26  ;;  %v6073_v26 = vsub.s32 5, %v5741_v31 }
 0x1aa   :  { %1974 = vperm.xlu1 %4366, %v1522_v38  }
 0x1ab   :  { %9629 = vst [vmem:[#allocation287_spill] sm:$0xff] %v6073_v26  ;;  %v9703_v26 = vmov 0 }
 0x1ae   :  { %4367 = vset.pattern.permute.xlu1 %v4408_v7  ;;  %v6076_v7 = vsub.s32 6, %v5741_v31 }
 0x1af   :  { %2124 = vperm.xlu1 %4367, %v1522_v38  }
 0x1b0   :  { %9630 = vst [vmem:[#allocation288_spill] sm:$0xff] %v6076_v7  ;;  %v9699_v7 = vmov 0 }
 0x1b3   :  { %4369 = vset.pattern.permute.xlu1 %v4409_v8  ;;  %v9738_v8 = vrot.slane %v6039_v9, %v6064_v15 }
 0x1b4   :  { %2424 = vperm.xlu1 %4369, %v1522_v38  }
 0x1b8   :  { %4371 = vset.pattern.permute.xlu1 %v4410_v14 }
 0x1b9   :  { %2574 = vperm.xlu1 %4371, %v1522_v38   ;;  %v6079_v38 = vsub.s32 7, %v5741_v31 }
 0x1bb   :  { %9631 = vst [vmem:[#allocation289_spill] sm:$0xff] %v6079_v38  ;;  %v9794_v38 = vmov 0 }
 0x20b   :  { %v6181_v20 = vpop.permute.xlu1 %1805  ;;  %v6183_v14 = vpop.permute.xlu0 %1504 }
 0x20c   :  { %vm1807_vm6 = vcmp.ge.s32.totalorder %v5743_v46, %v6181_v20  ;;  %vm1808_vm9 = vcmp.ge.s32.totalorder %v5752_v63, %v6181_v20  ;;  %vm1809_vm5 = vcmp.ge.s32.totalorder %v5759_v13, %v6181_v20 }
 0x210   :  { %v6233_v34 = vpop.permute.xlu1 %1955  ;;  %v6235_v21 = vpop.permute.xlu0 %1655 }
 0x215   :  { %v6285_v2 = vpop.permute.xlu1 %2255  ;;  %v6287_v4 = vpop.permute.xlu0 %2105 }
 0x216   :  { %9632 = vst [vmem:[#allocation290_spill] sm:$0xff] %v6285_v2  ;;  %9633 = vst [vmem:[#allocation291_spill] sm:$0xff] %v6287_v4  ;;  %v9723_v2 = vmov 0 }
 0x21a   :  { %v6345_v50 = vpop.permute.xlu1 %2405  ;;  %v1825_v53 = vpop.permute.xlu0 %1824 }
 0x21b   :  { %9634 = vst [vmem:[#allocation292_spill] sm:$0xff] %v6345_v50  ;;  %vm1826_vm14 = vcmp.lt.s32.totalorder %v5743_v46, %v1825_v53  ;;  %vm1827_vm15 = vcmp.lt.s32.totalorder %v5752_v63, %v1825_v53  ;;  %vm1828_vm11 = vcmp.lt.s32.totalorder %v5759_v13, %v1825_v53  ;;  %vm1829_vm0 = vcmp.lt.s32.totalorder %v5755_v62, %v1825_v53 }
 0x21c   :  { %vm1831_vm12 = vcmp.lt.s32.totalorder %v5768_v61, %v1825_v53  ;;  %vm1832_vm2 = vcmp.lt.s32.totalorder %v5821_v58, %v1825_v53  ;;  %vm1833_vm8 = vcmp.lt.s32.totalorder %v5804_v10, %v1825_v53  ;;  %vm6389_vm3 = vmand %vm1807_vm6, %vm1826_vm14  ;;  %vm9644_vm4 = vcmp.lt.s32.totalorder %v5807_v59, %v1825_v53 }
 0x21d   :  { %vm6398_vm7 = vmand %vm1808_vm9, %vm1827_vm15  ;;  %vm9645_vm6 = vcmp.ge.s32.totalorder %v5807_v59, %v6181_v20  ;;  %vm9648_vm9 = vcmp.ge.s32.totalorder %v5768_v61, %v6181_v20  ;;  %vm9651_vm14 = vcmp.ge.s32.totalorder %v5821_v58, %v6181_v20  ;;  %v9713_v50 = vmov 0 }
 0x21e   :  { %vm6407_vm1 = vmand %vm1809_vm5, %vm1828_vm11  ;;  %vm9641_vm5 = vcmp.ge.s32.totalorder %v5755_v62, %v6181_v20 }
 0x21f   :  { %v6411_v35 = vpop.permute.xlu1 %1524  ;;  %vm6424_vm11 = vmand %vm9641_vm5, %vm1829_vm0  ;;  %vm9658_vm0 = vcmp.ge.s32.totalorder %v5850_v41, %v6181_v20 }
 0x220   :  { %vm6433_vm10 = vmand %vm9645_vm6, %vm9644_vm4  ;;  %vm9665_vm6 = vcmp.lt.s32.totalorder %v5853_v40, %v1825_v53 }
 0x221   :  { %vm6442_vm15 = vmand %vm9648_vm9, %vm1831_vm12  ;;  %vm9654_vm12 = vcmp.ge.s32.totalorder %v5804_v10, %v6181_v20 }
 0x222   :  { %vm6457_vm13 = vmand %vm9651_vm14, %vm1832_vm2  ;;  %vm9657_vm14 = vcmp.lt.s32.totalorder %v5850_v41, %v1825_v53  ;;  %vm9666_vm2 = vcmp.ge.s32.totalorder %v5853_v40, %v6181_v20 }
 0x223   :  { %vm6466_vm9 = vmand %vm9654_vm12, %vm1833_vm8  ;;  %vm9661_vm8 = vcmp.lt.s32.totalorder %v5824_v47, %v1825_v53  ;;  %vm9662_vm12 = vcmp.ge.s32.totalorder %v5824_v47, %v6181_v20  ;;  %v6774_v31 = vsel %vm6457_vm13, %v9744_v19, 0.0  ;;  %v9755_v19 = vrot.slane %v6048_v54, %v6064_v15 }
 0x224   :  { %v9656_v33 = vsel %vm6466_vm9, 4294967295, %v9655_v33  ;;  %vm6480_vm4 = vmand %vm9658_vm0, %vm9657_vm14  ;;  %vm9681_vm14 = vcmp.lt.s32.totalorder %v5941_v56, %v1825_v53  ;;  %v6687_v4 = vpop.permute.xlu1 %1674  ;;  %9745 = vst [vmem:[#allocation302_spill] sm:$0xff] %v6774_v31 }
 0x225   :  { %v9660_v32 = vsel %vm6480_vm4, 4294967295, %v9659_v32  ;;  %vm6489_vm5 = vmand %vm9662_vm12, %vm9661_vm8  ;;  %vm9669_vm12 = vcmp.lt.s32.totalorder %v5835_v27, %v1825_v53  ;;  %vm1676_vm13 = vcmp.lt.s32.totalorder %v5743_v46, %v6687_v4 }
 0x226   :  { %v9664_v49 = vsel %vm6489_vm5, 4294967295, %v9663_v49  ;;  %vm6498_vm9 = vmand %vm9666_vm2, %vm9665_vm6  ;;  %vm9670_vm5 = vcmp.ge.s32.totalorder %v5835_v27, %v6181_v20  ;;  %vm9673_vm6 = vcmp.lt.s32.totalorder %v5927_v60, %v1825_v53  ;;  %vm9674_vm2 = vcmp.ge.s32.totalorder %v5927_v60, %v6181_v20 }
 0x227   :  { %v9668_v48 = vsel %vm6498_vm9, 4294967295, %v9667_v48  ;;  %vm6513_vm4 = vmand %vm9670_vm5, %vm9669_vm12  ;;  %vm9682_vm5 = vcmp.ge.s32.totalorder %v5941_v56, %v6181_v20  ;;  %vm9689_vm12 = vcmp.lt.s32.totalorder %v5743_v46, %v6411_v35 }
 0x228   :  { %v9672_v1 = vsel %vm6513_vm4, 4294967295, %v9671_v1  ;;  %vm6522_vm0 = vmand %vm9674_vm2, %vm9673_vm6  ;;  %vm9677_vm6 = vcmp.lt.s32.totalorder %v5905_v42, %v1825_v53  ;;  %vm9678_vm2 = vcmp.ge.s32.totalorder %v5905_v42, %v6181_v20  ;;  %vm9711_vm4 = vcmp.lt.s32.totalorder %v5768_v61, %v6411_v35 }
 0x229   :  { %v9676_v0 = vsel %vm6522_vm0, 4294967295, %v9675_v0  ;;  %vm6541_vm0 = vmand %vm9678_vm2, %vm9677_vm6  ;;  %vm9685_vm6 = vcmp.lt.s32.totalorder %v5916_v28, %v1825_v53  ;;  %vm9686_vm2 = vcmp.ge.s32.totalorder %v5916_v28, %v6181_v20  ;;  %v9691_v20 = vmov 0 }
 0x22a   :  { %v9680_v17 = vsel %vm6541_vm0, 4294967295, %v9679_v17  ;;  %vm6550_vm8 = vmand %vm9682_vm5, %vm9681_vm14  ;;  %vm9693_vm14 = vcmp.lt.s32.totalorder %v5752_v63, %v6411_v35  ;;  %v9695_v53 = vmov 0 }
 0x22b   :  { %v9684_v16 = vsel %vm6550_vm8, 4294967295, %v9683_v16  ;;  %vm6563_vm0 = vmand %vm9686_vm2, %vm9685_vm6  ;;  %vm9690_vm8 = vcmp.ge.s32.totalorder %v5743_v46, %v6183_v14  ;;  %vm9697_vm6 = vcmp.lt.s32.totalorder %v5759_v13, %v6411_v35  ;;  %vm9698_vm2 = vcmp.ge.s32.totalorder %v5759_v13, %v6183_v14 }
 0x22c   :  { %vm6579_vm9 = vmand %vm9690_vm8, %vm9689_vm12  ;;  %vm9694_vm8 = vcmp.ge.s32.totalorder %v5752_v63, %v6183_v14 }
 0x22d   :  { %v9692_v20 = vsel %vm6579_vm9, 4294967295, %v9691_v20  ;;  %vm6597_vm12 = vmand %vm9694_vm8, %vm9693_vm14  ;;  %vm9712_vm9 = vcmp.ge.s32.totalorder %v5768_v61, %v6183_v14  ;;  %vm9716_vm8 = vcmp.lt.s32.totalorder %v5821_v58, %v6411_v35 }
 0x22e   :  { %v9696_v53 = vsel %vm6597_vm12, 4294967295, %v9695_v53  ;;  %vm6607_vm5 = vmand %vm9698_vm2, %vm9697_vm6  ;;  %vm9701_vm12 = vcmp.lt.s32.totalorder %v5755_v62, %v6411_v35  ;;  %vm9702_vm6 = vcmp.ge.s32.totalorder %v5755_v62, %v6183_v14 }
 0x22f   :  { %v9700_v7 = vsel %vm6607_vm5, 4294967295, %v9699_v7  ;;  %vm6625_vm2 = vmand %vm9702_vm6, %vm9701_vm12  ;;  %vm9706_vm5 = vcmp.lt.s32.totalorder %v5807_v59, %v6411_v35  ;;  %vm9707_vm12 = vcmp.ge.s32.totalorder %v5807_v59, %v6183_v14 }
 0x230   :  { %v9704_v26 = vsel %vm6625_vm2, 4294967295, %v9703_v26  ;;  %vm6643_vm6 = vmand %vm9707_vm12, %vm9706_vm5  ;;  %vm9717_vm2 = vcmp.ge.s32.totalorder %v5821_v58, %v6183_v14  ;;  %vm9770_vm12 = vcmp.ge.s32.totalorder %v5927_v60, %v6183_v14 }
 0x231   :  { %9705 = vst [vmem:[#allocation293_spill] sm:$0xff] %v9704_v26  ;;  %v9709_v5 = vsel %vm6643_vm6, 4294967295, %v9708_v5  ;;  %vm6653_vm14 = vmand %vm9712_vm9, %vm9711_vm4  ;;  %vm9792_vm6 = vcmp.lt.s32.totalorder %v5941_v56, %v6411_v35 }
 0x232   :  { %9710 = vst [vmem:[#allocation294_spill] sm:$0xff] %v9709_v5  ;;  %v9714_v50 = vsel %vm6653_vm14, 4294967295, %v9713_v50  ;;  %vm6663_vm5 = vmand %vm9717_vm2, %vm9716_vm8  ;;  %vm1536_vm14 = vcmp.lt.s32.totalorder %v5853_v40, %v6411_v35  ;;  %vm9721_vm8 = vcmp.lt.s32.totalorder %v5804_v10, %v6411_v35  ;;  %vm9722_vm2 = vcmp.ge.s32.totalorder %v5804_v10, %v6183_v14 }
 0x233   :  { %9715 = vst [vmem:[#allocation295_spill] sm:$0xff] %v9714_v50  ;;  %v9719_v36 = vsel %vm6663_vm5, 4294967295, %v9718_v36  ;;  %vm6683_vm5 = vmand %vm9722_vm2, %vm9721_vm8  ;;  %v9727_v50 = vrot.slane %v6030_v45, %v6064_v15  ;;  %v9728_v5 = vrot.slane %v6028_v43, %v6064_v15  ;;  %vm1537_vm8 = vcmp.lt.s32.totalorder %v5835_v27, %v6411_v35 }
 0x234   :  { %9720 = vst [vmem:[#allocation296_spill] sm:$0xff] %v9719_v36  ;;  %v9724_v2 = vsel %vm6683_vm5, 4294967295, %v9723_v2  ;;  %v6698_v36 = vsel %vm6389_vm3, %v9726_v11, 0.0  ;;  %vm9730_vm3 = vcmp.lt.s32.totalorder %v5850_v41, %v6411_v35  ;;  %vm9731_vm2 = vcmp.ge.s32.totalorder %v5850_v41, %v6183_v14 }
 0x235   :  { %9725 = vst [vmem:[#allocation297_spill] sm:$0xff] %v9724_v2  ;;  %v6705_v2 = vsel %vm6398_vm7, %v9727_v50, 0.0  ;;  %v6712_v26 = vsel %vm6407_vm1, %v9728_v5, 0.0  ;;  %vm6722_vm9 = vmand %vm9731_vm2, %vm9730_vm3  ;;  %v9734_v5 = vrot.slane %v6032_v30, %v6064_v15  ;;  %v6742_v11 = vsel %vm6433_vm10, %v9736_v51, 0.0 }
 0x236   :  { %9729 = vst [vmem:[#allocation298_spill] sm:$0xff] %v6712_v26  ;;  %9737 = vst [vmem:[#allocation300_spill] sm:$0xff] %v6742_v11  ;;  %v6749_v26 = vsel %vm6442_vm15, %v9738_v8, 0.0  ;;  %vm1538_vm3 = vcmp.lt.s32.totalorder %v5927_v60, %v6411_v35  ;;  %vm9741_vm2 = vcmp.ge.s32.totalorder %v5824_v47, %v6183_v14  ;;  %vm9749_vm7 = vcmp.ge.s32.totalorder %v5853_v40, %v6183_v14 }
 0x237   :  { %v6735_v50 = vsel %vm6424_vm11, %v9734_v5, 0.0  ;;  %9739 = vst [vmem:[#allocation301_spill] sm:$0xff] %v6749_v26  ;;  %vm9740_vm11 = vcmp.lt.s32.totalorder %v5824_v47, %v6411_v35  ;;  %v9746_v5 = vrot.slane %v6041_v57, %v6064_v15  ;;  %vm6791_vm15 = vmand %vm9749_vm7, %vm1536_vm14  ;;  %vm9753_vm10 = vnez %v9660_v32 }
 0x238   :  { %9735 = vst [vmem:[#allocation299_spill] sm:$0xff] %v6735_v50  ;;  %vm6759_vm1 = vmand %vm9741_vm2, %vm9740_vm11  ;;  %vm9747_vm11 = vnez %v9656_v33  ;;  %vm1539_vm2 = vcmp.lt.s32.totalorder %v5905_v42, %v6411_v35  ;;  %v9752_v33 = vrot.slane %v6044_v6, %v6064_v15  ;;  %vm9756_vm14 = vnez %v9664_v49 }
 0x239   :  { %v6781_v51 = vsel %vm9747_vm11, %v9746_v5, 0.0  ;;  %v6811_v5 = vsel %vm9756_vm14, %v9755_v19, 0.0  ;;  %vm9759_vm7 = vnez %v9668_v48  ;;  %vm1677_vm14 = vcmp.lt.s32.totalorder %v5752_v63, %v6687_v4  ;;  %vm6856_vm4 = vmand %vm9770_vm12, %vm1538_vm3 }
 0x23a   :  { %9748 = vst [vmem:[#allocation303_spill] sm:$0xff] %v6781_v51  ;;  %v6804_v8 = vsel %vm9753_vm10, %v9752_v33, 0.0  ;;  %9757 = vst [vmem:[#allocation305_spill] sm:$0xff] %v6811_v5  ;;  %v9758_v51 = vrot.slane %v6046_v55, %v6064_v15  ;;  %vm9761_vm10 = vcmp.ge.s32.totalorder %v5835_v27, %v6183_v14  ;;  %v9764_v48 = vrot.slane %v6050_v12, %v6064_v15  ;;  %v9820_v5 = vld [vmem:[#allocation295_spill] sm:$0xff] }
 0x23b   :  { %9754 = vst [vmem:[#allocation304_spill] sm:$0xff] %v6804_v8  ;;  %vm6826_vm11 = vmand %vm9761_vm10, %vm1537_vm8  ;;  %vm9768_vm8 = vnez %v9676_v0  ;;  %v9773_v0 = vrot.slane %v6056_v22, %v6064_v15  ;;  %vm9774_vm10 = vnez %v9680_v17  ;;  %vm9777_vm12 = vnez %v9684_v16  ;;  %v9824_v11 = vld [vmem:[#allocation296_spill] sm:$0xff] }
 0x23c   :  { %v6818_v31 = vsel %vm9759_vm7, %v9758_v51, 0.0  ;;  %vm9765_vm7 = vnez %v9672_v1  ;;  %v9767_v51 = vrot.slane %v6052_v29, %v6064_v15  ;;  %v9780_v17 = vmov 0 }
 0x23d   :  { %9760 = vst [vmem:[#allocation306_spill] sm:$0xff] %v6818_v31  ;;  %v6839_v49 = vsel %vm9765_vm7, %v9764_v48, 0.0  ;;  %v6869_v19 = vsel %vm9774_vm10, %v9773_v0, 0.0  ;;  %v9776_v48 = vrot.slane %v6054_v23, %v6064_v15  ;;  %v9785_v0 = vrot.slane %v6058_v37, %v6064_v15 }
 0x23e   :  { %9766 = vst [vmem:[#allocation307_spill] sm:$0xff] %v6839_v49  ;;  %v6846_v33 = vsel %vm9768_vm8, %v9767_v51, 0.0  ;;  %9775 = vst [vmem:[#allocation309_spill] sm:$0xff] %v6869_v19  ;;  %vm9779_vm8 = vcmp.ge.s32.totalorder %v5905_v42, %v6183_v14  ;;  %v9819_v31 = vrot.slane %v6039_v9, %v6016_v44  ;;  %v9823_v26 = vrot.slane %v6036_v24, %v6016_v44 }
 0x23f   :  { %9769 = vst [vmem:[#allocation308_spill] sm:$0xff] %v6846_v33  ;;  %v6876_v51 = vsel %vm9777_vm12, %v9776_v48, 0.0  ;;  %vm6886_vm7 = vmand %vm9779_vm8, %vm1539_vm2  ;;  %vm9782_vm12 = vcmp.ge.s32.totalorder %v5743_v46, %v6235_v21  ;;  %v6909_v48 = vsel %vm6563_vm0, %v9785_v0, 0.0  ;;  %vm9788_vm2 = vnez %v9692_v20 }
 0x240   :  { %9778 = vst [vmem:[#allocation310_spill] sm:$0xff] %v6876_v51  ;;  %v9781_v17 = vsel %vm6886_vm7, 4294967295, %v9780_v17  ;;  %vm6898_vm3 = vmand %vm9782_vm12, %vm1676_vm13  ;;  %v9787_v51 = vrot.slane %v6026_v39, %v6016_v44  ;;  %vm9789_vm0 = vcmp.ge.s32.totalorder %v5752_v63, %v6235_v21  ;;  %vm9793_vm13 = vcmp.ge.s32.totalorder %v5941_v56, %v6183_v14 }
 0x241   :  { %9786 = vst [vmem:[#allocation311_spill] sm:$0xff] %v6909_v48  ;;  %vm6928_vm12 = vmand %vm9789_vm0, %vm1677_vm14  ;;  %v9796_v20 = vrot.slane %v6030_v45, %v6016_v44  ;;  %vm9797_vm14 = vnez %v9696_v53  ;;  %v9798_v0 = vrot.slane %v6028_v43, %v6016_v44  ;;  %vm9799_vm0 = vnez %v9700_v7 }
 0x242   :  { %v6916_v19 = vsel %vm9788_vm2, %v9787_v51, 0.0  ;;  %vm6940_vm8 = vmand %vm9793_vm13, %vm9792_vm6  ;;  %vm9800_vm2 = vcmp.lt.s32.totalorder %v5759_v13, %v6687_v4  ;;  %v9802_v53 = vmov 0  ;;  %vm9805_vm6 = vcmp.ge.s32.totalorder %v5916_v28, %v6183_v14  ;;  %v7007_v14 = vpop.permute.xlu1 %1974 }
 0x243   :  { %v9795_v38 = vsel %vm6940_vm8, 4294967295, %v9794_v38  ;;  %v6949_v51 = vsel %vm9797_vm14, %v9796_v20, 0.0  ;;  %v6956_v48 = vsel %vm9799_vm0, %v9798_v0, 0.0  ;;  %vm9801_vm14 = vcmp.ge.s32.totalorder %v5759_v13, %v6235_v21  ;;  %v9809_v0 = vld [vmem:[#allocation293_spill] sm:$0xff] }
 0x244   :  { %vm6968_vm10 = vmand %vm9801_vm14, %vm9800_vm2  ;;  %vm9804_vm8 = vcmp.lt.s32.totalorder %v5916_v28, %v6411_v35  ;;  %v9806_v7 = vmov 0  ;;  %v9808_v20 = vrot.slane %v6032_v30, %v6016_v44  ;;  %vm9810_vm2 = vnez %v9809_v0  ;;  %v9816_v0 = vld [vmem:[#allocation294_spill] sm:$0xff] }
 0x245   :  { %v9803_v53 = vsel %vm6968_vm10, 4294967295, %v9802_v53  ;;  %vm6980_vm13 = vmand %vm9805_vm6, %vm9804_vm8  ;;  %vm9811_vm8 = vcmp.lt.s32.totalorder %v5755_v62, %v6687_v4  ;;  %vm9812_vm6 = vcmp.ge.s32.totalorder %v5755_v62, %v6235_v21  ;;  %v9813_v35 = vmov 0 }
 0x246   :  { %v9807_v7 = vsel %vm6980_vm13, 4294967295, %v9806_v7  ;;  %v6989_v33 = vsel %vm9810_vm2, %v9808_v20, 0.0  ;;  %vm7003_vm13 = vmand %vm9812_vm6, %vm9811_vm8  ;;  %v9815_v20 = vrot.slane %v6034_v25, %v6016_v44  ;;  %vm9817_vm10 = vnez %v9816_v0  ;;  %v7214_v32 = vpop.permute.xlu1 %2124 }
 0x247   :  { %v9814_v35 = vsel %vm7003_vm13, 4294967295, %v9813_v35  ;;  %vm9821_vm8 = vnez %v9820_v5  ;;  %vm9825_vm6 = vnez %v9824_v11  ;;  %vm9828_vm0 = vcmp.ge.s32.totalorder %v5807_v59, %v6235_v21 }
 0x248   :  { %v7016_v49 = vsel %vm9817_vm10, %v9815_v20, 0.0  ;;  %v7023_v8 = vsel %vm9821_vm8, %v9819_v31, 0.0  ;;  %v7030_v50 = vsel %vm9825_vm6, %v9823_v26, 0.0  ;;  %vm9827_vm10 = vcmp.lt.s32.totalorder %v5807_v59, %v6687_v4 }
 0x249   :  { %9818 = vst [vmem:[#allocation293_spill] sm:$0xff] %v7016_v49  ;;  %9822 = vst [vmem:[#allocation294_spill] sm:$0xff] %v7023_v8  ;;  %vm9831_vm8 = vcmp.lt.s32.totalorder %v5768_v61, %v6687_v4  ;;  %vm9832_vm6 = vcmp.ge.s32.totalorder %v5768_v61, %v6235_v21  ;;  %v9835_v11 = vrot.slane %v6041_v57, %v6016_v44  ;;  %v9840_v0 = vmov 0 }
 0x24a   :  { %9826 = vst [vmem:[#allocation295_spill] sm:$0xff] %v7030_v50  ;;  %vm7040_vm14 = vmand %vm9828_vm0, %vm9827_vm10  ;;  %vm9839_vm7 = vcmp.ge.s32.totalorder %v5821_v58, %v6235_v21  ;;  %vm9843_vm0 = vcmp.ge.s32.totalorder %v5804_v10, %v6235_v21  ;;  %v9846_v31 = vrot.slane %v6044_v6, %v6016_v44  ;;  %v9850_v50 = vmov 0 }
 0x24b   :  { %vm7050_vm13 = vmand %vm9832_vm6, %vm9831_vm8  ;;  %v7063_v20 = vsel %vm6683_vm5, %v9835_v11, 0.0  ;;  %vm9838_vm6 = vcmp.lt.s32.totalorder %v5821_v58, %v6687_v4  ;;  %vm9842_vm5 = vcmp.lt.s32.totalorder %v5804_v10, %v6687_v4  ;;  %v9844_v11 = vmov 0 }
 0x24c   :  { %9837 = vst [vmem:[#allocation296_spill] sm:$0xff] %v7063_v20  ;;  %vm7077_vm2 = vmand %vm9839_vm7, %vm9838_vm6  ;;  %v7098_v20 = vsel %vm6722_vm9, %v9846_v31, 0.0  ;;  %vm9848_vm6 = vcmp.lt.s32.totalorder %v5850_v41, %v6687_v4  ;;  %vm9852_vm8 = vcmp.lt.s32.totalorder %v5824_v47, %v6687_v4  ;;  %vm9853_vm9 = vcmp.ge.s32.totalorder %v5824_v47, %v6235_v21  ;;  %v9943_v31 = vld [vmem:[#allocation279_spill] sm:$0xff] }
 0x24d   :  { %v9841_v0 = vsel %vm7077_vm2, 4294967295, %v9840_v0  ;;  %vm7087_vm10 = vmand %vm9843_vm0, %vm9842_vm5  ;;  %9847 = vst [vmem:[#allocation297_spill] sm:$0xff] %v7098_v20  ;;  %vm9849_vm0 = vcmp.ge.s32.totalorder %v5850_v41, %v6235_v21  ;;  %vm9856_vm7 = vcmp.lt.s32.totalorder %v5853_v40, %v6687_v4  ;;  %vm9857_vm2 = vcmp.ge.s32.totalorder %v5853_v40, %v6235_v21 }
 0x24e   :  { %v9845_v11 = vsel %vm7087_vm10, 4294967295, %v9844_v11  ;;  %vm7108_vm5 = vmand %vm9849_vm0, %vm9848_vm6  ;;  %v9860_v20 = vrot.slane %v6048_v54, %v6016_v44  ;;  %v9864_v49 = vmov 0  ;;  %v9888_v1 = vrot.slane %v6056_v22, %v6016_v44 }
 0x24f   :  { %v9851_v50 = vsel %vm7108_vm5, 4294967295, %v9850_v50  ;;  %vm7118_vm10 = vmand %vm9853_vm9, %vm9852_vm8  ;;  %vm9891_vm8 = vcmp.ge.s32.totalorder %v5916_v28, %v6235_v21  ;;  %vm9896_vm0 = vcmp.lt.s32.totalorder %v5743_v46, %v7007_v14 }
 0x250   :  { %vm7128_vm6 = vmand %vm9857_vm2, %vm9856_vm7  ;;  %v7143_v8 = vsel %vm6759_vm1, %v9860_v20, 0.0  ;;  %vm9862_vm2 = vcmp.lt.s32.totalorder %v5835_v27, %v6687_v4  ;;  %vm9863_vm7 = vcmp.ge.s32.totalorder %v5835_v27, %v6235_v21  ;;  %v7168_v20 = vsel %vm6791_vm15, %v9867_v52, 0.0 }
 0x251   :  { %9861 = vst [vmem:[#allocation312_spill] sm:$0xff] %v7143_v8  ;;  %vm7151_vm9 = vmand %vm9863_vm7, %vm9862_vm2  ;;  %vm9869_vm2 = vcmp.lt.s32.totalorder %v5927_v60, %v6687_v4  ;;  %vm9870_vm7 = vcmp.ge.s32.totalorder %v5927_v60, %v6235_v21  ;;  %v9871_v8 = vmov 0  ;;  %v7193_v52 = vsel %vm6826_vm11, %v9874_v18, 0.0 }
 0x252   :  { %v9865_v49 = vsel %vm7151_vm9, 4294967295, %v9864_v49  ;;  %9868 = vst [vmem:[#allocation314_spill] sm:$0xff] %v7168_v20  ;;  %vm7176_vm5 = vmand %vm9870_vm7, %vm9869_vm2  ;;  %vm9876_vm2 = vcmp.lt.s32.totalorder %v5905_v42, %v6687_v4  ;;  %vm9877_vm7 = vcmp.ge.s32.totalorder %v5905_v42, %v6235_v21  ;;  %v9882_v18 = vrot.slane %v6052_v29, %v6016_v44 }
 0x253   :  { %9866 = vst [vmem:[#allocation313_spill] sm:$0xff] %v9865_v49  ;;  %v9872_v8 = vsel %vm7176_vm5, 4294967295, %v9871_v8  ;;  %9875 = vst [vmem:[#allocation316_spill] sm:$0xff] %v7193_v52 }
 0x254   :  { %9873 = vst [vmem:[#allocation315_spill] sm:$0xff] %v9872_v8  ;;  %vm7201_vm1 = vmand %vm9877_vm7, %vm9876_vm2  ;;  %v9880_v8 = vld [vmem:[#allocation284_spill] sm:$0xff]  ;;  %vm9884_vm7 = vcmp.ge.s32.totalorder %v5941_v56, %v6235_v21 }
 0x255   :  { %v9881_v49 = vrot.slane %v6026_v39, %v9880_v8  ;;  %v7223_v39 = vsel %vm6856_vm4, %v9882_v18, 0.0  ;;  %v9887_v16 = vrot.slane %v6030_v45, %v9880_v8  ;;  %vm9890_vm4 = vcmp.lt.s32.totalorder %v5916_v28, %v6687_v4 }
 0x256   :  { %vm7263_vm2 = vmand %vm9891_vm8, %vm9890_vm4  ;;  %v9892_v18 = vmov 0  ;;  %vm9897_vm8 = vcmp.ge.s32.totalorder %v5743_v46, %v6233_v34  ;;  %v9907_v45 = vmov 0  ;;  %vm9915_vm4 = vcmp.lt.s32.totalorder %v5755_v62, %v7007_v14 }
 0x257   :  { %v1772_v12 = vsel %vm6898_vm3, %v9881_v49, 0.0  ;;  %vm9883_vm3 = vcmp.lt.s32.totalorder %v5941_v56, %v6687_v4  ;;  %v1773_v52 = vsel %vm6928_vm12, %v9887_v16, 0.0  ;;  %vm9889_vm12 = vnez %v9781_v17  ;;  %vm7295_vm15 = vmand %vm9897_vm8, %vm9896_vm0 }
 0x258   :  { %vm7231_vm11 = vmand %vm9884_vm7, %vm9883_vm3  ;;  %v7255_v15 = vsel %vm9889_vm12, %v9888_v1, 0.0  ;;  %v9893_v18 = vsel %vm7263_vm2, 4294967295, %v9892_v18  ;;  %v9894_v4 = vrot.slane %v6028_v43, %v9880_v8  ;;  %vm9895_vm3 = vnez %v9803_v53  ;;  %v9900_v53 = vld [vmem:[#allocation291_spill] sm:$0xff] }
 0x259   :  { %v1788_v17 = vadd.f32 %v1772_v12, %v6916_v19  ;;  %v9898_v16 = vmov 0  ;;  %v9901_v12 = vrot.slane %v6054_v23, %v6016_v44  ;;  %vm9902_vm12 = vnez %v9795_v38 }
 0x25a   :  { %v1774_v21 = vsel %vm9895_vm3, %v9894_v4, 0.0  ;;  %v9899_v16 = vsel %vm7295_vm15, 4294967295, %v9898_v16  ;;  %v9903_v1 = vrot.slane %v6032_v30, %v9880_v8  ;;  %vm9904_vm0 = vnez %v9814_v35  ;;  %v10043_v35 = vld [vmem:[#allocation307_spill] sm:$0xff] }
 0x25b   :  { %v7310_v19 = vsel %vm9902_vm12, %v9901_v12, 0.0  ;;  %v1789_v43 = vadd.f32 %v1773_v52, %v6949_v51  ;;  %vm9905_vm8 = vcmp.lt.s32.totalorder %v5752_v63, %v7007_v14  ;;  %vm9906_vm7 = vcmp.ge.s32.totalorder %v5752_v63, %v6233_v34 }
 0x25c   :  { %v1775_v4 = vsel %vm9904_vm0, %v9903_v1, 0.0  ;;  %vm7324_vm3 = vmand %vm9906_vm7, %vm9905_vm8  ;;  %v9909_v38 = vrot.slane %v6058_v37, %v6016_v44  ;;  %vm9910_vm0 = vnez %v9807_v7  ;;  %vm9911_vm15 = vcmp.lt.s32.totalorder %v5759_v13, %v7007_v14 }
 0x25d   :  { %v9908_v45 = vsel %vm7324_vm3, 4294967295, %v9907_v45  ;;  %vm9912_vm7 = vcmp.ge.s32.totalorder %v5759_v13, %v6233_v34  ;;  %vm9916_vm12 = vcmp.ge.s32.totalorder %v5755_v62, %v6233_v34  ;;  %v9917_v44 = vmov 0 }
 0x25e   :  { %v7337_v51 = vsel %vm9910_vm0, %v9909_v38, 0.0  ;;  %vm7345_vm8 = vmand %vm9912_vm7, %vm9911_vm15  ;;  %v9920_v7 = vrot.slane %v6034_v25, %v9880_v8  ;;  %v9921_v12 = vrot.slane %v6039_v9, %v9880_v8  ;;  %v1790_v38 = vadd.f32 %v1774_v21, %v6956_v48 }
 0x25f   :  { %vm7355_vm3 = vmand %vm9916_vm12, %vm9915_vm4  ;;  %vm9922_vm4 = vcmp.lt.s32.totalorder %v5807_v59, %v7007_v14  ;;  %vm9923_vm12 = vcmp.ge.s32.totalorder %v5807_v59, %v6233_v34  ;;  %v9926_v48 = vrot.slane %v6036_v24, %v9880_v8  ;;  %v9928_v26 = vrot.slane %v6041_v57, %v9880_v8  ;;  %v9949_v57 = vld [vmem:[#allocation294_spill] sm:$0xff] }
 0x260   :  { %v9918_v44 = vsel %vm7355_vm3, 4294967295, %v9917_v44  ;;  %v1776_v52 = vsel %vm7040_vm14, %v9920_v7, 0.0  ;;  %v1777_v1 = vsel %vm7050_vm13, %v9921_v12, 0.0  ;;  %vm7384_vm15 = vmand %vm9923_vm12, %vm9922_vm4  ;;  %vm9927_vm4 = vnez %v9841_v0  ;;  %v7434_v0 = vpop.permute.xlu0 %2274 }
 0x261   :  { %9919 = vst [vmem:[#allocation284_spill] sm:$0xff] %v9918_v44  ;;  %v1778_v5 = vsel %vm9927_vm4, %v9926_v48, 0.0  ;;  %vm9929_vm12 = vnez %v9845_v11  ;;  %v1791_v7 = vadd.f32 %v1775_v4, %v6989_v33  ;;  %vm9930_vm13 = vcmp.lt.s32.totalorder %v5768_v61, %v7007_v14 }
 0x262   :  { %v1779_v21 = vsel %vm9929_vm12, %v9928_v26, 0.0  ;;  %vm9931_vm7 = vcmp.ge.s32.totalorder %v5768_v61, %v6233_v34  ;;  %v7426_v33 = vadd.f32 %v6698_v36, %v1788_v17  ;;  %v9934_v11 = vrot.slane %v6044_v6, %v9880_v8 }
 0x263   :  { %vm7413_vm14 = vmand %vm9931_vm7, %vm9930_vm13  ;;  %vm9935_vm12 = vnez %v9851_v50  ;;  %v9936_v36 = vrot.slane %v6048_v54, %v9880_v8  ;;  %v9937_v48 = vrot.slane %v6046_v55, %v9880_v8  ;;  %vm9938_vm0 = vcmp.lt.s32.totalorder %v5821_v58, %v7007_v14  ;;  %v9948_v54 = vld [vmem:[#allocation293_spill] sm:$0xff] }
 0x264   :  { %v1780_v4 = vsel %vm9935_vm12, %v9934_v11, 0.0  ;;  %vm9939_vm2 = vcmp.ge.s32.totalorder %v5821_v58, %v6233_v34  ;;  %v7466_v3 = vadd.f32 %v6705_v2, %v1789_v43  ;;  %v9944_v11 = vrot.slane %v9943_v31, %v9880_v8 }
 0x265   :  { %v1781_v17 = vsel %vm7118_vm10, %v9936_v36, 0.0  ;;  %v1782_v26 = vsel %vm7128_vm6, %v9937_v48, 0.0  ;;  %vm7457_vm4 = vmand %vm9939_vm2, %vm9938_vm0  ;;  %v9946_v2 = vrot.slane %v6052_v29, %v9880_v8  ;;  %v1792_v6 = vadd.f32 %v1776_v52, %v9948_v54 }
 0x266   :  { %9942 = vst [vmem:[#allocation291_spill] sm:$0xff] %v7466_v3  ;;  %v1783_v48 = vsel %vm7151_vm9, %v9944_v11, 0.0  ;;  %v1793_v3 = vadd.f32 %v1777_v1, %v9949_v57  ;;  %vm9950_vm10 = vcmp.lt.s32.totalorder %v5804_v10, %v7007_v14  ;;  %vm9951_vm12 = vcmp.ge.s32.totalorder %v5804_v10, %v6233_v34  ;;  %v9956_v11 = vld [vmem:[#allocation295_spill] sm:$0xff] }
 0x267   :  { %v1784_v55 = vsel %vm7176_vm5, %v9946_v2, 0.0  ;;  %vm7494_vm0 = vmand %vm9951_vm12, %vm9950_vm10  ;;  %v9954_v54 = vrot.slane %v6056_v22, %v9880_v8  ;;  %v9955_v52 = vrot.slane %v6054_v23, %v9880_v8  ;;  %v1794_v36 = vadd.f32 %v1778_v5, %v9956_v11  ;;  %v9957_v2 = vld [vmem:[#allocation296_spill] sm:$0xff]  ;;  %v9964_v5 = vld [vmem:[#allocation297_spill] sm:$0xff] }
 0x268   :  { %v1795_v43 = vadd.f32 %v1779_v21, %v9957_v2  ;;  %vm9958_vm12 = vcmp.lt.s32.totalorder %v5850_v41, %v7007_v14  ;;  %vm9959_vm10 = vcmp.ge.s32.totalorder %v5850_v41, %v6233_v34  ;;  %v9962_v20 = vrot.slane %v6058_v37, %v9880_v8  ;;  %v9966_v11 = vld [vmem:[#allocation314_spill] sm:$0xff] }
 0x269   :  { %v1785_v57 = vsel %vm7201_vm1, %v9954_v54, 0.0  ;;  %v1786_v1 = vsel %vm7231_vm11, %v9955_v52, 0.0  ;;  %vm7522_vm9 = vmand %vm9959_vm10, %vm9958_vm12  ;;  %vm9963_vm5 = vnez %v9893_v18  ;;  %v1796_v21 = vadd.f32 %v1780_v4, %v9964_v5  ;;  %v9965_v54 = vld [vmem:[#allocation312_spill] sm:$0xff]  ;;  %v9997_v5 = vld [vmem:[#allocation298_spill] sm:$0xff] }
 0x26a   :  { %v1787_v49 = vsel %vm9963_vm5, %v9962_v20, 0.0  ;;  %v1797_v52 = vadd.f32 %v1781_v17, %v9965_v54  ;;  %v1798_v2 = vadd.f32 %v1782_v26, %v9966_v11  ;;  %vm9967_vm12 = vcmp.lt.s32.totalorder %v5824_v47, %v7007_v14  ;;  %v9979_v4 = vld [vmem:[#allocation316_spill] sm:$0xff]  ;;  %v9998_v11 = vld [vmem:[#allocation299_spill] sm:$0xff]  ;;  %v9999_v37 = vld [vmem:[#allocation290_spill] sm:$0xff] }
 0x26b   :  { %vm9968_vm10 = vcmp.ge.s32.totalorder %v5824_v47, %v6233_v34  ;;  %vm9971_vm2 = vcmp.lt.s32.totalorder %v5853_v40, %v7007_v14  ;;  %vm9972_vm5 = vcmp.ge.s32.totalorder %v5853_v40, %v6233_v34  ;;  %v9973_v8 = vmov 0  ;;  %v10112_v22 = vld [vmem:[#allocation278_spill] sm:$0xff] }
 0x26c   :  { %vm7546_vm1 = vmand %vm9968_vm10, %vm9967_vm12  ;;  %vm9975_vm13 = vcmp.lt.s32.totalorder %v5835_v27, %v7007_v14  ;;  %vm9976_vm6 = vcmp.ge.s32.totalorder %v5835_v27, %v6233_v34  ;;  %v9977_v18 = vmov 0  ;;  %v1799_v17 = vadd.f32 %v1783_v48, %v9979_v4 }
 0x26d   :  { %vm7556_vm11 = vmand %vm9972_vm5, %vm9971_vm2  ;;  %v1800_v26 = vadd.f32 %v1784_v55, %v7223_v39  ;;  %vm9980_vm5 = vcmp.lt.s32.totalorder %v5927_v60, %v7007_v14  ;;  %v9982_v20 = vmov 0  ;;  %vm9984_vm7 = vcmp.lt.s32.totalorder %v5905_v42, %v7007_v14 }
 0x26e   :  { %v9974_v8 = vsel %vm7556_vm11, 4294967295, %v9973_v8  ;;  %vm7566_vm12 = vmand %vm9976_vm6, %vm9975_vm13  ;;  %vm9981_vm13 = vcmp.ge.s32.totalorder %v5927_v60, %v6233_v34  ;;  %vm9985_vm2 = vcmp.ge.s32.totalorder %v5905_v42, %v6233_v34  ;;  %vm9989_vm11 = vcmp.ge.s32.totalorder %v5941_v56, %v6233_v34 }
 0x26f   :  { %v9978_v18 = vsel %vm7566_vm12, 4294967295, %v9977_v18  ;;  %vm7584_vm6 = vmand %vm9981_vm13, %vm9980_vm5  ;;  %vm9988_vm12 = vcmp.lt.s32.totalorder %v5941_v56, %v7007_v14  ;;  %v9990_v55 = vmov 0  ;;  %vm9992_vm13 = vcmp.lt.s32.totalorder %v5916_v28, %v7007_v14 }
 0x270   :  { %v9983_v20 = vsel %vm7584_vm6, 4294967295, %v9982_v20  ;;  %vm7594_vm10 = vmand %vm9985_vm2, %vm9984_vm7  ;;  %vm9993_vm6 = vcmp.ge.s32.totalorder %v5916_v28, %v6233_v34  ;;  %v9994_v39 = vmov 0  ;;  %v7619_v54 = vadd.f32 %v9997_v5, %v1790_v38 }
 0x271   :  { %vm7604_vm5 = vmand %vm9989_vm11, %vm9988_vm12  ;;  %v7622_v4 = vadd.f32 %v9998_v11, %v1791_v7  ;;  %v1801_v34 = vadd.f32 %v1785_v57, %v7255_v15  ;;  %v1802_v14 = vadd.f32 %v1786_v1, %v7310_v19  ;;  %v10002_v38 = vmov 0  ;;  %v10010_v19 = vld [vmem:[#allocation300_spill] sm:$0xff]  ;;  %v10011_v57 = vld [vmem:[#allocation301_spill] sm:$0xff] }
 0x272   :  { %v9991_v55 = vsel %vm7604_vm5, 4294967295, %v9990_v55  ;;  %vm7614_vm7 = vmand %vm9993_vm6, %vm9992_vm13  ;;  %vm10000_vm6 = vcmp.lt.s32.totalorder %v5743_v46, %v7214_v32  ;;  %vm10001_vm13 = vcmp.ge.s32.totalorder %v5743_v46, %v9900_v53  ;;  %vm10005_vm12 = vcmp.lt.s32.totalorder %v5752_v63, %v7214_v32  ;;  %v10012_v11 = vld [vmem:[#allocation271_spill] sm:$0xff] }
 0x273   :  { %v9995_v39 = vsel %vm7614_vm7, 4294967295, %v9994_v39  ;;  %vm7638_vm7 = vmand %vm10001_vm13, %vm10000_vm6  ;;  %vm10006_vm2 = vcmp.ge.s32.totalorder %v5752_v63, %v9900_v53  ;;  %v10007_v15 = vmov 0  ;;  %v7653_v7 = vadd.f32 %v10010_v19, %v1792_v6  ;;  %v10013_v6 = vld [vmem:[#allocation285_spill] sm:$0xff] }
 0x274   :  { %9996 = vst [vmem:[#allocation313_spill] sm:$0xff] %v9995_v39  ;;  %v10003_v38 = vsel %vm7638_vm7, 4294967295, %v10002_v38  ;;  %vm7648_vm11 = vmand %vm10006_vm2, %vm10005_vm12  ;;  %v7656_v1 = vadd.f32 %v10011_v57, %v1793_v3  ;;  %v1803_v5 = vadd.f32 %v1787_v49, %v7337_v51  ;;  %v10014_v19 = vrot.slane %v10012_v11, %v10013_v6  ;;  %v10022_v51 = vld [vmem:[#allocation303_spill] sm:$0xff] }
 0x275   :  { %10004 = vst [vmem:[#allocation315_spill] sm:$0xff] %v10003_v38  ;;  %v10008_v15 = vsel %vm7648_vm11, 4294967295, %v10007_v15  ;;  %vm10015_vm2 = vnez %v9899_v16  ;;  %vm10016_vm6 = vcmp.lt.s32.totalorder %v5759_v13, %v7214_v32  ;;  %vm10017_vm13 = vcmp.ge.s32.totalorder %v5759_v13, %v9900_v53  ;;  %v10023_v16 = vld [vmem:[#allocation273_spill] sm:$0xff] }
 0x276   :  { %10009 = vst [vmem:[#allocation293_spill] sm:$0xff] %v10008_v15  ;;  %v2072_v3 = vsel %vm10015_vm2, %v10014_v19, 0.0  ;;  %vm7678_vm11 = vmand %vm10017_vm13, %vm10016_vm6  ;;  %v10018_v57 = vmov 0  ;;  %v10021_v15 = vld [vmem:[#allocation302_spill] sm:$0xff]  ;;  %v7686_v49 = vadd.f32 %v10022_v51, %v1795_v43  ;;  %v10024_v19 = vrot.slane %v10023_v16, %v10013_v6 }
 0x277   :  { %v10019_v57 = vsel %vm7678_vm11, 4294967295, %v10018_v57  ;;  %v7683_v38 = vadd.f32 %v10021_v15, %v1794_v36  ;;  %vm10025_vm13 = vnez %v9908_v45  ;;  %vm10026_vm11 = vcmp.lt.s32.totalorder %v5755_v62, %v7214_v32  ;;  %v10031_v15 = vld [vmem:[#allocation304_spill] sm:$0xff]  ;;  %v10033_v16 = vld [vmem:[#allocation306_spill] sm:$0xff] }
 0x278   :  { %10020 = vst [vmem:[#allocation294_spill] sm:$0xff] %v10019_v57  ;;  %v2073_v36 = vsel %vm10025_vm13, %v10024_v19, 0.0  ;;  %vm10027_vm12 = vcmp.ge.s32.totalorder %v5755_v62, %v9900_v53  ;;  %v10028_v43 = vmov 0  ;;  %v7712_v51 = vadd.f32 %v10031_v15, %v1796_v21  ;;  %v10032_v57 = vld [vmem:[#allocation305_spill] sm:$0xff]  ;;  %v10034_v45 = vld [vmem:[#allocation272_spill] sm:$0xff]  ;;  %v7748_v15 = vpop.permute.xlu1 %2424 }
 0x279   :  { %vm7707_vm5 = vmand %vm10027_vm12, %vm10026_vm11  ;;  %v7715_v11 = vadd.f32 %v10032_v57, %v1797_v52  ;;  %v7718_v39 = vadd.f32 %v10033_v16, %v1798_v2  ;;  %v10035_v21 = vrot.slane %v10034_v45, %v10013_v6  ;;  %v10036_v2 = vrot.slane %v6032_v30, %v10013_v6 }
 0x27a   :  { %v10029_v43 = vsel %vm7707_vm5, 4294967295, %v10028_v43  ;;  %vm10038_vm7 = vcmp.lt.s32.totalorder %v5807_v59, %v7214_v32  ;;  %vm10039_vm11 = vcmp.ge.s32.totalorder %v5807_v59, %v9900_v53  ;;  %v10040_v19 = vmov 0 }
 0x27b   :  { %10030 = vst [vmem:[#allocation295_spill] sm:$0xff] %v10029_v43  ;;  %v2074_v52 = vsel %vm7345_vm8, %v10035_v21, 0.0  ;;  %v2075_v16 = vsel %vm7355_vm3, %v10036_v2, 0.0  ;;  %vm7744_vm6 = vmand %vm10039_vm11, %vm10038_vm7  ;;  %v7751_v21 = vadd.f32 %v10043_v35, %v1799_v17  ;;  %v10044_v43 = vld [vmem:[#allocation308_spill] sm:$0xff]  ;;  %v10045_v2 = vrot.slane %v6034_v25, %v10013_v6 }
 0x27c   :  { %v10041_v19 = vsel %vm7744_vm6, 4294967295, %v10040_v19  ;;  %v7754_v30 = vadd.f32 %v10044_v43, %v1800_v26  ;;  %vm10046_vm11 = vcmp.lt.s32.totalorder %v5768_v61, %v7214_v32  ;;  %vm10047_vm12 = vcmp.ge.s32.totalorder %v5768_v61, %v9900_v53  ;;  %v10061_v43 = vld [vmem:[#allocation309_spill] sm:$0xff] }
 0x27d   :  { %10042 = vst [vmem:[#allocation296_spill] sm:$0xff] %v10041_v19  ;;  %v2076_v57 = vsel %vm7384_vm15, %v10045_v2, 0.0  ;;  %vm7773_vm13 = vmand %vm10047_vm12, %vm10046_vm11  ;;  %v10048_v17 = vmov 0  ;;  %vm10051_vm8 = vcmp.lt.s32.totalorder %v5821_v58, %v7214_v32  ;;  %vm10052_vm7 = vcmp.ge.s32.totalorder %v5821_v58, %v9900_v53  ;;  %v10062_v2 = vld [vmem:[#allocation310_spill] sm:$0xff] }
 0x27e   :  { %v10049_v17 = vsel %vm7773_vm13, 4294967295, %v10048_v17  ;;  %vm7783_vm3 = vmand %vm10052_vm7, %vm10051_vm8  ;;  %v10053_v26 = vmov 0  ;;  %vm10056_vm15 = vcmp.lt.s32.totalorder %v5804_v10, %v7214_v32  ;;  %vm10057_vm2 = vcmp.ge.s32.totalorder %v5804_v10, %v9900_v53 }
 0x27f   :  { %10050 = vst [vmem:[#allocation297_spill] sm:$0xff] %v10049_v17  ;;  %v10054_v26 = vsel %vm7783_vm3, 4294967295, %v10053_v26  ;;  %vm7793_vm12 = vmand %vm10057_vm2, %vm10056_vm15  ;;  %v10058_v44 = vmov 0  ;;  %v7798_v35 = vadd.f32 %v10061_v43, %v1801_v34  ;;  %v7801_v17 = vadd.f32 %v10062_v2, %v1802_v14 }
 0x280   :  { %10055 = vst [vmem:[#allocation312_spill] sm:$0xff] %v10054_v26  ;;  %v10059_v44 = vsel %vm7793_vm12, 4294967295, %v10058_v44  ;;  %v7804_v19 = vadd.f32 %v2072_v3, %v7426_v33  ;;  %v10063_v34 = vrot.slane %v6039_v9, %v10013_v6  ;;  %v10064_v33 = vrot.slane %v6036_v24, %v10013_v6 }
 0x281   :  { %10060 = vst [vmem:[#allocation314_spill] sm:$0xff] %v10059_v44  ;;  %vm10065_vm15 = vcmp.lt.s32.totalorder %v5850_v41, %v7214_v32  ;;  %vm10066_vm2 = vcmp.ge.s32.totalorder %v5850_v41, %v9900_v53  ;;  %v10067_v43 = vmov 0  ;;  %vm10070_vm11 = vcmp.lt.s32.totalorder %v5824_v47, %v7214_v32 }
 0x282   :  { %v2077_v14 = vsel %vm7413_vm14, %v10063_v34, 0.0  ;;  %v2078_v3 = vsel %vm7457_vm4, %v10064_v33, 0.0  ;;  %vm7830_vm7 = vmand %vm10066_vm2, %vm10065_vm15  ;;  %vm10071_vm14 = vcmp.ge.s32.totalorder %v5824_v47, %v9900_v53  ;;  %v10072_v12 = vmov 0  ;;  %v10084_v34 = vld [vmem:[#allocation311_spill] sm:$0xff] }
 0x283   :  { %v10068_v43 = vsel %vm7830_vm7, 4294967295, %v10067_v43  ;;  %vm7840_vm8 = vmand %vm10071_vm14, %vm10070_vm11  ;;  %vm10075_vm4 = vcmp.lt.s32.totalorder %v5853_v40, %v7214_v32  ;;  %vm10076_vm12 = vcmp.ge.s32.totalorder %v5853_v40, %v9900_v53  ;;  %v10077_v50 = vmov 0 }
 0x284   :  { %10069 = vst [vmem:[#allocation316_spill] sm:$0xff] %v10068_v43  ;;  %v10073_v12 = vsel %vm7840_vm8, 4294967295, %v10072_v12  ;;  %vm7850_vm2 = vmand %vm10076_vm12, %vm10075_vm4  ;;  %vm10080_vm15 = vcmp.lt.s32.totalorder %v5835_v27, %v7214_v32  ;;  %vm10081_vm7 = vcmp.ge.s32.totalorder %v5835_v27, %v9900_v53  ;;  %v10082_v2 = vmov 0 }
 0x285   :  { %10074 = vst [vmem:[#allocation298_spill] sm:$0xff] %v10073_v12  ;;  %v10078_v50 = vsel %vm7850_vm2, 4294967295, %v10077_v50  ;;  %vm7860_vm11 = vmand %vm10081_vm7, %vm10080_vm15  ;;  %v1953_v33 = vadd.f32 %v10084_v34, %v1803_v5  ;;  %v10085_v12 = vld [vmem:[#allocation291_spill] sm:$0xff]  ;;  %vm10088_vm7 = vcmp.lt.s32.totalorder %v5927_v60, %v7214_v32  ;;  %vm10089_vm4 = vcmp.ge.s32.totalorder %v5927_v60, %v9900_v53 }
 0x286   :  { %10079 = vst [vmem:[#allocation299_spill] sm:$0xff] %v10078_v50  ;;  %v10083_v2 = vsel %vm7860_vm11, 4294967295, %v10082_v2  ;;  %v7866_v43 = vadd.f32 %v2073_v36, %v10085_v12  ;;  %v10086_v50 = vld [vmem:[#allocation275_spill] sm:$0xff]  ;;  %vm7883_vm15 = vmand %vm10089_vm4, %vm10088_vm7  ;;  %v10090_v5 = vmov 0  ;;  %vm10092_vm12 = vcmp.lt.s32.totalorder %v5905_v42, %v7214_v32  ;;  %v10096_v12 = vld [vmem:[#allocation292_spill] sm:$0xff] }
 0x287   :  { %v10087_v44 = vrot.slane %v10086_v50, %v10013_v6  ;;  %v10091_v5 = vsel %vm7883_vm15, 4294967295, %v10090_v5  ;;  %vm10093_vm14 = vcmp.ge.s32.totalorder %v5905_v42, %v9900_v53  ;;  %v10094_v36 = vmov 0 }
 0x288   :  { %vm7893_vm11 = vmand %vm10093_vm14, %vm10092_vm12  ;;  %v7898_v31 = vadd.f32 %v2074_v52, %v7619_v54  ;;  %vm10098_vm15 = vcmp.ge.s32.totalorder %v5941_v56, %v9900_v53  ;;  %v10099_v54 = vmov 0  ;;  %v10103_v52 = vld [vmem:[#allocation276_spill] sm:$0xff]  ;;  %vm10106_vm4 = vcmp.ge.s32.totalorder %v5916_v28, %v9900_v53 }
 0x289   :  { %v2079_v26 = vsel %vm7494_vm0, %v10087_v44, 0.0  ;;  %v10095_v36 = vsel %vm7893_vm11, 4294967295, %v10094_v36  ;;  %v7901_v44 = vadd.f32 %v2075_v16, %v7622_v4  ;;  %vm10097_vm11 = vcmp.lt.s32.totalorder %v5941_v56, %v7214_v32 }
 0x28a   :  { %vm7919_vm2 = vmand %vm10098_vm15, %vm10097_vm11  ;;  %v7924_v4 = vadd.f32 %v2076_v57, %v7653_v7  ;;  %v10104_v16 = vrot.slane %v10103_v52, %v10013_v6  ;;  %vm10105_vm15 = vcmp.lt.s32.totalorder %v5916_v28, %v7214_v32  ;;  %v10107_v57 = vmov 0 }
 0x28b   :  { %v10100_v54 = vsel %vm7919_vm2, 4294967295, %v10099_v54  ;;  %vm7947_vm12 = vmand %vm10106_vm4, %vm10105_vm15  ;;  %v7952_v34 = vadd.f32 %v2077_v14, %v7656_v1  ;;  %v7955_v56 = vadd.f32 %v2078_v3, %v7683_v38  ;;  %v10113_v32 = vrot.slane %v10112_v22, %v10013_v6  ;;  %v10114_v1 = vld [vmem:[#allocation277_spill] sm:$0xff]  ;;  %v10117_v3 = vld [vmem:[#allocation279_spill] sm:$0xff] }
 0x28c   :  { %10101 = vst [vmem:[#allocation290_spill] sm:$0xff] %v10100_v54  ;;  %10102 = vst [vmem:[#allocation300_spill] sm:$0xff] %v7924_v4  ;;  %v2080_v7 = vsel %vm7522_vm9, %v10104_v16, 0.0  ;;  %v10108_v57 = vsel %vm7947_vm12, 4294967295, %v10107_v57  ;;  %v10115_v14 = vrot.slane %v10114_v1, %v10013_v6  ;;  %vm10116_vm4 = vnez %v9974_v8  ;;  %v10157_v54 = vld [vmem:[#allocation294_spill] sm:$0xff] }
 0x28d   :  { %10109 = vst [vmem:[#allocation301_spill] sm:$0xff] %v10108_v57  ;;  %10110 = vst [vmem:[#allocation285_spill] sm:$0xff] %v7952_v34  ;;  %v2081_v53 = vsel %vm7546_vm1, %v10113_v32, 0.0  ;;  %v10118_v16 = vrot.slane %v10117_v3, %v10013_v6  ;;  %vm10119_vm15 = vnez %v9978_v18  ;;  %v7979_v28 = vadd.f32 %v2079_v26, %v7686_v49  ;;  %v10128_v49 = vld [vmem:[#allocation282_spill] sm:$0xff]  ;;  %v10135_v57 = vld [vmem:[#allocation313_spill] sm:$0xff] }
 0x28e   :  { %10111 = vst [vmem:[#allocation302_spill] sm:$0xff] %v7955_v56  ;;  %v2082_v38 = vsel %vm10116_vm4, %v10115_v14, 0.0  ;;  %vm10121_vm9 = vcmp.lt.s32.totalorder %v5743_v46, %v7434_v0  ;;  %vm10122_vm1 = vcmp.ge.s32.totalorder %v5743_v46, %v9999_v37  ;;  %v10123_v23 = vmov 0  ;;  %v10130_v14 = vld [vmem:[#allocation281_spill] sm:$0xff] }
 0x28f   :  { %v2083_v56 = vsel %vm10119_vm15, %v10118_v16, 0.0  ;;  %10120 = vst [vmem:[#allocation303_spill] sm:$0xff] %v7979_v28  ;;  %vm7987_vm14 = vmand %vm10122_vm1, %vm10121_vm9  ;;  %v10126_v8 = vrot.slane %v6052_v29, %v10013_v6  ;;  %vm10127_vm15 = vnez %v9983_v20  ;;  %v10129_v26 = vrot.slane %v10128_v49, %v10013_v6  ;;  %v10133_v28 = vld [vmem:[#allocation283_spill] sm:$0xff] }
 0x290   :  { %v10124_v23 = vsel %vm7987_vm14, 4294967295, %v10123_v23  ;;  %v10131_v16 = vrot.slane %v10130_v14, %v10013_v6  ;;  %vm10132_vm9 = vnez %v9991_v55  ;;  %v10134_v34 = vrot.slane %v10133_v28, %v10013_v6  ;;  %v10147_v6 = vld [vmem:[#allocation271_spill] sm:$0xff]  ;;  %v10154_v28 = vld [vmem:[#allocation293_spill] sm:$0xff] }
 0x291   :  { %10125 = vst [vmem:[#allocation304_spill] sm:$0xff] %v10124_v23  ;;  %v2084_v18 = vsel %vm10127_vm15, %v10126_v8, 0.0  ;;  %v2085_v32 = vsel %vm7594_vm10, %v10129_v26, 0.0  ;;  %vm10136_vm1 = vnez %v10135_v57  ;;  %vm10137_vm15 = vcmp.lt.s32.totalorder %v5752_v63, %v7434_v0  ;;  %v10148_v57 = vld [vmem:[#allocation286_spill] sm:$0xff]  ;;  %v10150_v8 = vld [vmem:[#allocation315_spill] sm:$0xff] }
 0x292   :  { %v2086_v23 = vsel %vm10132_vm9, %v10131_v16, 0.0  ;;  %v2087_v4 = vsel %vm10136_vm1, %v10134_v34, 0.0  ;;  %vm10138_vm0 = vcmp.ge.s32.totalorder %v5752_v63, %v9999_v37  ;;  %v10139_v20 = vmov 0  ;;  %v10152_v16 = vld [vmem:[#allocation273_spill] sm:$0xff] }
 0x293   :  { %vm8021_vm4 = vmand %vm10138_vm0, %vm10137_vm15  ;;  %vm10142_vm10 = vcmp.lt.s32.totalorder %v5759_v13, %v7434_v0  ;;  %vm10143_vm9 = vcmp.ge.s32.totalorder %v5759_v13, %v9999_v37  ;;  %v10144_v48 = vmov 0  ;;  %v8040_v55 = vadd.f32 %v2080_v7, %v7712_v51 }
 0x294   :  { %v10140_v20 = vsel %vm8021_vm4, 4294967295, %v10139_v20  ;;  %vm8031_vm11 = vmand %vm10143_vm9, %vm10142_vm10  ;;  %v10149_v34 = vrot.slane %v10147_v6, %v10148_v57  ;;  %vm10151_vm0 = vnez %v10150_v8  ;;  %vm10155_vm15 = vnez %v10154_v28 }
 0x295   :  { %10141 = vst [vmem:[#allocation305_spill] sm:$0xff] %v10140_v20  ;;  %v10145_v48 = vsel %vm8031_vm11, 4294967295, %v10144_v48  ;;  %v10153_v20 = vrot.slane %v10152_v16, %v10148_v57  ;;  %v10156_v13 = vrot.slane %v10034_v45, %v10148_v57  ;;  %vm10158_vm10 = vnez %v10157_v54 }
 0x296   :  { %10146 = vst [vmem:[#allocation306_spill] sm:$0xff] %v10145_v48  ;;  %v2222_v26 = vsel %vm10151_vm0, %v10149_v34, 0.0  ;;  %vm10159_vm9 = vcmp.lt.s32.totalorder %v5755_v62, %v7434_v0  ;;  %vm10160_vm7 = vcmp.ge.s32.totalorder %v5755_v62, %v9999_v37  ;;  %v10161_v51 = vmov 0 }
 0x297   :  { %v2223_v48 = vsel %vm10155_vm15, %v10153_v20, 0.0  ;;  %v2224_v14 = vsel %vm10158_vm10, %v10156_v13, 0.0  ;;  %vm8063_vm1 = vmand %vm10160_vm7, %vm10159_vm9  ;;  %vm10164_vm0 = vcmp.lt.s32.totalorder %v5807_v59, %v7434_v0  ;;  %vm10165_vm15 = vcmp.ge.s32.totalorder %v5807_v59, %v9999_v37  ;;  %v10169_v20 = vld [vmem:[#allocation274_spill] sm:$0xff] }
 0x298   :  { %v10162_v51 = vsel %vm8063_vm1, 4294967295, %v10161_v51  ;;  %vm8073_vm11 = vmand %vm10165_vm15, %vm10164_vm0  ;;  %v10166_v28 = vmov 0  ;;  %v2097_v13 = vadd.f32 %v2081_v53, %v7715_v11  ;;  %v2098_v54 = vadd.f32 %v2082_v38, %v7718_v39 }
 0x299   :  { %10163 = vst [vmem:[#allocation272_spill] sm:$0xff] %v10162_v51  ;;  %v10167_v28 = vsel %vm8073_vm11, 4294967295, %v10166_v28  ;;  %v2099_v7 = vadd.f32 %v2083_v56, %v7751_v21  ;;  %v10170_v34 = vrot.slane %v10169_v20, %v10148_v57  ;;  %vm10172_vm7 = vcmp.lt.s32.totalorder %v5768_v61, %v7434_v0 }
 0x29a   :  { %10168 = vst [vmem:[#allocation284_spill] sm:$0xff] %v10167_v28  ;;  %vm10173_vm9 = vcmp.ge.s32.totalorder %v5768_v61, %v9999_v37  ;;  %v10174_v28 = vmov 0  ;;  %vm10176_vm15 = vcmp.lt.s32.totalorder %v5821_v58, %v7434_v0  ;;  %vm10177_vm4 = vcmp.ge.s32.totalorder %v5821_v58, %v9999_v37 }
 0x29b   :  { %v2225_v51 = vsel %vm7707_vm5, %v10170_v34, 0.0  ;;  %vm8095_vm0 = vmand %vm10173_vm9, %vm10172_vm7  ;;  %v10178_v56 = vmov 0  ;;  %v2100_v39 = vadd.f32 %v2084_v18, %v7754_v30  ;;  %v2101_v11 = vadd.f32 %v2085_v32, %v7798_v35 }
 0x29c   :  { %v10175_v28 = vsel %vm8095_vm0, 4294967295, %v10174_v28  ;;  %vm8105_vm10 = vmand %vm10177_vm4, %vm10176_vm15  ;;  %v2102_v21 = vadd.f32 %v2086_v23, %v7801_v17  ;;  %v8116_v53 = vadd.f32 %v2087_v4, %v1953_v33  ;;  %vm10180_vm4 = vcmp.lt.s32.totalorder %v5804_v10, %v7434_v0 }
 0x29d   :  { %v10179_v56 = vsel %vm8105_vm10, 4294967295, %v10178_v56  ;;  %vm10181_vm7 = vcmp.ge.s32.totalorder %v5804_v10, %v9999_v37  ;;  %v10182_v38 = vmov 0  ;;  %vm10185_vm15 = vcmp.lt.s32.totalorder %v5850_v41, %v7434_v0 }
 0x29e   :  { %vm8124_vm9 = vmand %vm10181_vm7, %vm10180_vm4  ;;  %vm10186_vm11 = vcmp.ge.s32.totalorder %v5850_v41, %v9999_v37  ;;  %v10187_v30 = vmov 0  ;;  %v10190_v17 = vrot.slane %v6034_v25, %v10148_v57  ;;  %v8148_v4 = vadd.f32 %v2222_v26, %v7804_v19 }
 0x29f   :  { %v10183_v38 = vsel %vm8124_vm9, 4294967295, %v10182_v38  ;;  %vm8134_vm5 = vmand %vm10186_vm11, %vm10185_vm15  ;;  %v8151_v23 = vadd.f32 %v2223_v48, %v7866_v43  ;;  %v8154_v18 = vadd.f32 %v2224_v14, %v7898_v31  ;;  %vm10192_vm11 = vcmp.lt.s32.totalorder %v5824_v47, %v7434_v0 }
 0x2a0   :  { %10184 = vst [vmem:[#allocation307_spill] sm:$0xff] %v10183_v38  ;;  %v10188_v30 = vsel %vm8134_vm5, 4294967295, %v10187_v30  ;;  %v2226_v33 = vsel %vm7744_vm6, %v10190_v17, 0.0  ;;  %vm10193_vm4 = vcmp.ge.s32.totalorder %v5824_v47, %v9999_v37  ;;  %v10194_v32 = vmov 0  ;;  %v10207_v17 = vld [vmem:[#allocation314_spill] sm:$0xff]  ;;  %v10225_v47 = vld [vmem:[#allocation299_spill] sm:$0xff] }
 0x2a1   :  { %10189 = vst [vmem:[#allocation308_spill] sm:$0xff] %v10188_v30  ;;  %vm8162_vm7 = vmand %vm10193_vm4, %vm10192_vm11  ;;  %vm10197_vm6 = vcmp.lt.s32.totalorder %v5853_v40, %v7434_v0  ;;  %vm10198_vm15 = vcmp.ge.s32.totalorder %v5853_v40, %v9999_v37  ;;  %v10199_v19 = vmov 0  ;;  %v10202_v43 = vrot.slane %v6039_v9, %v10148_v57  ;;  %v10251_v40 = vld [vmem:[#allocation300_spill] sm:$0xff]  ;;  %v10270_v38 = vld [vmem:[#allocation269_spill] sm:$0xff] }
 0x2a2   :  { %v10195_v32 = vsel %vm8162_vm7, 4294967295, %v10194_v32  ;;  %vm8172_vm0 = vmand %vm10198_vm15, %vm10197_vm6  ;;  %v10204_v48 = vrot.slane %v6036_v24, %v10148_v57  ;;  %v10206_v8 = vrot.slane %v10086_v50, %v10148_v57  ;;  %vm10208_vm11 = vnez %v10207_v17 }
 0x2a3   :  { %10196 = vst [vmem:[#allocation309_spill] sm:$0xff] %v10195_v32  ;;  %v10200_v19 = vsel %vm8172_vm0, 4294967295, %v10199_v19  ;;  %v2227_v14 = vsel %vm7773_vm13, %v10202_v43, 0.0  ;;  %vm10209_vm4 = vcmp.lt.s32.totalorder %v5835_v27, %v7434_v0  ;;  %vm10210_vm13 = vcmp.ge.s32.totalorder %v5835_v27, %v9999_v37 }
 0x2a4   :  { %10201 = vst [vmem:[#allocation310_spill] sm:$0xff] %v10200_v19  ;;  %v2228_v34 = vsel %vm7783_vm3, %v10204_v48, 0.0  ;;  %v2229_v35 = vsel %vm10208_vm11, %v10206_v8, 0.0  ;;  %v8196_v19 = vadd.f32 %v2225_v51, %v7901_v44  ;;  %vm8204_vm6 = vmand %vm10210_vm13, %vm10209_vm4  ;;  %v10211_v43 = vmov 0  ;;  %v8222_v51 = vpop.permute.xlu1 %2574  ;;  %v10220_v48 = vld [vmem:[#allocation316_spill] sm:$0xff] }
 0x2a5   :  { %v10212_v43 = vsel %vm8204_vm6, 4294967295, %v10211_v43  ;;  %vm10214_vm11 = vcmp.lt.s32.totalorder %v5743_v46, %v7748_v15  ;;  %vm10215_vm5 = vcmp.ge.s32.totalorder %v5743_v46, %v10096_v12  ;;  %v10216_v44 = vmov 0 }
 0x2a6   :  { %10213 = vst [vmem:[#allocation311_spill] sm:$0xff] %v10212_v43  ;;  %vm8218_vm10 = vmand %vm10215_vm5, %vm10214_vm11  ;;  %v10219_v31 = vrot.slane %v10103_v52, %v10148_v57  ;;  %vm10221_vm4 = vnez %v10220_v48  ;;  %v10222_v8 = vrot.slane %v10112_v22, %v10148_v57  ;;  %v10224_v32 = vrot.slane %v10114_v1, %v10148_v57  ;;  %v10252_v22 = vld [vmem:[#allocation270_spill] sm:$0xff] }
 0x2a7   :  { %v10217_v44 = vsel %vm8218_vm10, 4294967295, %v10216_v44  ;;  %vm10226_vm5 = vnez %v10225_v47  ;;  %v10227_v30 = vrot.slane %v10117_v3, %v10148_v57  ;;  %vm10228_vm13 = vnez %v10083_v2  ;;  %v10264_v3 = vld [vmem:[#allocation283_spill] sm:$0xff] }
 0x2a8   :  { %10218 = vst [vmem:[#allocation291_spill] sm:$0xff] %v10217_v44  ;;  %v2230_v26 = vsel %vm10221_vm4, %v10219_v31, 0.0  ;;  %v2231_v43 = vsel %vm7840_vm8, %v10222_v8, 0.0  ;;  %v2232_v44 = vsel %vm10226_vm5, %v10224_v32, 0.0  ;;  %vm10229_vm11 = vcmp.lt.s32.totalorder %v5927_v60, %v7434_v0 }
 0x2a9   :  { %v2233_v52 = vsel %vm10228_vm13, %v10227_v30, 0.0  ;;  %vm10230_vm4 = vcmp.ge.s32.totalorder %v5927_v60, %v9999_v37  ;;  %v10231_v31 = vmov 0  ;;  %vm10234_vm8 = vcmp.lt.s32.totalorder %v5905_v42, %v7434_v0  ;;  %v8278_v30 = vpop.permute.xlu0 %2555 }
 0x2aa   :  { %vm8250_vm15 = vmand %vm10230_vm4, %vm10229_vm11  ;;  %vm10235_vm5 = vcmp.ge.s32.totalorder %v5905_v42, %v9999_v37  ;;  %v10236_v47 = vmov 0  ;;  %vm10239_vm11 = vcmp.lt.s32.totalorder %v5752_v63, %v7748_v15  ;;  %vm10240_vm4 = vcmp.ge.s32.totalorder %v5752_v63, %v10096_v12 }
 0x2ab   :  { %v10232_v31 = vsel %vm8250_vm15, 4294967295, %v10231_v31  ;;  %vm8260_vm3 = vmand %vm10235_vm5, %vm10234_vm8  ;;  %v10241_v2 = vmov 0  ;;  %v10244_v32 = vrot.slane %v6052_v29, %v10148_v57  ;;  %vm10245_vm8 = vnez %v10091_v5  ;;  %v10269_v29 = vld [vmem:[#allocation303_spill] sm:$0xff] }
 0x2ac   :  { %10233 = vst [vmem:[#allocation275_spill] sm:$0xff] %v10232_v31  ;;  %v10237_v47 = vsel %vm8260_vm3, 4294967295, %v10236_v47  ;;  %vm8274_vm15 = vmand %vm10240_vm4, %vm10239_vm11  ;;  %v10246_v8 = vrot.slane %v10128_v49, %v10148_v57  ;;  %vm10247_vm5 = vnez %v10095_v36  ;;  %v2242_v1 = vadd.f32 %v2226_v33, %v10251_v40  ;;  %v10258_v36 = vld [vmem:[#allocation265_spill] sm:$0xff] }
 0x2ad   :  { %10238 = vst [vmem:[#allocation292_spill] sm:$0xff] %v10237_v47  ;;  %v10242_v2 = vsel %vm8274_vm15, 4294967295, %v10241_v2  ;;  %v2234_v48 = vsel %vm10245_vm8, %v10244_v32, 0.0  ;;  %v10248_v47 = vld [vmem:[#allocation281_spill] sm:$0xff]  ;;  %vm10253_vm11 = vcmp.lt.s32.totalorder %v10252_v22, %v7434_v0  ;;  %vm10254_vm4 = vcmp.ge.s32.totalorder %v10252_v22, %v9999_v37 }
 0x2ae   :  { %10243 = vst [vmem:[#allocation313_spill] sm:$0xff] %v10242_v2  ;;  %v2235_v17 = vsel %vm10247_vm5, %v10246_v8, 0.0  ;;  %v10249_v31 = vrot.slane %v10248_v47, %v10148_v57  ;;  %vm8302_vm8 = vmand %vm10254_vm4, %vm10253_vm11  ;;  %v10255_v5 = vmov 0  ;;  %vm10260_vm13 = vcmp.ge.s32.totalorder %v10258_v36, %v10096_v12  ;;  %v10267_v8 = vld [vmem:[#allocation285_spill] sm:$0xff]  ;;  %v10268_v47 = vld [vmem:[#allocation302_spill] sm:$0xff] }
 0x2af   :  { %v10256_v5 = vsel %vm8302_vm8, 4294967295, %v10255_v5  ;;  %v10261_v40 = vmov 0  ;;  %v10265_v33 = vrot.slane %v10264_v3, %v10148_v57  ;;  %v2244_v49 = vadd.f32 %v2228_v34, %v10268_v47 }
 0x2b0   :  { %v2236_v2 = vsel %vm7919_vm2, %v10249_v31, 0.0  ;;  %10257 = vst [vmem:[#allocation271_spill] sm:$0xff] %v10256_v5  ;;  %vm10259_vm2 = vcmp.lt.s32.totalorder %v10258_v36, %v7748_v15  ;;  %v2243_v5 = vadd.f32 %v2227_v14, %v10267_v8  ;;  %v2245_v27 = vadd.f32 %v2229_v35, %v10269_v29  ;;  %v10303_v8 = vld [vmem:[#allocation284_spill] sm:$0xff] }
 0x2b1   :  { %vm8316_vm15 = vmand %vm10260_vm13, %vm10259_vm2  ;;  %v2237_v32 = vsel %vm7947_vm12, %v10265_v33, 0.0  ;;  %vm10271_vm11 = vcmp.lt.s32.totalorder %v10270_v38, %v7434_v0  ;;  %vm10272_vm13 = vcmp.ge.s32.totalorder %v10270_v38, %v9999_v37  ;;  %vm10275_vm10 = vcmp.lt.s32.totalorder %v5755_v62, %v7748_v15  ;;  %v10321_v33 = vld [vmem:[#allocation308_spill] sm:$0xff] }
 0x2b2   :  { %v10262_v40 = vsel %vm8316_vm15, 4294967295, %v10261_v40  ;;  %vm8334_vm4 = vmand %vm10272_vm13, %vm10271_vm11  ;;  %vm10276_vm5 = vcmp.ge.s32.totalorder %v5755_v62, %v10096_v12  ;;  %v10277_v29 = vmov 0  ;;  %v2246_v37 = vadd.f32 %v2230_v26, %v8040_v55 }
 0x2b3   :  { %10263 = vst [vmem:[#allocation286_spill] sm:$0xff] %v10262_v40  ;;  %vm8348_vm15 = vmand %vm10276_vm5, %vm10275_vm10  ;;  %v2247_v0 = vadd.f32 %v2231_v43, %v2097_v13  ;;  %v2248_v57 = vadd.f32 %v2232_v44, %v2098_v54  ;;  %v2249_v14 = vadd.f32 %v2233_v52, %v2099_v7  ;;  %vm10279_vm10 = vcmp.lt.s32.totalorder %v5807_v59, %v7748_v15  ;;  %v10283_v54 = vld [vmem:[#allocation287_spill] sm:$0xff]  ;;  %v10291_v44 = vld [vmem:[#allocation305_spill] sm:$0xff] }
 0x2b4   :  { %v10278_v29 = vsel %vm8348_vm15, 4294967295, %v10277_v29  ;;  %vm10280_vm5 = vcmp.ge.s32.totalorder %v5807_v59, %v10096_v12  ;;  %v2250_v52 = vadd.f32 %v2234_v48, %v2100_v39  ;;  %v2251_v55 = vadd.f32 %v2235_v17, %v2101_v11 }
 0x2b5   :  { %vm8365_vm2 = vmand %vm10280_vm5, %vm10279_vm10  ;;  %v8373_v13 = vadd.f32 %v2236_v2, %v2102_v21  ;;  %v10284_v7 = vrot.slane %v10147_v6, %v10283_v54  ;;  %vm10286_vm5 = vcmp.lt.s32.totalorder %v5768_v61, %v7748_v15  ;;  %vm10287_vm11 = vcmp.ge.s32.totalorder %v5768_v61, %v10096_v12  ;;  %v10294_v2 = vld [vmem:[#allocation306_spill] sm:$0xff] }
 0x2b6   :  { %vm8388_vm12 = vmand %vm10287_vm11, %vm10286_vm5  ;;  %v8397_v11 = vadd.f32 %v2237_v32, %v8116_v53  ;;  %v10290_v21 = vrot.slane %v10152_v16, %v10283_v54  ;;  %v10293_v47 = vrot.slane %v10034_v45, %v10283_v54  ;;  %vm10295_vm11 = vnez %v10294_v2 }
 0x2b7   :  { %v2372_v43 = vsel %vm7987_vm14, %v10284_v7, 0.0  ;;  %vm10292_vm14 = vnez %v10291_v44  ;;  %vm10296_vm15 = vcmp.lt.s32.totalorder %v5821_v58, %v7748_v15  ;;  %vm10297_vm13 = vcmp.ge.s32.totalorder %v5821_v58, %v10096_v12 }
 0x2b8   :  { %v2373_v26 = vsel %vm10292_vm14, %v10290_v21, 0.0  ;;  %v2374_v48 = vsel %vm10295_vm11, %v10293_v47, 0.0  ;;  %v2388_v17 = vadd.f32 %v2372_v43, %v8148_v4  ;;  %vm8418_vm10 = vmand %vm10297_vm13, %vm10296_vm15  ;;  %v10300_v4 = vrot.slane %v10169_v20, %v10283_v54 }
 0x2b9   :  { %v10302_v32 = vrot.slane %v6034_v25, %v10283_v54  ;;  %vm10304_vm15 = vnez %v10303_v8  ;;  %v2389_v35 = vadd.f32 %v2373_v26, %v8151_v23  ;;  %v8438_v43 = vadd.f32 %v2374_v48, %v8154_v18  ;;  %v10319_v48 = vld [vmem:[#allocation276_spill] sm:$0xff] }
 0x2ba   :  { %v2375_v31 = vsel %vm8063_vm1, %v10300_v4, 0.0  ;;  %vm10305_vm13 = vcmp.lt.s32.totalorder %v5804_v10, %v7748_v15  ;;  %vm10306_vm14 = vcmp.ge.s32.totalorder %v5804_v10, %v10096_v12  ;;  %v10309_v23 = vrot.slane %v6039_v9, %v10283_v54 }
 0x2bb   :  { %v2376_v7 = vsel %vm10304_vm15, %v10302_v32, 0.0  ;;  %vm8446_vm11 = vmand %vm10306_vm14, %vm10305_vm13  ;;  %vm10310_vm5 = vnez %v10175_v28  ;;  %v10311_v44 = vrot.slane %v6036_v24, %v10283_v54  ;;  %vm10312_vm14 = vnez %v10179_v56 }
 0x2bc   :  { %v2377_v18 = vsel %vm10310_vm5, %v10309_v23, 0.0  ;;  %v8465_v47 = vadd.f32 %v2375_v31, %v8196_v19  ;;  %v8467_v2 = vadd.f32 %v2376_v7, %v2242_v1  ;;  %vm10313_vm13 = vcmp.lt.s32.totalorder %v5850_v41, %v7748_v15  ;;  %v10324_v7 = vld [vmem:[#allocation266_spill] sm:$0xff] }
 0x2bd   :  { %v2378_v26 = vsel %vm10312_vm14, %v10311_v44, 0.0  ;;  %vm10314_vm1 = vcmp.ge.s32.totalorder %v5850_v41, %v10096_v12  ;;  %v10317_v1 = vrot.slane %v10086_v50, %v10283_v54  ;;  %v10320_v4 = vrot.slane %v10319_v48, %v10283_v54 }
 0x2be   :  { %vm8475_vm15 = vmand %vm10314_vm1, %vm10313_vm13  ;;  %vm10322_vm1 = vnez %v10321_v33  ;;  %v8493_v32 = vadd.f32 %v2377_v18, %v2243_v5  ;;  %v8495_v8 = vadd.f32 %v2378_v26, %v2244_v49  ;;  %vm10325_vm13 = vcmp.lt.s32.totalorder %v10324_v7, %v7748_v15  ;;  %v10330_v5 = vld [vmem:[#allocation278_spill] sm:$0xff]  ;;  %v10333_v26 = vld [vmem:[#allocation277_spill] sm:$0xff] }
 0x2bf   :  { %v2379_v19 = vsel %vm8124_vm9, %v10317_v1, 0.0  ;;  %v2380_v31 = vsel %vm10322_vm1, %v10320_v4, 0.0  ;;  %vm10326_vm5 = vcmp.ge.s32.totalorder %v10324_v7, %v10096_v12  ;;  %v10327_v23 = vmov 0 }
 0x2c0   :  { %10323 = vst [vmem:[#allocation315_spill] sm:$0xff] %v8495_v8  ;;  %vm8503_vm14 = vmand %vm10326_vm5, %vm10325_vm13  ;;  %v10331_v49 = vrot.slane %v10330_v5, %v10283_v54  ;;  %v10334_v1 = vrot.slane %v10333_v26, %v10283_v54  ;;  %v8521_v33 = vadd.f32 %v2379_v19, %v2245_v27  ;;  %v8523_v8 = vadd.f32 %v2380_v31, %v2246_v37  ;;  %v10343_v27 = vld [vmem:[#allocation279_spill] sm:$0xff]  ;;  %v10362_v19 = vld [vmem:[#allocation282_spill] sm:$0xff] }
 0x2c1   :  { %v10328_v23 = vsel %vm8503_vm14, 4294967295, %v10327_v23  ;;  %v10344_v37 = vrot.slane %v10343_v27, %v10283_v54  ;;  %v10351_v56 = vmov 0  ;;  %vm10391_vm1 = vcmp.lt.s32.totalorder %v5743_v46, %v8222_v51  ;;  %v10464_v5 = vld [vmem:[#allocation25_spill] sm:$0xff] }
 0x2c2   :  { %10329 = vst [vmem:[#allocation273_spill] sm:$0xff] %v10328_v23  ;;  %v2381_v44 = vsel %vm8162_vm7, %v10331_v49, 0.0  ;;  %v2382_v4 = vsel %vm8172_vm0, %v10334_v1, 0.0  ;;  %10336 = vst [vmem:[#allocation293_spill] sm:$0xff] %v8521_v33  ;;  %v10338_v23 = vld [vmem:[#allocation268_spill] sm:$0xff]  ;;  %v10348_v1 = vld [vmem:[#allocation267_spill] sm:$0xff] }
 0x2c3   :  { %10337 = vst [vmem:[#allocation294_spill] sm:$0xff] %v8523_v8  ;;  %vm10339_vm5 = vcmp.lt.s32.totalorder %v10338_v23, %v7748_v15  ;;  %vm10340_vm13 = vcmp.ge.s32.totalorder %v10338_v23, %v10096_v12  ;;  %v2383_v31 = vsel %vm8204_vm6, %v10344_v37, 0.0  ;;  %v8544_v49 = vadd.f32 %v2381_v44, %v2247_v0  ;;  %v10354_v8 = vld [vmem:[#allocation288_spill] sm:$0xff]  ;;  %v10356_v33 = vld [vmem:[#allocation291_spill] sm:$0xff] }
 0x2c4   :  { %vm8531_vm9 = vmand %vm10340_vm13, %vm10339_vm5  ;;  %v8546_v18 = vadd.f32 %v2382_v4, %v2248_v57  ;;  %vm10349_vm5 = vcmp.lt.s32.totalorder %v10348_v1, %v7748_v15  ;;  %vm10350_vm13 = vcmp.ge.s32.totalorder %v10348_v1, %v10096_v12  ;;  %v10355_v27 = vrot.slane %v10147_v6, %v10354_v8  ;;  %v10358_v0 = vld [vmem:[#allocation280_spill] sm:$0xff]  ;;  %v10360_v44 = vld [vmem:[#allocation275_spill] sm:$0xff] }
 0x2c5   :  { %10346 = vst [vmem:[#allocation274_spill] sm:$0xff] %v8544_v49  ;;  %vm8554_vm7 = vmand %vm10350_vm13, %vm10349_vm5  ;;  %vm10357_vm0 = vnez %v10356_v33  ;;  %v10359_v57 = vrot.slane %v10358_v0, %v10283_v54  ;;  %vm10361_vm5 = vnez %v10360_v44  ;;  %v8577_v33 = vadd.f32 %v2383_v31, %v2249_v14  ;;  %v10372_v44 = vld [vmem:[#allocation313_spill] sm:$0xff] }
 0x2c6   :  { %10347 = vst [vmem:[#allocation295_spill] sm:$0xff] %v8546_v18  ;;  %v10352_v56 = vsel %vm8554_vm7, 4294967295, %v10351_v56  ;;  %v2522_v37 = vsel %vm10357_vm0, %v10355_v27, 0.0  ;;  %v10363_v18 = vrot.slane %v10362_v19, %v10283_v54  ;;  %vm10366_vm0 = vcmp.lt.s32.totalorder %v5927_v60, %v7748_v15  ;;  %v10374_v14 = vld [vmem:[#allocation281_spill] sm:$0xff] }
 0x2c7   :  { %10353 = vst [vmem:[#allocation296_spill] sm:$0xff] %v10352_v56  ;;  %v2384_v4 = vsel %vm10361_vm5, %v10359_v57, 0.0  ;;  %10365 = vst [vmem:[#allocation297_spill] sm:$0xff] %v8577_v33  ;;  %vm10367_vm13 = vcmp.ge.s32.totalorder %v5927_v60, %v10096_v12  ;;  %v10368_v27 = vmov 0  ;;  %v10371_v57 = vrot.slane %v10152_v16, %v10354_v8 }
 0x2c8   :  { %v2385_v56 = vsel %vm8260_vm3, %v10363_v18, 0.0  ;;  %vm8585_vm6 = vmand %vm10367_vm13, %vm10366_vm0  ;;  %vm10373_vm5 = vnez %v10372_v44  ;;  %v10375_v31 = vrot.slane %v10374_v14, %v10283_v54  ;;  %v8603_v33 = vadd.f32 %v2384_v4, %v2250_v52  ;;  %v10382_v14 = vld [vmem:[#allocation286_spill] sm:$0xff] }
 0x2c9   :  { %v10369_v27 = vsel %vm8585_vm6, 4294967295, %v10368_v27  ;;  %v2523_v19 = vsel %vm10373_vm5, %v10371_v57, 0.0  ;;  %vm10377_vm0 = vcmp.lt.s32.totalorder %v5905_v42, %v7748_v15  ;;  %vm10378_vm13 = vcmp.ge.s32.totalorder %v5905_v42, %v10096_v12 }
 0x2ca   :  { %10370 = vst [vmem:[#allocation312_spill] sm:$0xff] %v10369_v27  ;;  %v2386_v18 = vsel %vm8302_vm8, %v10375_v31, 0.0  ;;  %v8605_v27 = vadd.f32 %v2385_v56, %v2251_v55  ;;  %vm8613_vm5 = vmand %vm10378_vm13, %vm10377_vm0  ;;  %v10379_v57 = vmov 0  ;;  %v10381_v44 = vrot.slane %v10034_v45, %v10354_v8 }
 0x2cb   :  { %v10380_v57 = vsel %vm8613_vm5, 4294967295, %v10379_v57  ;;  %vm10383_vm3 = vnez %v10382_v14  ;;  %v10384_v52 = vrot.slane %v10264_v3, %v10283_v54  ;;  %v8632_v56 = vadd.f32 %v2386_v18, %v8373_v13 }
 0x2cc   :  { %v2524_v31 = vsel %vm10383_vm3, %v10381_v44, 0.0  ;;  %vm10385_vm0 = vcmp.lt.s32.totalorder %v10252_v22, %v7748_v15  ;;  %vm10386_vm3 = vcmp.ge.s32.totalorder %v10252_v22, %v10096_v12  ;;  %v10387_v4 = vmov 0 }
 0x2cd   :  { %v2387_v55 = vsel %vm8334_vm4, %v10384_v52, 0.0  ;;  %vm8640_vm13 = vmand %vm10386_vm3, %vm10385_vm0  ;;  %v10389_v14 = vrot.slane %v10169_v20, %v10354_v8  ;;  %vm10390_vm8 = vnez %v10278_v29  ;;  %v2538_v54 = vadd.f32 %v2522_v37, %v2388_v17 }
 0x2ce   :  { %v10388_v4 = vsel %vm8640_vm13, 4294967295, %v10387_v4  ;;  %vm10392_vm5 = vcmp.ge.s32.totalorder %v5743_v46, %v8278_v30  ;;  %v8660_v13 = vadd.f32 %v2387_v55, %v8397_v11  ;;  %vm10394_vm13 = vcmp.ge.s32.totalorder %v10270_v38, %v10096_v12 }
 0x2cf   :  { %v2525_v40 = vsel %vm10390_vm8, %v10389_v14, 0.0  ;;  %vm2592_vm0 = vmand %vm10392_vm5, %vm10391_vm1  ;;  %vm10393_vm8 = vcmp.lt.s32.totalorder %v10270_v38, %v7748_v15  ;;  %v10397_v46 = vrot.slane %v6034_v25, %v10354_v8  ;;  %v2539_v37 = vadd.f32 %v2523_v19, %v2389_v35  ;;  %v10400_v15 = vld [vmem:[#allocation289_spill] sm:$0xff] }
 0x2d0   :  { %vm8668_vm4 = vmand %vm10394_vm13, %vm10393_vm8  ;;  %vm2588_vm1 = vcmp.lt.s32.totalorder %v5927_v60, %v8222_v51  ;;  %vm10398_vm5 = vcmp.lt.s32.totalorder %v5752_v63, %v8222_v51  ;;  %vm10399_vm3 = vcmp.ge.s32.totalorder %v5752_v63, %v8278_v30  ;;  %v10401_v12 = vrot.slane %v10147_v6, %v10400_v15 }
 0x2d1   :  { %v2526_v17 = vsel %vm8365_vm2, %v10397_v46, 0.0  ;;  %vm2593_vm13 = vmand %vm10399_vm3, %vm10398_vm5  ;;  %vm2568_vm8 = vcmp.ge.s32.totalorder %v10348_v1, %v8278_v30  ;;  %v10402_v34 = vrot.slane %v6039_v9, %v10354_v8  ;;  %v2540_v19 = vadd.f32 %v2524_v31, %v8438_v43  ;;  %v10450_v46 = vld [vmem:[#allocation281_spill] sm:$0xff] }
 0x2d2   :  { %v2672_v11 = vsel %vm2592_vm0, %v10401_v12, 0.0  ;;  %vm10403_vm3 = vcmp.lt.s32.totalorder %v10258_v36, %v8222_v51  ;;  %vm10404_vm0 = vcmp.ge.s32.totalorder %v10258_v36, %v8278_v30  ;;  %v10405_v63 = vrot.slane %v10152_v16, %v10400_v15 }
 0x2d3   :  { %v2527_v35 = vsel %vm8388_vm12, %v10402_v34, 0.0  ;;  %vm2594_vm5 = vmand %vm10404_vm0, %vm10403_vm3  ;;  %v8707_v49 = vadd.f32 %v2672_v11, %v2538_v54  ;;  %vm2569_vm12 = vcmp.ge.s32.totalorder %v5927_v60, %v8278_v30  ;;  %v10406_v39 = vrot.slane %v6036_v24, %v10354_v8  ;;  %v10426_v34 = vld [vmem:[#allocation293_spill] sm:$0xff] }
 0x2d4   :  { %v2673_v6 = vsel %vm2593_vm13, %v10405_v63, 0.0  ;;  %v2541_v18 = vadd.f32 %v2525_v40, %v8465_v47  ;;  %vm10407_vm0 = vcmp.lt.s32.totalorder %v5755_v62, %v8222_v51  ;;  %vm10408_vm13 = vcmp.ge.s32.totalorder %v5755_v62, %v8278_v30  ;;  %v10418_v40 = vld [vmem:[#allocation278_spill] sm:$0xff]  ;;  %v10430_v63 = vld [vmem:[#allocation279_spill] sm:$0xff] }
 0x2d5   :  { %v2528_v43 = vsel %vm8418_vm10, %v10406_v39, 0.0  ;;  %vm2595_vm2 = vmand %vm10408_vm13, %vm10407_vm0  ;;  %v10409_v16 = vrot.slane %v10034_v45, %v10400_v15  ;;  %v8728_v44 = vadd.f32 %v2673_v6, %v2539_v37  ;;  %vm2570_vm10 = vcmp.ge.s32.totalorder %v5905_v42, %v8278_v30 }
 0x2d6   :  { %v10410_v53 = vrot.slane %v10086_v50, %v10354_v8  ;;  %v2542_v31 = vadd.f32 %v2526_v17, %v8467_v2  ;;  %vm2591_vm0 = vcmp.lt.s32.totalorder %v10270_v38, %v8222_v51  ;;  %vm10411_vm13 = vcmp.lt.s32.totalorder %v5807_v59, %v8222_v51  ;;  %v10421_v17 = vld [vmem:[#allocation315_spill] sm:$0xff] }
 0x2d7   :  { %v2674_v36 = vsel %vm2594_vm5, %v10409_v16, 0.0  ;;  %vm10412_vm5 = vcmp.ge.s32.totalorder %v5807_v59, %v8278_v30  ;;  %v10413_v62 = vrot.slane %v10169_v20, %v10400_v15  ;;  %v10414_v21 = vrot.slane %v10319_v48, %v10354_v8  ;;  %3034 = vmatprep.mubr.f32.mxu0 %v8728_v44 }
 0x2d8   :  { %v2529_v47 = vsel %vm8446_vm11, %v10410_v53, 0.0  ;;  %vm2596_vm3 = vmand %vm10412_vm5, %vm10411_vm13  ;;  %v8749_v52 = vadd.f32 %v2674_v36, %v2540_v19  ;;  %v2543_v55 = vadd.f32 %v2527_v35, %v8493_v32  ;;  %vm10415_vm11 = vcmp.lt.s32.totalorder %v5768_v61, %v8222_v51  ;;  %v10471_v53 = vld [vmem:[#allocation42_spill] sm:$0xff] }
 0x2d9   :  { %v2675_v45 = vsel %vm2595_vm2, %v10413_v62, 0.0  ;;  %v2530_v2 = vsel %vm8475_vm15, %v10414_v21, 0.0  ;;  %vm10416_vm13 = vcmp.ge.s32.totalorder %v5768_v61, %v8278_v30  ;;  %v10417_v59 = vrot.slane %v6034_v25, %v10400_v15  ;;  %v10443_v21 = vld [vmem:[#allocation282_spill] sm:$0xff] }
 0x2da   :  { %vm2597_vm5 = vmand %vm10416_vm13, %vm10415_vm11  ;;  %v2691_v14 = vadd.f32 %v2675_v45, %v2541_v18  ;;  %v10419_v54 = vrot.slane %v10418_v40, %v10354_v8  ;;  %v2544_v32 = vadd.f32 %v2528_v43, %v10421_v17  ;;  %vm10422_vm15 = vcmp.lt.s32.totalorder %v5821_v58, %v8222_v51  ;;  %v10433_v43 = vld [vmem:[#allocation294_spill] sm:$0xff]  ;;  %v10453_v17 = vld [vmem:[#allocation297_spill] sm:$0xff] }
 0x2db   :  { %v2676_v20 = vsel %vm2596_vm3, %v10417_v59, 0.0  ;;  %vm10423_vm2 = vcmp.ge.s32.totalorder %v5821_v58, %v8278_v30  ;;  %v10424_v61 = vrot.slane %v6039_v9, %v10400_v15  ;;  %v10425_v12 = vrot.slane %v10333_v26, %v10354_v8  ;;  %v10446_v59 = vld [vmem:[#allocation295_spill] sm:$0xff] }
 0x2dc   :  { %v2531_v28 = vsel %vm8503_vm14, %v10419_v54, 0.0  ;;  %vm2598_vm11 = vmand %vm10423_vm2, %vm10422_vm15  ;;  %v8781_v37 = vadd.f32 %v2676_v20, %v2542_v31  ;;  %v2545_v35 = vadd.f32 %v2529_v47, %v10426_v34  ;;  %vm10427_vm14 = vcmp.lt.s32.totalorder %v5804_v10, %v8222_v51  ;;  %v10439_v31 = vld [vmem:[#allocation274_spill] sm:$0xff] }
 0x2dd   :  { %v2677_v25 = vsel %vm2597_vm5, %v10424_v61, 0.0  ;;  %v2532_v11 = vsel %vm8531_vm9, %v10425_v12, 0.0  ;;  %vm10428_vm3 = vcmp.ge.s32.totalorder %v5804_v10, %v8278_v30  ;;  %v10429_v58 = vrot.slane %v6036_v24, %v10400_v15 }
 0x2de   :  { %vm2599_vm13 = vmand %vm10428_vm3, %vm10427_vm14  ;;  %v8798_v19 = vadd.f32 %v2677_v25, %v2543_v55  ;;  %v10431_v6 = vrot.slane %v10430_v63, %v10354_v8  ;;  %v2546_v18 = vadd.f32 %v2530_v2, %v10433_v43  ;;  %vm10434_vm9 = vcmp.lt.s32.totalorder %v5850_v41, %v8222_v51  ;;  %v10466_v43 = vld [vmem:[#allocation9_spill] sm:$0xff] }
 0x2df   :  { %v2678_v9 = vsel %vm2598_vm11, %v10429_v58, 0.0  ;;  %vm10435_vm5 = vcmp.ge.s32.totalorder %v5850_v41, %v8278_v30  ;;  %v10436_v10 = vrot.slane %v10086_v50, %v10400_v15  ;;  %v10437_v36 = vrot.slane %v10358_v0, %v10354_v8 }
 0x2e0   :  { %v2533_v39 = vsel %vm8554_vm7, %v10431_v6, 0.0  ;;  %vm2600_vm15 = vmand %vm10435_vm5, %vm10434_vm9  ;;  %v8815_v16 = vadd.f32 %v2678_v9, %v2544_v32  ;;  %v2547_v62 = vadd.f32 %v2531_v28, %v10439_v31  ;;  %vm10440_vm7 = vcmp.lt.s32.totalorder %v10324_v7, %v8222_v51 }
 0x2e1   :  { %v2679_v24 = vsel %vm2599_vm13, %v10436_v10, 0.0  ;;  %v2534_v47 = vsel %vm8585_vm6, %v10437_v36, 0.0  ;;  %vm10441_vm2 = vcmp.ge.s32.totalorder %v10324_v7, %v8278_v30  ;;  %v10442_v41 = vrot.slane %v10319_v48, %v10400_v15  ;;  %v10469_v10 = vld [vmem:[#allocation58_spill] sm:$0xff]  ;;  %v10470_v36 = vld [vmem:[#allocation41_spill] sm:$0xff] }
 0x2e2   :  { %vm2601_vm11 = vmand %vm10441_vm2, %vm10440_vm7  ;;  %v8832_v45 = vadd.f32 %v2679_v24, %v2545_v35  ;;  %v10444_v2 = vrot.slane %v10443_v21, %v10354_v8  ;;  %vm10445_vm6 = vnez %v10380_v57  ;;  %v2548_v20 = vadd.f32 %v2532_v11, %v10446_v59 }
 0x2e3   :  { %v2680_v50 = vsel %vm2600_vm15, %v10442_v41, 0.0  ;;  %vm10447_vm14 = vcmp.lt.s32.totalorder %v10338_v23, %v8222_v51  ;;  %vm10448_vm3 = vcmp.ge.s32.totalorder %v10338_v23, %v8278_v30  ;;  %v10449_v48 = vrot.slane %v10418_v40, %v10400_v15 }
 0x2e4   :  { %v2535_v55 = vsel %vm10445_vm6, %v10444_v2, 0.0  ;;  %vm2602_vm13 = vmand %vm10448_vm3, %vm10447_vm14  ;;  %v8849_v54 = vadd.f32 %v2680_v50, %v2546_v18  ;;  %v10451_v28 = vrot.slane %v10450_v46, %v10354_v8  ;;  %vm10452_vm9 = vnez %v10388_v4  ;;  %v10468_v18 = vld [vmem:[#allocation57_spill] sm:$0xff] }
 0x2e5   :  { %v2681_v7 = vsel %vm2601_vm11, %v10449_v48, 0.0  ;;  %v2549_v32 = vadd.f32 %v2533_v39, %v10453_v17  ;;  %vm10454_vm5 = vcmp.lt.s32.totalorder %v10348_v1, %v8222_v51  ;;  %v10455_v23 = vrot.slane %v10333_v26, %v10400_v15 }
 0x2e6   :  { %v2536_v57 = vsel %vm10452_vm9, %v10451_v28, 0.0  ;;  %vm2603_vm15 = vmand %vm2568_vm8, %vm10454_vm5  ;;  %v8866_v61 = vadd.f32 %v2681_v7, %v2547_v62  ;;  %v10456_v25 = vrot.slane %v10264_v3, %v10354_v8  ;;  %v2550_v12 = vadd.f32 %v2534_v47, %v8603_v33 }
 0x2e7   :  { %v2682_v40 = vsel %vm2602_vm13, %v10455_v23, 0.0  ;;  %vm2604_vm8 = vmand %vm2569_vm12, %vm2588_vm1  ;;  %v10457_v26 = vrot.slane %v10430_v63, %v10400_v15  ;;  %vm2571_vm7 = vcmp.ge.s32.totalorder %v10252_v22, %v8278_v30  ;;  %v2551_v8 = vadd.f32 %v2535_v55, %v8605_v27 }
 0x2e8   :  { %v2537_v4 = vsel %vm8668_vm4, %v10456_v25, 0.0  ;;  %v8883_v11 = vadd.f32 %v2682_v40, %v2548_v20  ;;  %vm10458_vm4 = vcmp.lt.s32.totalorder %v5905_v42, %v8222_v51  ;;  %v10459_v60 = vrot.slane %v10358_v0, %v10400_v15 }
 0x2e9   :  { %v2683_v1 = vsel %vm2603_vm15, %v10457_v26, 0.0  ;;  %vm2605_vm2 = vmand %vm2570_vm10, %vm10458_vm4  ;;  %vm2572_vm1 = vcmp.ge.s32.totalorder %v10270_v38, %v8278_v30  ;;  %v2552_v34 = vadd.f32 %v2536_v57, %v8632_v56  ;;  %vm10460_vm12 = vcmp.lt.s32.totalorder %v10252_v22, %v8222_v51  ;;  %v10467_v38 = vld [vmem:[#allocation10_spill] sm:$0xff] }
 0x2ea   :  { %v2684_v33 = vsel %vm2604_vm8, %v10459_v60, 0.0  ;;  %v8897_v29 = vadd.f32 %v2683_v1, %v2549_v32  ;;  %vm2606_vm11 = vmand %vm2571_vm7, %vm10460_vm12  ;;  %v10461_v27 = vrot.slane %v10443_v21, %v10400_v15  ;;  %v2553_v0 = vadd.f32 %v2537_v4, %v8660_v13  ;;  %v10465_v13 = vld [vmem:[#allocation26_spill] sm:$0xff] }
 0x2eb   :  { %v8908_v35 = vadd.f32 %v2684_v33, %v2550_v12  ;;  %vm2607_vm10 = vmand %vm2572_vm1, %vm2591_vm0  ;;  %v10462_v30 = vrot.slane %v10450_v46, %v10400_v15  ;;  %v10463_v22 = vrot.slane %v10264_v3, %v10400_v15  ;;  %v4083_v39 = vpack.c.bf16 %v10465_v13, %v10464_v5 }
 0x2ec   :  { %v2685_v42 = vsel %vm2605_vm2, %v10461_v27, 0.0  ;;  %v4085_v51 = vpack.c.bf16 %v10467_v38, %v10466_v43  ;;  %v4115_v24 = vpack.c.bf16 %v10469_v10, %v10468_v18  ;;  %v4117_v47 = vpack.c.bf16 %v10471_v53, %v10470_v36 }
 0x2ed   :  { %v2686_v56 = vsel %vm2606_vm11, %v10462_v30, 0.0  ;;  %v8917_v58 = vadd.f32 %v2685_v42, %v2551_v8  ;;  %v2687_v9 = vsel %vm2607_vm10, %v10463_v22, 0.0 }
 0x2ee   :  { %v8922_v63 = vadd.f32 %v2686_v56, %v2552_v34  ;;  %v8924_v6 = vadd.f32 %v2687_v9, %v2553_v0 }
 0x2ef   :  { %4396 = dma.done.wait [#allocation3], 32768 }
 0x2f0   :  { %4397 = vsyncadd [#allocation3], 4294934528  ;;  %v10472_v3 = vld [vmem:[#allocation27_spill] sm:$0xff]  ;;  %v10473_v15 = vld [vmem:[#allocation28_spill] sm:$0xff]  ;;  %3104 = vmatprep.mubr.f32.mxu1 %v2691_v14  ;;  %4084 = vmatprep.subr.bf16.mxu0 %v4083_v39  ;;  %vm10720_vm0 = vcmask 261120   ;;  %s4411_s15 = smov [#allocation4]  }
 0x2f1   :  { %v4087_v31 = vpack.c.bf16 %v10473_v15, %v10472_v3  ;;  %v10474_v62 = vld [vmem:[#allocation59_spill] sm:$0xff]  ;;  %v10475_v41 = vld [vmem:[#allocation60_spill] sm:$0xff]  ;;  %4116 = vmatprep.subr.bf16.mxu1 %v4115_v24  ;;  %4086 = vmatpush3.bf16.msra.mxu0 %v4085_v51  ;;  %v10480_v44 = vld [vmem:[#allocation29_spill] sm:$0xff]  ;;  %s3576_s16 = sshll.u32 %s4411_s15, 4  ;;  %s3577_s16 = int_to_ptr.vmem [resolvable:$true] %s3576_s16 }
 0x2f2   :  { %v4119_v50 = vpack.c.bf16 %v10475_v41, %v10474_v62  ;;  %4118 = vmatpush3.bf16.msra.mxu1 %v4117_v47  ;;  %v10476_v21 = vld [vmem:[#allocation11_spill] sm:$0xff]  ;;  %v10477_v2 = vld [vmem:[#allocation12_spill] sm:$0xff]  ;;  %v10481_v7 = vld [vmem:[#allocation30_spill] sm:$0xff]  ;;  %s4374_s17 = scalar_lea.vmem %s3577_s16, 128  ;;  %p4379_p1 = scmp.lt.s32.totalorder %s3577_s16, %s3577_s16 }
 0x2f3   :  { %v4089_v55 = vpack.c.bf16 %v10477_v2, %v10476_v21  ;;  %v10478_v59 = vld [vmem:[#allocation43_spill] sm:$0xff]  ;;  %v10479_v20 = vld [vmem:[#allocation44_spill] sm:$0xff]  ;;  %4088 = vmatprep.subr.bf16.mxu0 %v4087_v31  ;;  %v4091_v46 = vpack.c.bf16 %v10481_v7, %v10480_v44  ;;  %v10482_v28 = vld [vmem:[#allocation61_spill] sm:$0xff]  ;;  %p4375_p0 = scmp.ne.s32.totalorder %s3577_s16, %s4374_s17  ;;  %p4380_p2 = scmp.lt.s32.totalorder %s4374_s17, %s4374_s17 }
 0x2f4   :  { %v4121_v48 = vpack.c.bf16 %v10479_v20, %v10478_v59  ;;  %4120 = vmatprep.subr.bf16.mxu1 %v4119_v50  ;;  %v10483_v57 = vld [vmem:[#allocation62_spill] sm:$0xff]  ;;  %v10484_v14 = vld [vmem:[#allocation13_spill] sm:$0xff]  ;;  %v10488_v12 = vld [vmem:[#allocation31_spill] sm:$0xff] }
 0x2f5   :  { %v4123_v17 = vpack.c.bf16 %v10483_v57, %v10482_v28  ;;  %4090 = vmatpush3.bf16.msra.mxu0 %v4089_v55  ;;  %v10485_v32 = vld [vmem:[#allocation14_spill] sm:$0xff]  ;;  %v10486_v40 = vld [vmem:[#allocation45_spill] sm:$0xff]  ;;  %v10489_v26 = vld [vmem:[#allocation32_spill] sm:$0xff]  ;;  %p4381_p3 = por %p4380_p2, %p4379_p1 }
 0x2f6   :  { %4122 = vmatpush3.bf16.msra.mxu1 %v4121_v48  ;;  %v4093_v23 = vpack.c.bf16 %v10485_v32, %v10484_v14  ;;  %v10487_v25 = vld [vmem:[#allocation46_spill] sm:$0xff]  ;;  %4092 = vmatprep.subr.bf16.mxu0 %v4091_v46  ;;  %v4095_v1 = vpack.c.bf16 %v10489_v26, %v10488_v12  ;;  %v10490_v8 = vld [vmem:[#allocation63_spill] sm:$0xff]  ;;  %v10491_v60 = vld [vmem:[#allocation64_spill] sm:$0xff] }
 0x2f7   :  { %v4125_v4 = vpack.c.bf16 %v10487_v25, %v10486_v40  ;;  %4124 = vmatprep.subr.bf16.mxu1 %v4123_v17  ;;  %v4127_v33 = vpack.c.bf16 %v10491_v60, %v10490_v8  ;;  %v10492_v34 = vld [vmem:[#allocation15_spill] sm:$0xff]  ;;  %v10493_v27 = vld [vmem:[#allocation16_spill] sm:$0xff]  ;;  %v10496_v22 = vld [vmem:[#allocation33_spill] sm:$0xff]  ;;  %p4382_p4 = pnand %p4381_p3, %p4375_p0 }
 0x2f8   :  { %v4097_v42 = vpack.c.bf16 %v10493_v27, %v10492_v34  ;;  %v10494_v0 = vld [vmem:[#allocation47_spill] sm:$0xff]  ;;  %v10495_v30 = vld [vmem:[#allocation48_spill] sm:$0xff]  ;;  %v10497_v9 = vld [vmem:[#allocation34_spill] sm:$0xff] }
 0x2f9   :  { %4094 = vmatpush3.bf16.msra.mxu0 %v4093_v23  ;;  %v4129_v56 = vpack.c.bf16 %v10495_v30, %v10494_v0  ;;  %v4099_v5 = vpack.c.bf16 %v10497_v9, %v10496_v22  ;;  %v10498_v13 = vld [vmem:[#allocation65_spill] sm:$0xff]  ;;  %v10499_v39 = vld [vmem:[#allocation66_spill] sm:$0xff]  ;;  %v10504_v53 = vld [vmem:[#allocation35_spill] sm:$0xff] }
 0x2fa   :  { %4126 = vmatpush3.bf16.msra.mxu1 %v4125_v4  ;;  %4096 = vmatprep.subr.bf16.mxu0 %v4095_v1  ;;  %v4131_v43 = vpack.c.bf16 %v10499_v39, %v10498_v13  ;;  %v10500_v38 = vld [vmem:[#allocation17_spill] sm:$0xff]  ;;  %v10501_v51 = vld [vmem:[#allocation18_spill] sm:$0xff]  ;;  %v10505_v47 = vld [vmem:[#allocation36_spill] sm:$0xff] }
 0x2fb   :  { %4128 = vmatprep.subr.bf16.mxu1 %v4127_v33  ;;  %v4101_v18 = vpack.c.bf16 %v10501_v51, %v10500_v38  ;;  %v10502_v10 = vld [vmem:[#allocation49_spill] sm:$0xff]  ;;  %v10503_v24 = vld [vmem:[#allocation50_spill] sm:$0xff]  ;;  %v4103_v3 = vpack.c.bf16 %v10505_v47, %v10504_v53  ;;  %v10506_v15 = vld [vmem:[#allocation67_spill] sm:$0xff] }
 0x2fc   :  { %v4133_v36 = vpack.c.bf16 %v10503_v24, %v10502_v10  ;;  %v10507_v31 = vld [vmem:[#allocation68_spill] sm:$0xff]  ;;  %v10508_v41 = vld [vmem:[#allocation19_spill] sm:$0xff]  ;;  %v10512_v20 = vld [vmem:[#allocation37_spill] sm:$0xff] }
 0x2fd   :  { %4098 = vmatpush3.bf16.msra.mxu0 %v4097_v42  ;;  %v4135_v62 = vpack.c.bf16 %v10507_v31, %v10506_v15  ;;  %v10509_v50 = vld [vmem:[#allocation20_spill] sm:$0xff]  ;;  %v10510_v2 = vld [vmem:[#allocation51_spill] sm:$0xff]  ;;  %v10513_v48 = vld [vmem:[#allocation38_spill] sm:$0xff] }
 0x2fe   :  { %4130 = vmatpush3.bf16.msra.mxu1 %v4129_v56  ;;  %4100 = vmatprep.subr.bf16.mxu0 %v4099_v5  ;;  %v4105_v21 = vpack.c.bf16 %v10509_v50, %v10508_v41  ;;  %v10511_v55 = vld [vmem:[#allocation52_spill] sm:$0xff]  ;;  %v4107_v44 = vpack.c.bf16 %v10513_v48, %v10512_v20  ;;  %v10514_v7 = vld [vmem:[#allocation69_spill] sm:$0xff]  ;;  %v10515_v46 = vld [vmem:[#allocation70_spill] sm:$0xff] }
 0x2ff   :  { %4132 = vmatprep.subr.bf16.mxu1 %v4131_v43  ;;  %v4137_v59 = vpack.c.bf16 %v10511_v55, %v10510_v2  ;;  %v4139_v28 = vpack.c.bf16 %v10515_v46, %v10514_v7  ;;  %v10516_v57 = vld [vmem:[#allocation21_spill] sm:$0xff]  ;;  %v10517_v17 = vld [vmem:[#allocation22_spill] sm:$0xff]  ;;  %v10520_v25 = vld [vmem:[#allocation39_spill] sm:$0xff] }
 0x300   :  { %v4109_v14 = vpack.c.bf16 %v10517_v17, %v10516_v57  ;;  %v10518_v32 = vld [vmem:[#allocation53_spill] sm:$0xff]  ;;  %v10519_v23 = vld [vmem:[#allocation54_spill] sm:$0xff]  ;;  %v10521_v4 = vld [vmem:[#allocation40_spill] sm:$0xff] }
 0x301   :  { %4102 = vmatpush3.bf16.msra.mxu0 %v4101_v18  ;;  %v4141_v40 = vpack.c.bf16 %v10519_v23, %v10518_v32  ;;  %v4111_v12 = vpack.c.bf16 %v10521_v4, %v10520_v25  ;;  %v10522_v26 = vld [vmem:[#allocation71_spill] sm:$0xff]  ;;  %v10523_v1 = vld [vmem:[#allocation72_spill] sm:$0xff]  ;;  %v10528_v30 = vld [vmem:[#allocation89_spill] sm:$0xff] }
 0x302   :  { %4134 = vmatpush3.bf16.msra.mxu1 %v4133_v36  ;;  %4104 = vmatprep.subr.bf16.mxu0 %v4103_v3  ;;  %v4143_v8 = vpack.c.bf16 %v10523_v1, %v10522_v26  ;;  %v10524_v60 = vld [vmem:[#allocation23_spill] sm:$0xff]  ;;  %v10525_v33 = vld [vmem:[#allocation24_spill] sm:$0xff]  ;;  %v10529_v56 = vld [vmem:[#allocation90_spill] sm:$0xff] }
 0x303   :  { %4136 = vmatprep.subr.bf16.mxu1 %v4135_v62  ;;  %v4113_v34 = vpack.c.bf16 %v10525_v33, %v10524_v60  ;;  %v10526_v27 = vld [vmem:[#allocation55_spill] sm:$0xff]  ;;  %v10527_v42 = vld [vmem:[#allocation56_spill] sm:$0xff]  ;;  %v4147_v22 = vpack.c.bf16 %v10529_v56, %v10528_v30  ;;  %v10530_v9 = vld [vmem:[#allocation121_spill] sm:$0xff] }
 0x304   :  { %v4145_v0 = vpack.c.bf16 %v10527_v42, %v10526_v27  ;;  %v10531_v5 = vld [vmem:[#allocation122_spill] sm:$0xff]  ;;  %v10532_v39 = vld [vmem:[#allocation73_spill] sm:$0xff]  ;;  %v10536_v24 = vld [vmem:[#allocation91_spill] sm:$0xff] }
 0x305   :  { %4106 = vmatpush3.bf16.msra.mxu0 %v4105_v21  ;;  %v4179_v13 = vpack.c.bf16 %v10531_v5, %v10530_v9  ;;  %v10533_v43 = vld [vmem:[#allocation74_spill] sm:$0xff]  ;;  %v10534_v51 = vld [vmem:[#allocation105_spill] sm:$0xff]  ;;  %v10537_v36 = vld [vmem:[#allocation92_spill] sm:$0xff] }
 0x306   :  { %4138 = vmatpush3.bf16.msra.mxu1 %v4137_v59  ;;  %4108 = vmatprep.subr.bf16.mxu0 %v4107_v44  ;;  %v4149_v38 = vpack.c.bf16 %v10533_v43, %v10532_v39  ;;  %v10535_v18 = vld [vmem:[#allocation106_spill] sm:$0xff]  ;;  %v4151_v53 = vpack.c.bf16 %v10537_v36, %v10536_v24  ;;  %v10538_v47 = vld [vmem:[#allocation123_spill] sm:$0xff]  ;;  %v10539_v3 = vld [vmem:[#allocation124_spill] sm:$0xff] }
 0x307   :  { %4140 = vmatprep.subr.bf16.mxu1 %v4139_v28  ;;  %v4181_v10 = vpack.c.bf16 %v10535_v18, %v10534_v51  ;;  %v4183_v15 = vpack.c.bf16 %v10539_v3, %v10538_v47  ;;  %v10540_v31 = vld [vmem:[#allocation75_spill] sm:$0xff]  ;;  %v10541_v62 = vld [vmem:[#allocation76_spill] sm:$0xff]  ;;  %v10544_v55 = vld [vmem:[#allocation93_spill] sm:$0xff] }
 0x308   :  { %v4153_v41 = vpack.c.bf16 %v10541_v62, %v10540_v31  ;;  %v10542_v50 = vld [vmem:[#allocation107_spill] sm:$0xff]  ;;  %v10543_v21 = vld [vmem:[#allocation108_spill] sm:$0xff]  ;;  %v10545_v59 = vld [vmem:[#allocation94_spill] sm:$0xff] }
 0x309   :  { %4110 = vmatpush3.bf16.msra.mxu0 %v4109_v14  ;;  %v4185_v2 = vpack.c.bf16 %v10543_v21, %v10542_v50  ;;  %v4155_v20 = vpack.c.bf16 %v10545_v59, %v10544_v55  ;;  %v10546_v48 = vld [vmem:[#allocation125_spill] sm:$0xff]  ;;  %v10547_v44 = vld [vmem:[#allocation126_spill] sm:$0xff]  ;;  %v10552_v14 = vld [vmem:[#allocation95_spill] sm:$0xff] }
 0x30a   :  { %4142 = vmatpush3.bf16.msra.mxu1 %v4141_v40  ;;  %4112 = vmatprep.subr.bf16.mxu0 %v4111_v12  ;;  %v4187_v7 = vpack.c.bf16 %v10547_v44, %v10546_v48  ;;  %v10550_v28 = vld [vmem:[#allocation109_spill] sm:$0xff]  ;;  %v10551_v57 = vld [vmem:[#allocation110_spill] sm:$0xff]  ;;  %v10553_v32 = vld [vmem:[#allocation96_spill] sm:$0xff] }
 0x30b   :  { %4144 = vmatprep.subr.bf16.mxu1 %v4143_v8  ;;  %v4189_v17 = vpack.c.bf16 %v10551_v57, %v10550_v28  ;;  %v4159_v23 = vpack.c.bf16 %v10553_v32, %v10552_v14  ;;  %v10554_v40 = vld [vmem:[#allocation127_spill] sm:$0xff]  ;;  %v10555_v25 = vld [vmem:[#allocation128_spill] sm:$0xff]  ;;  %v10560_v60 = vld [vmem:[#allocation97_spill] sm:$0xff] }
 0x30c   :  { %v4191_v4 = vpack.c.bf16 %v10555_v25, %v10554_v40  ;;  %v10558_v26 = vld [vmem:[#allocation111_spill] sm:$0xff]  ;;  %v10559_v1 = vld [vmem:[#allocation112_spill] sm:$0xff]  ;;  %v10561_v33 = vld [vmem:[#allocation98_spill] sm:$0xff] }
 0x30d   :  { %4114 = vmatpush3.bf16.msra.mxu0 %v4113_v34  ;;  %v4193_v8 = vpack.c.bf16 %v10559_v1, %v10558_v26  ;;  %v4163_v34 = vpack.c.bf16 %v10561_v33, %v10560_v60  ;;  %v10562_v27 = vld [vmem:[#allocation129_spill] sm:$0xff]  ;;  %v10563_v42 = vld [vmem:[#allocation130_spill] sm:$0xff]  ;;  %v10568_v39 = vld [vmem:[#allocation99_spill] sm:$0xff] }
 0x30e   :  { %4146 = vmatpush3.bf16.msra.mxu1 %v4145_v0  ;;  %4148 = vmatprep.subr.bf16.mxu0 %v4147_v22  ;;  %v4195_v0 = vpack.c.bf16 %v10563_v42, %v10562_v27  ;;  %v10564_v30 = vld [vmem:[#allocation81_spill] sm:$0xff]  ;;  %v10565_v56 = vld [vmem:[#allocation82_spill] sm:$0xff]  ;;  %v10569_v43 = vld [vmem:[#allocation100_spill] sm:$0xff] }
 0x30f   :  { %4180 = vmatprep.subr.bf16.mxu1 %v4179_v13  ;;  %v4165_v22 = vpack.c.bf16 %v10565_v56, %v10564_v30  ;;  %v10566_v9 = vld [vmem:[#allocation113_spill] sm:$0xff]  ;;  %v10567_v5 = vld [vmem:[#allocation114_spill] sm:$0xff]  ;;  %v10570_v51 = vld [vmem:[#allocation131_spill] sm:$0xff] }
 0x310   :  { %3035 = vmatmul.mubr.f32.vlgmr.msra.gmra.mrb[8].mxu0 %v8707_v49  ;;  %v10548_v49 = vld [vmem:[#allocation77_spill] sm:$0xff]  ;;  %v4197_v13 = vpack.c.bf16 %v10567_v5, %v10566_v9  ;;  %v10571_v18 = vld [vmem:[#allocation132_spill] sm:$0xff]  ;;  %v10572_v24 = vld [vmem:[#allocation83_spill] sm:$0xff] }
 0x311   :  { %3105 = vmatmul.mubr.f32.vlgmr.msra.gmra.mrb[8].mxu1 %v8749_v52  ;;  %4150 = vmatpush3.bf16.msra.mxu0 %v4149_v38  ;;  %v10549_v52 = vld [vmem:[#allocation78_spill] sm:$0xff]  ;;  %v4167_v38 = vpack.c.bf16 %v10569_v43, %v10568_v39  ;;  %v10573_v36 = vld [vmem:[#allocation84_spill] sm:$0xff]  ;;  %v10574_v47 = vld [vmem:[#allocation115_spill] sm:$0xff] }
 0x312   :  { %4182 = vmatpush3.bf16.msra.mxu1 %v4181_v10  ;;  %4152 = vmatprep.subr.bf16.mxu0 %v4151_v53  ;;  %v4157_v46 = vpack.c.bf16 %v10549_v52, %v10548_v49  ;;  %v4199_v10 = vpack.c.bf16 %v10571_v18, %v10570_v51  ;;  %v4169_v53 = vpack.c.bf16 %v10573_v36, %v10572_v24  ;;  %v10575_v3 = vld [vmem:[#allocation116_spill] sm:$0xff]  ;;  %v10576_v31 = vld [vmem:[#allocation101_spill] sm:$0xff]  ;;  %v10577_v62 = vld [vmem:[#allocation102_spill] sm:$0xff] }
 0x313   :  { %4184 = vmatprep.subr.bf16.mxu1 %v4183_v15  ;;  %3174 = vmatprep.mubr.f32.mxu0 %v8798_v19  ;;  %v10556_v19 = vld [vmem:[#allocation79_spill] sm:$0xff]  ;;  %v4201_v15 = vpack.c.bf16 %v10575_v3, %v10574_v47  ;;  %v10578_v50 = vld [vmem:[#allocation133_spill] sm:$0xff]  ;;  %v10579_v21 = vld [vmem:[#allocation134_spill] sm:$0xff] }
 0x314   :  { %3244 = vmatprep.mubr.f32.mxu1 %v8832_v45  ;;  %v10557_v45 = vld [vmem:[#allocation80_spill] sm:$0xff]  ;;  %v10580_v55 = vld [vmem:[#allocation85_spill] sm:$0xff]  ;;  %v10581_v59 = vld [vmem:[#allocation86_spill] sm:$0xff] }
 0x315   :  { %4154 = vmatpush3.bf16.msra.mxu0 %v4153_v41  ;;  %v4161_v12 = vpack.c.bf16 %v10557_v45, %v10556_v19  ;;  %v4171_v41 = vpack.c.bf16 %v10577_v62, %v10576_v31  ;;  %v10582_v48 = vld [vmem:[#allocation117_spill] sm:$0xff]  ;;  %v10583_v44 = vld [vmem:[#allocation118_spill] sm:$0xff]  ;;  %v10584_v49 = vld [vmem:[#allocation103_spill] sm:$0xff] }
 0x316   :  { %4186 = vmatpush3.bf16.msra.mxu1 %v4185_v2  ;;  %4156 = vmatprep.subr.bf16.mxu0 %v4155_v20  ;;  %v4203_v2 = vpack.c.bf16 %v10579_v21, %v10578_v50  ;;  %v4173_v20 = vpack.c.bf16 %v10581_v59, %v10580_v55  ;;  %v10585_v52 = vld [vmem:[#allocation104_spill] sm:$0xff]  ;;  %v10586_v28 = vld [vmem:[#allocation135_spill] sm:$0xff]  ;;  %v10592_v19 = vld [vmem:[#allocation153_spill] sm:$0xff] }
 0x317   :  { %4188 = vmatprep.subr.bf16.mxu1 %v4187_v7  ;;  %v4205_v7 = vpack.c.bf16 %v10583_v44, %v10582_v48  ;;  %v10587_v57 = vld [vmem:[#allocation136_spill] sm:$0xff]  ;;  %v10588_v14 = vld [vmem:[#allocation87_spill] sm:$0xff]  ;;  %v10593_v45 = vld [vmem:[#allocation154_spill] sm:$0xff] }
 0x318   :  { %v10589_v32 = vld [vmem:[#allocation88_spill] sm:$0xff]  ;;  %v10590_v40 = vld [vmem:[#allocation119_spill] sm:$0xff]  ;;  %v10594_v26 = vld [vmem:[#allocation185_spill] sm:$0xff] }
 0x319   :  { %4158 = vmatpush3.bf16.msra.mxu0 %v4157_v46  ;;  %v4175_v46 = vpack.c.bf16 %v10585_v52, %v10584_v49  ;;  %v10591_v25 = vld [vmem:[#allocation120_spill] sm:$0xff]  ;;  %v10595_v1 = vld [vmem:[#allocation186_spill] sm:$0xff]  ;;  %v10596_v60 = vld [vmem:[#allocation137_spill] sm:$0xff] }
 0x31a   :  { %4190 = vmatpush3.bf16.msra.mxu1 %v4189_v17  ;;  %4160 = vmatprep.subr.bf16.mxu0 %v4159_v23  ;;  %v4207_v17 = vpack.c.bf16 %v10587_v57, %v10586_v28  ;;  %v4177_v23 = vpack.c.bf16 %v10589_v32, %v10588_v14  ;;  %v10597_v33 = vld [vmem:[#allocation138_spill] sm:$0xff]  ;;  %v10598_v27 = vld [vmem:[#allocation169_spill] sm:$0xff]  ;;  %v10600_v30 = vld [vmem:[#allocation155_spill] sm:$0xff] }
 0x31b   :  { %4192 = vmatprep.subr.bf16.mxu1 %v4191_v4  ;;  %v4209_v4 = vpack.c.bf16 %v10591_v25, %v10590_v40  ;;  %v10599_v42 = vld [vmem:[#allocation170_spill] sm:$0xff]  ;;  %v10601_v56 = vld [vmem:[#allocation156_spill] sm:$0xff]  ;;  %v10602_v9 = vld [vmem:[#allocation187_spill] sm:$0xff] }
 0x31c   :  { %v10603_v5 = vld [vmem:[#allocation188_spill] sm:$0xff]  ;;  %v10604_v39 = vld [vmem:[#allocation139_spill] sm:$0xff]  ;;  %v10608_v24 = vld [vmem:[#allocation157_spill] sm:$0xff] }
 0x31d   :  { %4162 = vmatpush3.bf16.msra.mxu0 %v4161_v12  ;;  %v4211_v12 = vpack.c.bf16 %v10593_v45, %v10592_v19  ;;  %v10605_v43 = vld [vmem:[#allocation140_spill] sm:$0xff]  ;;  %v10606_v51 = vld [vmem:[#allocation171_spill] sm:$0xff]  ;;  %v10609_v36 = vld [vmem:[#allocation158_spill] sm:$0xff] }
 0x31e   :  { %4194 = vmatpush3.bf16.msra.mxu1 %v4193_v8  ;;  %4164 = vmatprep.subr.bf16.mxu0 %v4163_v34  ;;  %v4243_v8 = vpack.c.bf16 %v10595_v1, %v10594_v26  ;;  %v4213_v34 = vpack.c.bf16 %v10597_v33, %v10596_v60  ;;  %v10607_v18 = vld [vmem:[#allocation172_spill] sm:$0xff]  ;;  %v10610_v47 = vld [vmem:[#allocation189_spill] sm:$0xff]  ;;  %v10611_v3 = vld [vmem:[#allocation190_spill] sm:$0xff] }
 0x31f   :  { %4196 = vmatprep.subr.bf16.mxu1 %v4195_v0  ;;  %v4245_v0 = vpack.c.bf16 %v10599_v42, %v10598_v27  ;;  %v10614_v62 = vld [vmem:[#allocation173_spill] sm:$0xff]  ;;  %v10616_v21 = vld [vmem:[#allocation159_spill] sm:$0xff]  ;;  %v10623_v49 = vld [vmem:[#allocation176_spill] sm:$0xff] }
 0x320   :  { %v10618_v59 = vld [vmem:[#allocation191_spill] sm:$0xff]  ;;  %v10625_v28 = vld [vmem:[#allocation162_spill] sm:$0xff]  ;;  %v10633_v26 = vld [vmem:[#allocation164_spill] sm:$0xff] }
 0x321   :  { %4166 = vmatpush3.bf16.msra.mxu0 %v4165_v22  ;;  %v4215_v22 = vpack.c.bf16 %v10601_v56, %v10600_v30  ;;  %v10627_v14 = vld [vmem:[#allocation194_spill] sm:$0xff]  ;;  %v10635_v60 = vld [vmem:[#allocation196_spill] sm:$0xff]  ;;  %vm10721_vm6 = vmmov %vm10720_vm0 }
 0x322   :  { %4198 = vmatpush3.bf16.msra.mxu1 %v4197_v13  ;;  %4168 = vmatprep.subr.bf16.mxu0 %v4167_v38  ;;  %v4247_v13 = vpack.c.bf16 %v10603_v5, %v10602_v9  ;;  %v4217_v38 = vpack.c.bf16 %v10605_v43, %v10604_v39  ;;  %v10629_v40 = vld [vmem:[#allocation146_spill] sm:$0xff]  ;;  %v10637_v27 = vld [vmem:[#allocation148_spill] sm:$0xff]  ;;  %vm10722_vm14 = vmmov %vm10720_vm0 }
 0x323   :  { %4200 = vmatprep.subr.bf16.mxu1 %v4199_v10  ;;  %v4249_v10 = vpack.c.bf16 %v10607_v18, %v10606_v51  ;;  %v10631_v19 = vld [vmem:[#allocation178_spill] sm:$0xff]  ;;  %v10639_v30 = vld [vmem:[#allocation180_spill] sm:$0xff] }
 0x324   :  { %v10641_v9 = vld [vmem:[#allocation166_spill] sm:$0xff] }
 0x325   :  { %4170 = vmatpush3.bf16.msra.mxu0 %v4169_v53  ;;  %v4219_v53 = vpack.c.bf16 %v10609_v36, %v10608_v24  ;;  %v10643_v39 = vld [vmem:[#allocation198_spill] sm:$0xff] }
 0x326   :  { %4202 = vmatpush3.bf16.msra.mxu1 %v4201_v15  ;;  %4172 = vmatprep.subr.bf16.mxu0 %v4171_v41  ;;  %v4251_v15 = vpack.c.bf16 %v10611_v3, %v10610_v47  ;;  %v10615_v41 = vld [vmem:[#allocation174_spill] sm:$0xff]  ;;  %v10649_v47 = vld [vmem:[#allocation168_spill] sm:$0xff] }
 0x327   :  { %4204 = vmatprep.subr.bf16.mxu1 %v4203_v2  ;;  %v4253_v50 = vpack.c.bf16 %v10615_v41, %v10614_v62  ;;  %v10617_v2 = vld [vmem:[#allocation160_spill] sm:$0xff]  ;;  %v10645_v51 = vld [vmem:[#allocation150_spill] sm:$0xff] }
 0x328   :  { %v4223_v55 = vpack.c.bf16 %v10617_v2, %v10616_v21  ;;  %v10647_v24 = vld [vmem:[#allocation182_spill] sm:$0xff]  ;;  %v10653_v62 = vld [vmem:[#allocation152_spill] sm:$0xff] }
 0x329   :  { %4174 = vmatpush3.bf16.msra.mxu0 %v4173_v20  ;;  %v10619_v20 = vld [vmem:[#allocation192_spill] sm:$0xff] }
 0x32a   :  { %4206 = vmatpush3.bf16.msra.mxu1 %v4205_v7  ;;  %4176 = vmatprep.subr.bf16.mxu0 %v4175_v46  ;;  %v4255_v48 = vpack.c.bf16 %v10619_v20, %v10618_v59  ;;  %v10622_v7 = vld [vmem:[#allocation175_spill] sm:$0xff]  ;;  %v10624_v46 = vld [vmem:[#allocation161_spill] sm:$0xff]  ;;  %v10655_v21 = vld [vmem:[#allocation184_spill] sm:$0xff] }
 0x32b   :  { %4208 = vmatprep.subr.bf16.mxu1 %v4207_v17  ;;  %v4257_v52 = vpack.c.bf16 %v10623_v49, %v10622_v7  ;;  %v4227_v57 = vpack.c.bf16 %v10625_v28, %v10624_v46  ;;  %v10626_v17 = vld [vmem:[#allocation193_spill] sm:$0xff]  ;;  %v10657_v59 = vld [vmem:[#allocation218_spill] sm:$0xff] }
 0x32c   :  { %v4259_v32 = vpack.c.bf16 %v10627_v14, %v10626_v17  ;;  %v10661_v7 = vld [vmem:[#allocation202_spill] sm:$0xff]  ;;  %v10665_v17 = vld [vmem:[#allocation220_spill] sm:$0xff] }
 0x32d   :  { %4178 = vmatpush3.bf16.msra.mxu0 %v4177_v23  ;;  %v10628_v23 = vld [vmem:[#allocation145_spill] sm:$0xff]  ;;  %v10663_v46 = vld [vmem:[#allocation234_spill] sm:$0xff] }
 0x32e   :  { %4210 = vmatpush3.bf16.msra.mxu1 %v4209_v4  ;;  %4212 = vmatprep.subr.bf16.mxu0 %v4211_v12  ;;  %v4229_v25 = vpack.c.bf16 %v10629_v40, %v10628_v23  ;;  %v10630_v4 = vld [vmem:[#allocation177_spill] sm:$0xff]  ;;  %v10632_v12 = vld [vmem:[#allocation163_spill] sm:$0xff]  ;;  %v10667_v23 = vld [vmem:[#allocation252_spill] sm:$0xff] }
 0x32f   :  { %4244 = vmatprep.subr.bf16.mxu1 %v4243_v8  ;;  %v4261_v45 = vpack.c.bf16 %v10631_v19, %v10630_v4  ;;  %v4231_v1 = vpack.c.bf16 %v10633_v26, %v10632_v12  ;;  %v10634_v8 = vld [vmem:[#allocation195_spill] sm:$0xff]  ;;  %v10669_v4 = vld [vmem:[#allocation204_spill] sm:$0xff] }
 0x330   :  { %3175 = vmatmul.mubr.f32.vlgmr.msra.gmra.mrb[10].mxu0 %v8781_v37  ;;  %v10612_v37 = vld [vmem:[#allocation141_spill] sm:$0xff]  ;;  %v4263_v33 = vpack.c.bf16 %v10635_v60, %v10634_v8  ;;  %v10671_v12 = vld [vmem:[#allocation236_spill] sm:$0xff]  ;;  %v10673_v8 = vld [vmem:[#allocation222_spill] sm:$0xff] }
 0x331   :  { %3245 = vmatmul.mubr.f32.vlgmr.msra.gmra.mrb[10].mxu1 %v8815_v16  ;;  %4214 = vmatpush3.bf16.msra.mxu0 %v4213_v34  ;;  %v10613_v16 = vld [vmem:[#allocation142_spill] sm:$0xff]  ;;  %v10636_v34 = vld [vmem:[#allocation147_spill] sm:$0xff] }
 0x332   :  { %4246 = vmatpush3.bf16.msra.mxu1 %v4245_v0  ;;  %4216 = vmatprep.subr.bf16.mxu0 %v4215_v22  ;;  %v4221_v31 = vpack.c.bf16 %v10613_v16, %v10612_v37  ;;  %v4233_v42 = vpack.c.bf16 %v10637_v27, %v10636_v34  ;;  %v10638_v0 = vld [vmem:[#allocation179_spill] sm:$0xff]  ;;  %v10640_v22 = vld [vmem:[#allocation165_spill] sm:$0xff]  ;;  %v10651_v37 = vld [vmem:[#allocation200_spill] sm:$0xff] }
 0x333   :  { %4248 = vmatprep.subr.bf16.mxu1 %v4247_v13  ;;  %3314 = vmatprep.mubr.f32.mxu0 %v8866_v61  ;;  %v10620_v61 = vld [vmem:[#allocation143_spill] sm:$0xff]  ;;  %v4265_v56 = vpack.c.bf16 %v10639_v30, %v10638_v0  ;;  %v4235_v5 = vpack.c.bf16 %v10641_v9, %v10640_v22  ;;  %v10642_v13 = vld [vmem:[#allocation197_spill] sm:$0xff]  ;;  %v10675_v34 = vld [vmem:[#allocation254_spill] sm:$0xff] }
 0x334   :  { %3384 = vmatprep.mubr.f32.mxu1 %v8897_v29  ;;  %v10621_v29 = vld [vmem:[#allocation144_spill] sm:$0xff]  ;;  %v4267_v43 = vpack.c.bf16 %v10643_v39, %v10642_v13  ;;  %v10678_v0 = vld [vmem:[#allocation237_spill] sm:$0xff]  ;;  %v10679_v30 = vld [vmem:[#allocation238_spill] sm:$0xff] }
 0x335   :  { %4218 = vmatpush3.bf16.msra.mxu0 %v4217_v38  ;;  %v4225_v44 = vpack.c.bf16 %v10621_v29, %v10620_v61  ;;  %v10644_v38 = vld [vmem:[#allocation149_spill] sm:$0xff]  ;;  %v10659_v61 = vld [vmem:[#allocation250_spill] sm:$0xff]  ;;  %v10680_v22 = vld [vmem:[#allocation223_spill] sm:$0xff] }
 0x336   :  { %4250 = vmatpush3.bf16.msra.mxu1 %v4249_v10  ;;  %4220 = vmatprep.subr.bf16.mxu0 %v4219_v53  ;;  %v4237_v18 = vpack.c.bf16 %v10645_v51, %v10644_v38  ;;  %v10646_v10 = vld [vmem:[#allocation181_spill] sm:$0xff]  ;;  %v10648_v53 = vld [vmem:[#allocation167_spill] sm:$0xff]  ;;  %v10681_v9 = vld [vmem:[#allocation224_spill] sm:$0xff] }
 0x337   :  { %4252 = vmatprep.subr.bf16.mxu1 %v4251_v15  ;;  %v4269_v36 = vpack.c.bf16 %v10647_v24, %v10646_v10  ;;  %v4239_v3 = vpack.c.bf16 %v10649_v47, %v10648_v53  ;;  %v10650_v15 = vld [vmem:[#allocation199_spill] sm:$0xff]  ;;  %v10683_v39 = vld [vmem:[#allocation256_spill] sm:$0xff]  ;;  %v10688_v24 = vld [vmem:[#allocation225_spill] sm:$0xff] }
 0x338   :  { %v4271_v16 = vpack.c.bf16 %v10651_v37, %v10650_v15  ;;  %v10682_v13 = vld [vmem:[#allocation255_spill] sm:$0xff]  ;;  %v10690_v47 = vld [vmem:[#allocation257_spill] sm:$0xff] }
 0x339   :  { %4222 = vmatpush3.bf16.msra.mxu0 %v4221_v31  ;;  %v10652_v31 = vld [vmem:[#allocation151_spill] sm:$0xff]  ;;  %v10692_v37 = vld [vmem:[#allocation209_spill] sm:$0xff] }
 0x33a   :  { %4254 = vmatpush3.bf16.msra.mxu1 %v4253_v50  ;;  %4224 = vmatprep.subr.bf16.mxu0 %v4223_v55  ;;  %v4241_v41 = vpack.c.bf16 %v10653_v62, %v10652_v31  ;;  %v10654_v50 = vld [vmem:[#allocation183_spill] sm:$0xff]  ;;  %v10656_v55 = vld [vmem:[#allocation217_spill] sm:$0xff] }
 0x33b   :  { %4256 = vmatprep.subr.bf16.mxu1 %v4255_v48  ;;  %v4273_v2 = vpack.c.bf16 %v10655_v21, %v10654_v50  ;;  %v4275_v20 = vpack.c.bf16 %v10657_v59, %v10656_v55  ;;  %v10658_v48 = vld [vmem:[#allocation249_spill] sm:$0xff]  ;;  %v10686_v51 = vld [vmem:[#allocation239_spill] sm:$0xff] }
 0x33c   :  { %v4307_v29 = vpack.c.bf16 %v10659_v61, %v10658_v48  ;;  %v10694_v62 = vld [vmem:[#allocation241_spill] sm:$0xff]  ;;  %v10696_v21 = vld [vmem:[#allocation227_spill] sm:$0xff] }
 0x33d   :  { %4226 = vmatpush3.bf16.msra.mxu0 %v4225_v44  ;;  %v10660_v44 = vld [vmem:[#allocation201_spill] sm:$0xff]  ;;  %v10698_v59 = vld [vmem:[#allocation259_spill] sm:$0xff] }
 0x33e   :  { %4258 = vmatpush3.bf16.msra.mxu1 %v4257_v52  ;;  %4228 = vmatprep.subr.bf16.mxu0 %v4227_v57  ;;  %v4277_v49 = vpack.c.bf16 %v10661_v7, %v10660_v44  ;;  %v10662_v52 = vld [vmem:[#allocation233_spill] sm:$0xff]  ;;  %v10664_v57 = vld [vmem:[#allocation219_spill] sm:$0xff] }
 0x33f   :  { %4260 = vmatprep.subr.bf16.mxu1 %v4259_v32  ;;  %v4309_v28 = vpack.c.bf16 %v10663_v46, %v10662_v52  ;;  %v4279_v14 = vpack.c.bf16 %v10665_v17, %v10664_v57  ;;  %v10666_v32 = vld [vmem:[#allocation251_spill] sm:$0xff]  ;;  %v10704_v46 = vld [vmem:[#allocation229_spill] sm:$0xff] }
 0x340   :  { %v4311_v40 = vpack.c.bf16 %v10667_v23, %v10666_v32  ;;  %v10700_v61 = vld [vmem:[#allocation211_spill] sm:$0xff]  ;;  %v10706_v17 = vld [vmem:[#allocation261_spill] sm:$0xff] }
 0x341   :  { %4230 = vmatpush3.bf16.msra.mxu0 %v4229_v25  ;;  %v10668_v25 = vld [vmem:[#allocation203_spill] sm:$0xff]  ;;  %v10708_v23 = vld [vmem:[#allocation213_spill] sm:$0xff] }
 0x342   :  { %4262 = vmatpush3.bf16.msra.mxu1 %v4261_v45  ;;  %4232 = vmatprep.subr.bf16.mxu0 %v4231_v1  ;;  %v4281_v19 = vpack.c.bf16 %v10669_v4, %v10668_v25  ;;  %v10670_v45 = vld [vmem:[#allocation235_spill] sm:$0xff]  ;;  %v10672_v1 = vld [vmem:[#allocation221_spill] sm:$0xff] }
 0x343   :  { %4264 = vmatprep.subr.bf16.mxu1 %v4263_v33  ;;  %v4313_v26 = vpack.c.bf16 %v10671_v12, %v10670_v45  ;;  %v4283_v60 = vpack.c.bf16 %v10673_v8, %v10672_v1  ;;  %v10674_v33 = vld [vmem:[#allocation253_spill] sm:$0xff]  ;;  %v10702_v7 = vld [vmem:[#allocation243_spill] sm:$0xff] }
 0x344   :  { %v4315_v27 = vpack.c.bf16 %v10675_v34, %v10674_v33  ;;  %v10710_v4 = vld [vmem:[#allocation245_spill] sm:$0xff]  ;;  %v10712_v12 = vld [vmem:[#allocation231_spill] sm:$0xff] }
 0x345   :  { %4234 = vmatpush3.bf16.msra.mxu0 %v4233_v42  ;;  %v10714_v8 = vld [vmem:[#allocation263_spill] sm:$0xff] }
 0x346   :  { %4266 = vmatpush3.bf16.msra.mxu1 %v4265_v56  ;;  %4236 = vmatprep.subr.bf16.mxu0 %v4235_v5  ;;  %v4317_v56 = vpack.c.bf16 %v10679_v30, %v10678_v0  ;;  %v4287_v5 = vpack.c.bf16 %v10681_v9, %v10680_v22  ;;  %v10716_v34 = vld [vmem:[#allocation215_spill] sm:$0xff]  ;;  %v3735_v22 = vld [vmem:[%s9224_s3] ss:$0 sm:$0xff] }
 0x347   :  { %4268 = vmatprep.subr.bf16.mxu1 %v4267_v43  ;;  %v4319_v43 = vpack.c.bf16 %v10683_v39, %v10682_v13 }
 0x349   :  { %4238 = vmatpush3.bf16.msra.mxu0 %v4237_v18  ;;  %v10687_v18 = vld [vmem:[#allocation240_spill] sm:$0xff] }
 0x34a   :  { %4270 = vmatpush3.bf16.msra.mxu1 %v4269_v36  ;;  %4240 = vmatprep.subr.bf16.mxu0 %v4239_v3  ;;  %v4321_v10 = vpack.c.bf16 %v10687_v18, %v10686_v51  ;;  %v10689_v36 = vld [vmem:[#allocation226_spill] sm:$0xff] }
 0x34b   :  { %4272 = vmatprep.subr.bf16.mxu1 %v4271_v16  ;;  %v4291_v53 = vpack.c.bf16 %v10689_v36, %v10688_v24  ;;  %v10691_v3 = vld [vmem:[#allocation258_spill] sm:$0xff] }
 0x34c   :  { %v4323_v15 = vpack.c.bf16 %v10691_v3, %v10690_v47  ;;  %v10693_v16 = vld [vmem:[#allocation210_spill] sm:$0xff] }
 0x34d   :  { %4242 = vmatpush3.bf16.msra.mxu0 %v4241_v41  ;;  %v4293_v31 = vpack.c.bf16 %v10693_v16, %v10692_v37  ;;  %v10695_v41 = vld [vmem:[#allocation242_spill] sm:$0xff] }
 0x34e   :  { %4274 = vmatpush3.bf16.msra.mxu1 %v4273_v2  ;;  %4276 = vmatprep.subr.bf16.mxu0 %v4275_v20  ;;  %v4325_v50 = vpack.c.bf16 %v10695_v41, %v10694_v62  ;;  %v10697_v2 = vld [vmem:[#allocation228_spill] sm:$0xff] }
 0x34f   :  { %4308 = vmatprep.subr.bf16.mxu1 %v4307_v29  ;;  %v4295_v55 = vpack.c.bf16 %v10697_v2, %v10696_v21  ;;  %v10699_v20 = vld [vmem:[#allocation260_spill] sm:$0xff] }
 0x350   :  { %3315 = vmatmul.mubr.f32.vlgmr.msra.gmra.mrb[12].mxu0 %v8849_v54  ;;  %v10676_v54 = vld [vmem:[#allocation205_spill] sm:$0xff]  ;;  %v4327_v48 = vpack.c.bf16 %v10699_v20, %v10698_v59  ;;  %v10701_v29 = vld [vmem:[#allocation212_spill] sm:$0xff] }
 0x351   :  { %3385 = vmatmul.mubr.f32.vlgmr.msra.gmra.mrb[12].mxu1 %v8883_v11  ;;  %4278 = vmatpush3.bf16.msra.mxu0 %v4277_v49  ;;  %v10677_v11 = vld [vmem:[#allocation206_spill] sm:$0xff]  ;;  %v4297_v44 = vpack.c.bf16 %v10701_v29, %v10700_v61  ;;  %v10703_v49 = vld [vmem:[#allocation244_spill] sm:$0xff] }
 0x352   :  { %4310 = vmatpush3.bf16.msra.mxu1 %v4309_v28  ;;  %4280 = vmatprep.subr.bf16.mxu0 %v4279_v14  ;;  %v4285_v42 = vpack.c.bf16 %v10677_v11, %v10676_v54  ;;  %v4329_v52 = vpack.c.bf16 %v10703_v49, %v10702_v7  ;;  %v10705_v28 = vld [vmem:[#allocation230_spill] sm:$0xff]  ;;  %v10718_v11 = vld [vmem:[#allocation247_spill] sm:$0xff] }
 0x353   :  { %4312 = vmatprep.subr.bf16.mxu1 %v4311_v40  ;;  %3454 = vmatprep.mubr.f32.mxu0 %v8917_v58  ;;  %v10684_v58 = vld [vmem:[#allocation207_spill] sm:$0xff]  ;;  %v4299_v57 = vpack.c.bf16 %v10705_v28, %v10704_v46  ;;  %v10707_v14 = vld [vmem:[#allocation262_spill] sm:$0xff] }
 0x354   :  { %3524 = vmatprep.mubr.f32.mxu1 %v8924_v6  ;;  %v10685_v6 = vld [vmem:[#allocation208_spill] sm:$0xff]  ;;  %v4331_v32 = vpack.c.bf16 %v10707_v14, %v10706_v17  ;;  %v10709_v40 = vld [vmem:[#allocation214_spill] sm:$0xff] }
 0x355   :  { %4282 = vmatpush3.bf16.msra.mxu0 %v4281_v19  ;;  %v4289_v38 = vpack.c.bf16 %v10685_v6, %v10684_v58  ;;  %v4301_v25 = vpack.c.bf16 %v10709_v40, %v10708_v23  ;;  %v10711_v19 = vld [vmem:[#allocation246_spill] sm:$0xff] }
 0x356   :  { %4314 = vmatpush3.bf16.msra.mxu1 %v4313_v26  ;;  %4284 = vmatprep.subr.bf16.mxu0 %v4283_v60  ;;  %v4333_v45 = vpack.c.bf16 %v10711_v19, %v10710_v4  ;;  %v10713_v26 = vld [vmem:[#allocation232_spill] sm:$0xff] }
 0x357   :  { %4316 = vmatprep.subr.bf16.mxu1 %v4315_v27  ;;  %v4303_v1 = vpack.c.bf16 %v10713_v26, %v10712_v12  ;;  %v10715_v60 = vld [vmem:[#allocation264_spill] sm:$0xff] }
 0x358   :  { %v4335_v33 = vpack.c.bf16 %v10715_v60, %v10714_v8  ;;  %v10717_v27 = vld [vmem:[#allocation216_spill] sm:$0xff] }
 0x359   :  { %4286 = vmatpush3.bf16.msra.mxu0 %v4285_v42  ;;  %v4305_v54 = vpack.c.bf16 %v10717_v27, %v10716_v34  ;;  %v10719_v42 = vld [vmem:[#allocation248_spill] sm:$0xff] }
 0x35a   :  { %4318 = vmatpush3.bf16.msra.mxu1 %v4317_v56  ;;  %4288 = vmatprep.subr.bf16.mxu0 %v4287_v5  ;;  %v4337_v0 = vpack.c.bf16 %v10719_v42, %v10718_v11  ;;  %v3736_v26 = vld [vmem:[%s9225_s4] ss:$0 sm:$0xff] }
 0x35b   :  { %4320 = vmatprep.subr.bf16.mxu1 %v4319_v43  ;;  %v3737_v8 = vld [vmem:[%s9226_s5] ss:$0 sm:$0xff] }
 0x35d   :  { %4290 = vmatpush3.bf16.msra.mxu0 %v4289_v38 }
 0x35e   :  { %4322 = vmatpush3.bf16.msra.mxu1 %v4321_v10  ;;  %4292 = vmatprep.subr.bf16.mxu0 %v4291_v53 }
 0x35f   :  { %4324 = vmatprep.subr.bf16.mxu1 %v4323_v15 }
 0x361   :  { %4294 = vmatpush3.bf16.msra.mxu0 %v4293_v31 }
 0x362   :  { %4326 = vmatpush3.bf16.msra.mxu1 %v4325_v50  ;;  %4296 = vmatprep.subr.bf16.mxu0 %v4295_v55 }
 0x363   :  { %4328 = vmatprep.subr.bf16.mxu1 %v4327_v48 }
 0x365   :  { %4298 = vmatpush3.bf16.msra.mxu0 %v4297_v44 }
 0x366   :  { %4330 = vmatpush3.bf16.msra.mxu1 %v4329_v52  ;;  %4300 = vmatprep.subr.bf16.mxu0 %v4299_v57 }
 0x367   :  { %4332 = vmatprep.subr.bf16.mxu1 %v4331_v32 }
 0x369   :  { %4302 = vmatpush3.bf16.msra.mxu0 %v4301_v25 }
 0x36a   :  { %4334 = vmatpush3.bf16.msra.mxu1 %v4333_v45  ;;  %4304 = vmatprep.subr.bf16.mxu0 %v4303_v1 }
 0x36b   :  { %4336 = vmatprep.subr.bf16.mxu1 %v4335_v33 }
 0x36d   :  { %4306 = vmatpush3.bf16.msra.mxu0 %v4305_v54 }
 0x36e   :  { %4338 = vmatpush3.bf16.msra.mxu1 %v4337_v0 }
 0x370   :  { %3455 = vmatmul.mubr.f32.vlgmr.msra.gmra.mrb[14].mxu0 %v8908_v35 }
 0x371   :  { %3525 = vmatmul.mubr.f32.vlgmr.msra.gmra.mrb[14].mxu1 %v8922_v63 }
 0x3e3   :  { %v3771_v30 = vpop.f32.mrb[8].mxu0 }
 0x3e4   :  { %v3806_v56 = vpop.f32.mrb[8].mxu1  ;;  %v3772_v9 = vpop.f32.mrb[9].mxu0 }
 0x3e5   :  { %v3807_v5 = vpop.f32.mrb[9].mxu1  ;;  %v3773_v13 = vadd.f32 %v3772_v9, %v3771_v30 }
 0x3e6   :  { %v3808_v39 = vadd.f32 %v3807_v5, %v3806_v56 }
 0x3e7   :  { %v3037_v43 = vadd.f32 %v3773_v13, %v3735_v22 }
 0x3e9   :  { %v3107_v58 = vadd.f32 %v3808_v39, %v3037_v43 }
 0x403   :  { %v3841_v6 = vpop.f32.mrb[10].mxu0 }
 0x404   :  { %v3876_v38 = vpop.f32.mrb[10].mxu1  ;;  %v3842_v51 = vpop.f32.mrb[11].mxu0 }
 0x405   :  { %v3877_v18 = vpop.f32.mrb[11].mxu1  ;;  %v3843_v10 = vadd.f32 %v3842_v51, %v3841_v6 }
 0x406   :  { %v3878_v35 = vadd.f32 %v3877_v18, %v3876_v38 }
 0x407   :  { %v3177_v24 = vadd.f32 %v3843_v10, %v3107_v58 }
 0x409   :  { %v3247_v63 = vadd.f32 %v3878_v35, %v3177_v24 }
 0x423   :  { %v3911_v36 = vpop.f32.mrb[12].mxu0 }
 0x424   :  { %v3946_v53 = vpop.f32.mrb[12].mxu1  ;;  %v3912_v47 = vpop.f32.mrb[13].mxu0 }
 0x425   :  { %v3947_v3 = vpop.f32.mrb[13].mxu1  ;;  %v3913_v15 = vadd.f32 %v3912_v47, %v3911_v36 }
 0x426   :  { %v3948_v37 = vadd.f32 %v3947_v3, %v3946_v53 }
 0x427   :  { %v3317_v16 = vadd.f32 %v3913_v15, %v3247_v63 }
 0x429   :  { %v3387_v31 = vadd.f32 %v3948_v37, %v3317_v16 }
 0x443   :  { %v3981_v62 = vpop.f32.mrb[14].mxu0 }
 0x444   :  { %v4016_v41 = vpop.f32.mrb[14].mxu1  ;;  %v3982_v50 = vpop.f32.mrb[15].mxu0 }
 0x445   :  { %v4017_v21 = vpop.f32.mrb[15].mxu1  ;;  %v3983_v2 = vadd.f32 %v3982_v50, %v3981_v62 }
 0x446   :  { %v4018_v55 = vadd.f32 %v4017_v21, %v4016_v41 }
 0x447   :  { %v3457_v59 = vadd.f32 %v3983_v2, %v3387_v31 }
 0x449   :  { %v3527_v20 = vadd.f32 %v4018_v55, %v3457_v59 }
 0x44b   :  { %v3530_v48 = vsel %vm10720_vm0, %v3527_v20, 0.0 }
 0x44c   :  { %v3531_v61 = vrot.slane %v3530_v48, 4 }
 0x44e   :  { %v3532_v29 = vadd.f32 %v3531_v61, %v3530_v48 }
 0x450   :  { %v3533_v44 = vrot.slane %v3532_v29, 2 }
 0x452   :  { %v3534_v7 = vadd.f32 %v3533_v44, %v3532_v29 }
 0x454   :  { %v3535_v49 = vrot.slane %v3534_v7, 1 }
 0x456   :  { %v3536_v52 = vadd.f32 %v3535_v49, %v3534_v7 }
 0x458   :  { %v3538_v46 = vmul.f32 0.125, %v3536_v52 }
 0x45a   :  { %v3539_v28 = vsub.f32 %v3527_v20, %v3538_v46 }
 0x45c   :  { %v3540_v57 = vmul.f32 %v3539_v28, %v3539_v28 }
 0x45e   :  { %v3541_v17 = vsel %vm10721_vm6, %v3540_v57, 0.0 }
 0x45f   :  { %v3542_v14 = vrot.slane %v3541_v17, 4 }
 0x461   :  { %v3543_v32 = vadd.f32 %v3542_v14, %v3541_v17 }
 0x463   :  { %v3544_v23 = vrot.slane %v3543_v32, 2 }
 0x465   :  { %v3545_v40 = vadd.f32 %v3544_v23, %v3543_v32 }
 0x467   :  { %v3546_v25 = vrot.slane %v3545_v40, 1 }
 0x469   :  { %v3547_v4 = vadd.f32 %v3546_v25, %v3545_v40 }
 0x46b   :  { %v3548_v19 = vmul.f32 0.125, %v3547_v4 }
 0x46d   :  { %v3549_v45 = vadd.f32 1e-05, %v3548_v19 }
 0x46f   :  { %4372 = vrsqrt.f32 %v3549_v45 }
 0x479   :  { %v4373_v12 = vpop.eup %4372 }
 0x47a   :  { %v3551_v1 = vmul.f32 %v4373_v12, %v3539_v28 }
 0x47c   :  { %v3559_v60 = vmul.f32 %v3736_v26, %v3551_v1 }
 0x47e   :  { %v3567_v33 = vadd.f32 %v3737_v8, %v3559_v60 }
 0x480   :  { %v3568_v34 = vmax.f32 %v3567_v33, 0.0 }
 0x482   :  { %3569 = vst.msk [vmem:[#allocation4] sm:$0xff] %vm10722_vm14, %v3568_v34 }
 0x483   :  { %4385 = shalt.err (!%p4382_p4)
}
 0x484   :  { %s4386_s19 = scalar_lea.hbm %s9228_s7, 128 }
 0x485   :  { %p4387_p5 = scmp.ne.s32.totalorder %s9228_s7, %s4386_s19  ;;  %p4390_p6 = scmp.lt.u32.totalorder %s4386_s19, %s9228_s7 }
 0x487   :  { %p4392_p7 = pnand %p4390_p6, %p4387_p5 }
 0x489   :  { %4395 = shalt.err (!%p4392_p7)
}
 0x48a   :  { %3579 = dma.vmem_to_hbm [thread:$0]  %s3577_s16, 128, %s9228_s7, [#allocation5]  }
 0x48b   :  { %4398 = dma.done.wait [#allocation5], 128  }
 0x48c   :  { %4399 = vsyncadd [#allocation5], 4294967168 }
 0x48d   :  { %3583 = vsyncpa [#allocation5], 1 }
 0x48e   :  { %3584 = vsyncmov [#allocation3] }
 0x491   :  { %s3585_s25 = vpop.sfrf %3584 }
 0x492   :  { %p3738_p8 = scmp.ne.s32.totalorder %s3585_s25, 0 }
 0x494   :  { %3589 = shalt.err (%p3738_p8)  }

</bundles_post_ra>
